<compile_context>
chip_gen: v7x
topology: tpu7x:2x2x1
jax: 0.10.0
libtpu: 0.0.40
codegen_flags: <defaults>
</compile_context>

<pallas_src>
import functools
import math

import jax
import jax.numpy as jnp
import numpy as np
from jax import lax
from jax.experimental import pallas as pl
from jax.experimental.pallas import tpu as pltpu


# ----------------------------- small helpers ---------------------------------

def _round_up(x, m):
    return ((x + m - 1) // m) * m


def _row_tile(m):
    """MXU-height row tile: 128 on v5e (4x128 MXU), 256 on v6e/v7x."""
    try:
        kind = jax.devices()[0].device_kind.lower()
    except Exception:  # pragma: no cover - defensive only
        kind = ""
    base = 128 if ("v5 lite" in kind or "v5e" in kind) else 256
    return base if m >= base else _round_up(m, 8)


_SINGLE_BUFFER = None


def _single_buffer_ok():
    """Probe once whether pipeline_mode=pl.Buffered(1) is supported here."""
    global _SINGLE_BUFFER
    if _SINGLE_BUFFER is None:
        try:
            def probe(x_ref, w_ref, o_ref):
                o_ref[...] = x_ref[...] + w_ref[...]

            z = jnp.zeros((8, 128), jnp.float32)
            out = pl.pallas_call(
                probe,
                out_shape=jax.ShapeDtypeStruct((8, 128), jnp.float32),
                grid=(1,),
                in_specs=[pl.BlockSpec((8, 128), lambda i: (0, 0)),
                          pl.BlockSpec((8, 128), lambda i: (0, 0),
                                       pipeline_mode=pl.Buffered(1))],
                out_specs=pl.BlockSpec((8, 128), lambda i: (0, 0)),
            )(z, z)
            jax.block_until_ready(out)
            _SINGLE_BUFFER = True
        except Exception:
            _SINGLE_BUFFER = False
    return _SINGLE_BUFFER


def _const_specs(params, grid_ndim):
    """BlockSpecs for grid-invariant params; single-buffered when supported."""
    single = _single_buffer_ok()
    specs = []
    for p in params:
        nd = p.ndim
        if grid_ndim == 1:
            idx = lambda i, nd=nd: (0,) * nd
        else:
            idx = lambda i, j, nd=nd: (0,) * nd
        if single:
            specs.append(pl.BlockSpec(p.shape, idx, pipeline_mode=pl.Buffered(1)))
        else:
            specs.append(pl.BlockSpec(p.shape, idx))
    return specs


def _layernorm(x, w, b, eps=1e-5):
    mu = jnp.mean(x, axis=-1, keepdims=True)
    var = jnp.mean((x - mu) ** 2, axis=-1, keepdims=True)
    return (x - mu) * lax.rsqrt(var + eps) * w + b


def _gelu_tanh(x):
    c = math.sqrt(2.0 / math.pi)
    return 0.5 * x * (1.0 + jnp.tanh(c * (x + 0.044715 * x * x * x)))


# --------------------------------- kernels -----------------------------------

def block_kernel(x_ref, ln1w, ln1b, w_qkv, b_qkv, w_proj, b_proj,
                 ln2w, ln2b, w_fc, b_fc, w_fc2, b_fc2, o_ref, *, n_head):
    """One transformer block (LN1 -> causal MHA -> proj -> +res,
    LN2 -> fc -> GELU(tanh) -> proj -> +res) for one batch row."""
    f32, bf16 = jnp.float32, jnp.bfloat16
    x = x_ref[0]                                   # (T, C) f32
    T, C = x.shape
    hd = C // n_head
    scale = 1.0 / math.sqrt(hd)

    # ---- attention ----
    h = _layernorm(x, ln1w[...], ln1b[...]).astype(bf16)            # (T, C)
    # Fused, lane-dense QKV projection: one (T,C)x(C,3C) MXU pass.
    qkv = jnp.dot(h, w_qkv[...], preferred_element_type=f32) + b_qkv[...]
    q = qkv[:, :C].reshape(T, n_head, hd)
    k = qkv[:, C:2 * C].reshape(T, n_head, hd)
    v = qkv[:, 2 * C:].reshape(T, n_head, hd)

    # Scores / softmax in f32; matmul inputs bf16 (MXU path, f32 accumulate).
    s = jnp.einsum('thd,shd->hts', q.astype(bf16), k.astype(bf16),
                   preferred_element_type=f32) * scale              # (H, T, T)
    # In-kernel causal mask: a few VPU ops that hide under the MXU.
    row = lax.broadcasted_iota(jnp.int32, (T, T), 0)
    col = lax.broadcasted_iota(jnp.int32, (T, T), 1)
    s = jnp.where((col <= row)[None], s, jnp.float32(-1e30))
    m = jnp.max(s, axis=-1, keepdims=True)
    p = jnp.exp(s - m)
    l = jnp.sum(p, axis=-1, keepdims=True)
    p = p * pl.reciprocal(l, approx=True)          # divide on the EUP slot

    pv = jnp.einsum('hts,shd->thd', p.astype(bf16), v.astype(bf16),
                    preferred_element_type=f32)                     # (T, H, hd)
    # Head "concat" is just a reshape; single lane-dense (T,C)x(C,C) proj.
    y = pv.reshape(T, C).astype(bf16)
    x = x + jnp.dot(y, w_proj[...], preferred_element_type=f32) + b_proj[...]

    # ---- MLP (fused into the same kernel: no extra residual HBM round trip) --
    h2 = _layernorm(x, ln2w[...], ln2b[...]).astype(bf16)
    fc = jnp.dot(h2, w_fc[...], preferred_element_type=f32) + b_fc[...]
    g = _gelu_tanh(fc).astype(bf16)
    x = x + jnp.dot(g, w_fc2[...], preferred_element_type=f32) + b_fc2[...]

    o_ref[0] = x


def lnf_kernel(x_ref, w, b, o_ref):
    """Final LayerNorm on a (TM, C) row tile, emitted in bf16."""
    o_ref[...] = _layernorm(x_ref[...], w[...], b[...]).astype(o_ref.dtype)


def lm_head_kernel(h_ref, w_ref, o_ref):
    """Tied lm_head matmul on a (TM, C) x (C, TV) tile (LN already done)."""
    o_ref[...] = jnp.dot(h_ref[...], w_ref[...],
                         preferred_element_type=jnp.float32).astype(o_ref.dtype)


# --------------------------------- wrappers ----------------------------------

def run_block(x, lp, n_head):
    B, T, C = x.shape
    params = [lp['ln1_w'], lp['ln1_b'], lp['w_qkv'], lp['b_qkv'],
              lp['w_proj'], lp['b_proj'], lp['ln2_w'], lp['ln2_b'],
              lp['w_fc'], lp['b_fc'], lp['w_fc2'], lp['b_fc2']]
    flops = 24 * B * T * C * C + 4 * B * T * T * C
    transc = B * n_head * T * T + 4 * B * T * C
    bytes_acc = 3 * B * T * C * 4 + 24 * C * C
    return pl.pallas_call(
        functools.partial(block_kernel, n_head=n_head),
        out_shape=jax.ShapeDtypeStruct((B, T, C), jnp.float32),
        grid=(B,),
        in_specs=[pl.BlockSpec((1, T, C), lambda b: (b, 0, 0))]
                 + _const_specs(params, 1),
        out_specs=pl.BlockSpec((1, T, C), lambda b: (b, 0, 0)),
        compiler_params=pltpu.CompilerParams(dimension_semantics=("parallel",)),
        cost_estimate=pl.CostEstimate(flops=flops, transcendentals=transc,
                                      bytes_accessed=bytes_acc),
    )(x, *params)


def run_lm_head(x2d, params, V):
    """Final LayerNorm (hoisted out of the vocab loop) + tied lm_head (bf16)."""
    M, C = x2d.shape
    TM = _row_tile(M)
    M_pad = _round_up(M, TM)
    xp = x2d if M_pad == M else jnp.pad(x2d, ((0, M_pad - M), (0, 0)))

    # LN once per row tile (NOT once per vocab tile), emitted in bf16.
    h = pl.pallas_call(
        lnf_kernel,
        out_shape=jax.ShapeDtypeStruct((M_pad, C), jnp.bfloat16),
        grid=(M_pad // TM,),
        in_specs=[pl.BlockSpec((TM, C), lambda m: (m, 0))]
                 + _const_specs([params['lnf_w'], params['lnf_b']], 1),
        out_specs=pl.BlockSpec((TM, C), lambda m: (m, 0)),
        compiler_params=pltpu.CompilerParams(dimension_semantics=("parallel",)),
    )(xp, params['lnf_w'], params['lnf_b'])

    wte_t = params['wte_t']                      # (C, V_pad) bf16, built at init
    V_pad = wte_t.shape[1]
    TV = min(1024, V_pad)                        # lane-dense vocab tile
    flops = 2 * M_pad * C * V_pad
    bytes_acc = (M_pad * C + C * V_pad + M_pad * V_pad) * 2
    logits = pl.pallas_call(
        lm_head_kernel,
        out_shape=jax.ShapeDtypeStruct((M_pad, V_pad), jnp.bfloat16),
        grid=(M_pad // TM, V_pad // TV),
        in_specs=[pl.BlockSpec((TM, C), lambda m, v: (m, 0)),
                  pl.BlockSpec((C, TV), lambda m, v: (0, v))],
        out_specs=pl.BlockSpec((TM, TV), lambda m, v: (m, v)),
        compiler_params=pltpu.CompilerParams(
            dimension_semantics=("parallel", "parallel")),
        cost_estimate=pl.CostEstimate(flops=flops, transcendentals=0,
                                      bytes_accessed=bytes_acc),
    )(h, wte_t)
    # TODO(synk): when targets are given, fuse the logsumexp / target-pick
    #             reduction over vocab tiles into this kernel instead of
    #             materializing the full logits array.
    return logits[:M, :V]


def gpt_forward(idx, params, cfg, targets=None):
    """Pallas GPT forward: returns (logits, loss) like the PyTorch module."""
    B, T = idx.shape
    C, n_head, V = cfg['n_embd'], cfg['n_head'], cfg['vocab_size']
    tok_emb = jnp.take(params['wte'], idx, axis=0)      # glue: embedding gather
    pos_emb = params['wpe'][:T][None, :, :]
    x = (tok_emb + pos_emb).astype(jnp.float32)
    for lp in params['layers']:
        x = run_block(x, lp, n_head)                    # fused attn+MLP block
    logits = run_lm_head(x.reshape(B * T, C), params, V).reshape(B, T, V)
    loss = None
    if targets is not None:  # glue: cross-entropy on un-padded logits
        lf = logits.astype(jnp.float32)
        lse = jax.nn.logsumexp(lf, axis=-1)
        picked = jnp.take_along_axis(lf, targets[..., None], axis=-1)[..., 0]
        loss = jnp.mean(lse - picked)
    return logits, loss


# ------------------------ deterministic parameter init -----------------------

def init_params(key, cfg):
    C, V = cfg['n_embd'], cfg['vocab_size']
    L, P = cfg['n_layer'], cfg['block_size']
    std = 0.02
    proj_std = 0.02 * math.sqrt(2 * L)
    f32, bf16 = jnp.float32, jnp.bfloat16
    keys = iter(jax.random.split(key, 2 + 4 * L))

    def nrm(shape, s):
        return jax.random.normal(next(keys), shape, f32) * s

    wte = nrm((V, C), std)                      # tied with lm_head
    tv = min(1024, _round_up(V, 128))
    V_pad = _round_up(V, tv)
    # Transposed/padded embedding built ONCE (no .T or pad per forward).
    wte_t = jnp.zeros((C, V_pad), bf16).at[:, :V].set(wte.T.astype(bf16))

    params = {
        'wte': wte, 'wpe': nrm((P, C), std), 'wte_t': wte_t,
        'lnf_w': jnp.ones((1, C), f32), 'lnf_b': jnp.zeros((1, C), f32),
        'layers': [],
    }
    for _ in range(L):
        params['layers'].append(dict(
            ln1_w=jnp.ones((1, C), f32), ln1_b=jnp.zeros((1, C), f32),
            w_qkv=nrm((C, 3 * C), std).astype(bf16),     # fused QKV, flat layout
            b_qkv=jnp.zeros((1, 3 * C), f32),
            w_proj=nrm((C, C), proj_std).astype(bf16),   # flat output proj
            b_proj=jnp.zeros((1, C), f32),
            ln2_w=jnp.ones((1, C), f32), ln2_b=jnp.zeros((1, C), f32),
            w_fc=nrm((C, 4 * C), std).astype(bf16),
            b_fc=jnp.zeros((1, 4 * C), f32),
            w_fc2=nrm((4 * C, C), proj_std).astype(bf16),
            b_fc2=jnp.zeros((1, C), f32),
        ))
    return params


# ---------------------------- pure-JAX reference ------------------------------

def gpt_reference(idx, params, cfg):
    """Mirrors the kernel math (bf16 matmul inputs, f32 accumulation)."""
    f32, bf16 = jnp.float32, jnp.bfloat16
    H, V = cfg['n_head'], cfg['vocab_size']
    B, T = idx.shape
    x = (jnp.take(params['wte'], idx, axis=0)
         + params['wpe'][:T][None]).astype(f32)
    C = x.shape[-1]
    hd = C // H
    mask = jnp.tril(jnp.ones((T, T), bool))
    for lp in params['layers']:
        h = _layernorm(x, lp['ln1_w'], lp['ln1_b']).astype(bf16)
        qkv = jnp.einsum('btc,cf->btf', h, lp['w_qkv'],
                         preferred_element_type=f32) + lp['b_qkv'][None]
        q, k, v = jnp.split(qkv, 3, axis=-1)
        q = q.reshape(B, T, H, hd)
        k = k.reshape(B, T, H, hd)
        v = v.reshape(B, T, H, hd)
        s = jnp.einsum('bthd,bshd->bhts', q.astype(bf16), k.astype(bf16),
                       preferred_element_type=f32) / math.sqrt(hd)
        s = jnp.where(mask[None, None], s, -1e30)
        p = jax.nn.softmax(s, axis=-1)
        pv = jnp.einsum('bhts,bshd->bthd', p.astype(bf16), v.astype(bf16),
                        preferred_element_type=f32)
        y = pv.reshape(B, T, C).astype(bf16)
        x = x + jnp.einsum('btc,cd->btd', y, lp['w_proj'],
                           preferred_element_type=f32) + lp['b_proj'][None]
        h2 = _layernorm(x, lp['ln2_w'], lp['ln2_b']).astype(bf16)
        fc = jnp.einsum('btc,cf->btf', h2, lp['w_fc'],
                        preferred_element_type=f32) + lp['b_fc'][None]
        g = _gelu_tanh(fc).astype(bf16)
        x = x + jnp.einsum('btf,fc->btc', g, lp['w_fc2'],
                           preferred_element_type=f32) + lp['b_fc2'][None]
    h = _layernorm(x, params['lnf_w'], params['lnf_b']).astype(bf16)
    return jnp.einsum('btc,cv->btv', h, params['wte_t'][:, :V],
                      preferred_element_type=f32)


# ----------------------------------- main -------------------------------------

if __name__ == "__main__":
    # Small demo config (C lane-aligned to 128, GPT-2-style head dim 64,
    # vocab deliberately NOT a multiple of 128 to exercise vocab padding).
    cfg = dict(block_size=16, vocab_size=1000, n_layer=2, n_head=2, n_embd=128)
    key = jax.random.PRNGKey(0)
    pkey, ikey = jax.random.split(key)
    params = init_params(pkey, cfg)

    B, T = 2, 8
    idx = jax.random.randint(ikey, (B, T), 0, cfg['vocab_size'], dtype=jnp.int32)

    logits, loss = gpt_forward(idx, params, cfg)
    logits = jax.block_until_ready(logits)

    ref = gpt_reference(idx, params, cfg)
    np.testing.assert_allclose(np.asarray(logits.astype(jnp.float32)),
                               np.asarray(ref), rtol=2e-2, atol=2e-2)
    assert logits.shape == (B, T, cfg['vocab_size'])
    print("KERNEL_OK")
</pallas_src>

<mosaic_0001>
module attributes {stable_mosaic.version = 11 : i64} {
  func.func @probe(%arg0: i32, %arg1: memref<8x128xf32, #tpu.memory_space<vmem>>, %arg2: memref<8x128xf32, #tpu.memory_space<vmem>>, %arg3: memref<8x128xf32, #tpu.memory_space<vmem>>) attributes {dimension_semantics = [#tpu.dimension_semantics<arbitrary>], iteration_bounds = array<i64: 1>, scalar_prefetch = 0 : i64, scratch_operands = 0 : i64, tpu.core_type = #tpu.core_type<tc>, window_params = [{pipeline_mode = #tpu.pipeline_mode<synchronous>, transform_indices = @transform_0, window_bounds = array<i64: 8, 128>}, {pipeline_mode = #tpu.pipeline_mode<synchronous>, transform_indices = @transform_1, window_bounds = array<i64: 8, 128>}, {pipeline_mode = #tpu.pipeline_mode<synchronous>, transform_indices = @transform_2, window_bounds = array<i64: 8, 128>}]} {
    %c0 = arith.constant 0 : index
    %c0_0 = arith.constant 0 : index
    %0 = vector.load %arg1[%c0, %c0_0] : memref<8x128xf32, #tpu.memory_space<vmem>>, vector<8x128xf32>
    %c0_1 = arith.constant 0 : index
    %c0_2 = arith.constant 0 : index
    %1 = vector.load %arg2[%c0_1, %c0_2] : memref<8x128xf32, #tpu.memory_space<vmem>>, vector<8x128xf32>
    %2 = arith.addf %0, %1 : vector<8x128xf32>
    %c0_3 = arith.constant 0 : index
    %c0_4 = arith.constant 0 : index
    %3 = vector.load %arg3[%c0_3, %c0_4] : memref<8x128xf32, #tpu.memory_space<vmem>>, vector<8x128xf32>
    tpu.vector_store %arg3[%c0_3, %c0_4], %2 {strides = array<i32>} : memref<8x128xf32, #tpu.memory_space<vmem>>, vector<8x128xf32>,
    return
  }
  func.func @transform_0(%arg0: i32) -> (i32, i32) {
    %c0_i32 = arith.constant 0 : i32
    %c0_i32_0 = arith.constant 0 : i32
    %c0_i32_1 = arith.constant 0 : i32
    return %c0_i32, %c0_i32_0 : i32, i32
  }
  func.func @transform_1(%arg0: i32) -> (i32, i32) {
    %c0_i32 = arith.constant 0 : i32
    %c0_i32_0 = arith.constant 0 : i32
    %c0_i32_1 = arith.constant 0 : i32
    return %c0_i32, %c0_i32_0 : i32, i32
  }
  func.func @transform_2(%arg0: i32) -> (i32, i32) {
    %c0_i32 = arith.constant 0 : i32
    %c0_i32_0 = arith.constant 0 : i32
    %c0_i32_1 = arith.constant 0 : i32
    return %c0_i32, %c0_i32_0 : i32, i32
  }
}

module attributes {stable_mosaic.version = 11 : i64} {
  func.func @block_kernel(%arg0: i32, %arg1: memref<1x8x128xf32, #tpu.memory_space<vmem>>, %arg2: memref<1x128xf32, #tpu.memory_space<vmem>>, %arg3: memref<1x128xf32, #tpu.memory_space<vmem>>, %arg4: memref<128x384xbf16, #tpu.memory_space<vmem>>, %arg5: memref<1x384xf32, #tpu.memory_space<vmem>>, %arg6: memref<128x128xbf16, #tpu.memory_space<vmem>>, %arg7: memref<1x128xf32, #tpu.memory_space<vmem>>, %arg8: memref<1x128xf32, #tpu.memory_space<vmem>>, %arg9: memref<1x128xf32, #tpu.memory_space<vmem>>, %arg10: memref<128x512xbf16, #tpu.memory_space<vmem>>, %arg11: memref<1x512xf32, #tpu.memory_space<vmem>>, %arg12: memref<512x128xbf16, #tpu.memory_space<vmem>>, %arg13: memref<1x128xf32, #tpu.memory_space<vmem>>, %arg14: memref<1x8x128xf32, #tpu.memory_space<vmem>>) attributes {dimension_semantics = [#tpu.dimension_semantics<parallel>], iteration_bounds = array<i64: 2>, scalar_prefetch = 0 : i64, scratch_operands = 0 : i64, tpu.core_type = #tpu.core_type<tc>, window_params = [{transform_indices = @transform_0, window_bounds = array<i64: 1, 8, 128>}, {pipeline_mode = #tpu.pipeline_mode<synchronous>, transform_indices = @transform_1, window_bounds = array<i64: 1, 128>}, {pipeline_mode = #tpu.pipeline_mode<synchronous>, transform_indices = @transform_2, window_bounds = array<i64: 1, 128>}, {pipeline_mode = #tpu.pipeline_mode<synchronous>, transform_indices = @transform_3, window_bounds = array<i64: 128, 384>}, {pipeline_mode = #tpu.pipeline_mode<synchronous>, transform_indices = @transform_4, window_bounds = array<i64: 1, 384>}, {pipeline_mode = #tpu.pipeline_mode<synchronous>, transform_indices = @transform_5, window_bounds = array<i64: 128, 128>}, {pipeline_mode = #tpu.pipeline_mode<synchronous>, transform_indices = @transform_6, window_bounds = array<i64: 1, 128>}, {pipeline_mode = #tpu.pipeline_mode<synchronous>, transform_indices = @transform_7, window_bounds = array<i64: 1, 128>}, {pipeline_mode = #tpu.pipeline_mode<synchronous>, transform_indices = @transform_8, window_bounds = array<i64: 1, 128>}, {pipeline_mode = #tpu.pipeline_mode<synchronous>, transform_indices = @transform_9, window_bounds = array<i64: 128, 512>}, {pipeline_mode = #tpu.pipeline_mode<synchronous>, transform_indices = @transform_10, window_bounds = array<i64: 1, 512>}, {pipeline_mode = #tpu.pipeline_mode<synchronous>, transform_indices = @transform_11, window_bounds = array<i64: 512, 128>}, {pipeline_mode = #tpu.pipeline_mode<synchronous>, transform_indices = @transform_12, window_bounds = array<i64: 1, 128>}, {transform_indices = @transform_13, window_bounds = array<i64: 1, 8, 128>}]} {
    %c0 = arith.constant 0 : index
    %c0_0 = arith.constant 0 : index
    %c0_1 = arith.constant 0 : index
    %0 = vector.load %arg1[%c0, %c0_0, %c0_1] : memref<1x8x128xf32, #tpu.memory_space<vmem>>, vector<1x8x128xf32>
    %1 = vector.shape_cast %0 : vector<1x8x128xf32> to vector<8x128xf32>
    %c0_2 = arith.constant 0 : index
    %c0_3 = arith.constant 0 : index
    %2 = vector.load %arg2[%c0_2, %c0_3] : memref<1x128xf32, #tpu.memory_space<vmem>>, vector<1x128xf32>
    %c0_4 = arith.constant 0 : index
    %c0_5 = arith.constant 0 : index
    %3 = vector.load %arg3[%c0_4, %c0_5] : memref<1x128xf32, #tpu.memory_space<vmem>>, vector<1x128xf32>
    %cst = arith.constant dense<0.000000e+00> : vector<8xf32>
    %4 = vector.multi_reduction <add>, %1, %cst [1] : vector<8x128xf32> to vector<8xf32>
    %5 = vector.shape_cast %4 : vector<8xf32> to vector<8x1xf32>
    %cst_6 = arith.constant 1.280000e+02 : f32
    %6 = vector.broadcast %cst_6 : f32 to vector<8x1xf32>
    %7 = arith.divf %5, %6 : vector<8x1xf32>
    %8 = vector.broadcast %7 : vector<8x1xf32> to vector<8x128xf32>
    %9 = arith.subf %1, %8 : vector<8x128xf32>
    %10 = arith.mulf %9, %9 : vector<8x128xf32>
    %cst_7 = arith.constant dense<0.000000e+00> : vector<8xf32>
    %11 = vector.multi_reduction <add>, %10, %cst_7 [1] : vector<8x128xf32> to vector<8xf32>
    %12 = vector.shape_cast %11 : vector<8xf32> to vector<8x1xf32>
    %cst_8 = arith.constant 1.280000e+02 : f32
    %13 = vector.broadcast %cst_8 : f32 to vector<8x1xf32>
    %14 = arith.divf %12, %13 : vector<8x1xf32>
    %15 = vector.broadcast %7 : vector<8x1xf32> to vector<8x128xf32>
    %16 = arith.subf %1, %15 : vector<8x128xf32>
    %cst_9 = arith.constant 9.99999974E-6 : f32
    %17 = vector.broadcast %cst_9 : f32 to vector<8x1xf32>
    %18 = arith.addf %14, %17 : vector<8x1xf32>
    %19 = math.rsqrt %18 : vector<8x1xf32>
    %20 = vector.broadcast %19 : vector<8x1xf32> to vector<8x128xf32>
    %21 = arith.mulf %16, %20 : vector<8x128xf32>
    %22 = vector.broadcast %2 : vector<1x128xf32> to vector<8x128xf32>
    %23 = arith.mulf %21, %22 : vector<8x128xf32>
    %24 = vector.broadcast %3 : vector<1x128xf32> to vector<8x128xf32>
    %25 = arith.addf %23, %24 : vector<8x128xf32>
    %26 = arith.truncf %25 : vector<8x128xf32> to vector<8x128xbf16>
    %c0_10 = arith.constant 0 : index
    %c0_11 = arith.constant 0 : index
    %27 = vector.load %arg4[%c0_10, %c0_11] : memref<128x384xbf16, #tpu.memory_space<vmem>>, vector<128x384xbf16>
    %cst_12 = arith.constant dense<0.000000e+00> : vector<8x384xf32>
    %28 = tpu.matmul %26, %27, %cst_12 {dimension_numbers = #tpu.dot_dimension_numbers<[1], [0], [0], [1], [0, 0, 1, 1], [], []>} : vector<8x128xbf16>, vector<128x384xbf16>, vector<8x384xf32> -> vector<8x384xf32>
    %c0_13 = arith.constant 0 : index
    %c0_14 = arith.constant 0 : index
    %29 = vector.load %arg5[%c0_13, %c0_14] : memref<1x384xf32, #tpu.memory_space<vmem>>, vector<1x384xf32>
    %30 = vector.broadcast %29 : vector<1x384xf32> to vector<8x384xf32>
    %31 = arith.addf %28, %30 : vector<8x384xf32>
    %32 = vector.extract_strided_slice %31 {offsets = [0, 0], sizes = [8, 128], strides = [1, 1]} : vector<8x384xf32> to vector<8x128xf32>
    %33 = vector.shape_cast %32 : vector<8x128xf32> to vector<8x2x64xf32>
    %34 = vector.extract_strided_slice %31 {offsets = [0, 128], sizes = [8, 128], strides = [1, 1]} : vector<8x384xf32> to vector<8x128xf32>
    %35 = vector.shape_cast %34 : vector<8x128xf32> to vector<8x2x64xf32>
    %36 = vector.extract_strided_slice %31 {offsets = [0, 256], sizes = [8, 128], strides = [1, 1]} : vector<8x384xf32> to vector<8x128xf32>
    %37 = vector.shape_cast %36 : vector<8x128xf32> to vector<8x2x64xf32>
    %38 = arith.truncf %33 : vector<8x2x64xf32> to vector<8x2x64xbf16>
    %39 = arith.truncf %35 : vector<8x2x64xf32> to vector<8x2x64xbf16>
    "tpu.trace_start"() <{level = 10 : i32, message = "thd,shd->hts"}> : () -> ()
    %cst_15 = arith.constant dense<0.000000e+00> : vector<2x8x8xf32>
    %40 = tpu.matmul %38, %39, %cst_15 {dimension_numbers = #tpu.dot_dimension_numbers<[2], [2], [0], [0], [0, 1, 0, 0, 1, 0], [1], [1]>} : vector<8x2x64xbf16>, vector<8x2x64xbf16>, vector<2x8x8xf32> -> vector<2x8x8xf32>
    "tpu.trace_stop"() : () -> ()
    %cst_16 = arith.constant 1.250000e-01 : f32
    %41 = vector.broadcast %cst_16 : f32 to vector<2x8x8xf32>
    %42 = arith.mulf %40, %41 : vector<2x8x8xf32>
    %43 = tpu.iota {dimensions = array<i32: 0>} : vector<8x8xi32>
    %44 = tpu.iota {dimensions = array<i32: 1>} : vector<8x8xi32>
    %45 = arith.cmpi sle, %44, %43 : vector<8x8xi32>
    %46 = vector.shape_cast %45 : vector<8x8xi1> to vector<1x8x8xi1>
    %cst_17 = arith.constant -1.000000e+30 : f32
    %47 = vector.shape_cast %46 : vector<1x8x8xi1> to vector<1x8x8xi1>
    %48 = vector.broadcast %47 : vector<1x8x8xi1> to vector<2x8x8xi1>
    %49 = vector.broadcast %cst_17 : f32 to vector<2x8x8xf32>
    %50 = arith.select %48, %42, %49 : vector<2x8x8xi1>, vector<2x8x8xf32>
    %cst_18 = arith.constant dense<0xFF800000> : vector<2x8xf32>
    %51 = vector.multi_reduction <maximumf>, %50, %cst_18 [2] : vector<2x8x8xf32> to vector<2x8xf32>
    %52 = vector.shape_cast %51 : vector<2x8xf32> to vector<2x8x1xf32>
    %53 = vector.broadcast %52 : vector<2x8x1xf32> to vector<2x8x8xf32>
    %54 = arith.subf %50, %53 : vector<2x8x8xf32>
    %55 = math.exp %54 : vector<2x8x8xf32>
    %cst_19 = arith.constant dense<0.000000e+00> : vector<2x8xf32>
    %56 = vector.multi_reduction <add>, %55, %cst_19 [2] : vector<2x8x8xf32> to vector<2x8xf32>
    %57 = vector.shape_cast %56 : vector<2x8xf32> to vector<2x8x1xf32>
    %58 = tpu.reciprocal %57 {approx = true} : vector<2x8x1xf32> -> vector<2x8x1xf32>
    %59 = vector.broadcast %58 : vector<2x8x1xf32> to vector<2x8x8xf32>
    %60 = arith.mulf %55, %59 : vector<2x8x8xf32>
    %61 = arith.truncf %60 : vector<2x8x8xf32> to vector<2x8x8xbf16>
    %62 = arith.truncf %37 : vector<8x2x64xf32> to vector<8x2x64xbf16>
    "tpu.trace_start"() <{level = 10 : i32, message = "hts,shd->thd"}> : () -> ()
    %cst_20 = arith.constant dense<0.000000e+00> : vector<2x64x8xf32>
    %63 = tpu.matmul %62, %61, %cst_20 {dimension_numbers = #tpu.dot_dimension_numbers<[0], [2], [2], [1], [0, 1, 0, 2, 1, 1], [1], [0]>} : vector<8x2x64xbf16>, vector<2x8x8xbf16>, vector<2x64x8xf32> -> vector<2x64x8xf32>
    %64 = tpu.transpose %63, [2, 0, 1] : vector<2x64x8xf32> -> vector<8x2x64xf32>
    "tpu.trace_stop"() : () -> ()
    %65 = vector.shape_cast %64 : vector<8x2x64xf32> to vector<8x128xf32>
    %66 = arith.truncf %65 : vector<8x128xf32> to vector<8x128xbf16>
    %c0_21 = arith.constant 0 : index
    %c0_22 = arith.constant 0 : index
    %67 = vector.load %arg6[%c0_21, %c0_22] : memref<128x128xbf16, #tpu.memory_space<vmem>>, vector<128x128xbf16>
    %cst_23 = arith.constant dense<0.000000e+00> : vector<8x128xf32>
    %68 = tpu.matmul %66, %67, %cst_23 {dimension_numbers = #tpu.dot_dimension_numbers<[1], [0], [0], [1], [0, 0, 1, 1], [], []>} : vector<8x128xbf16>, vector<128x128xbf16>, vector<8x128xf32> -> vector<8x128xf32>
    %69 = arith.addf %1, %68 : vector<8x128xf32>
    %c0_24 = arith.constant 0 : index
    %c0_25 = arith.constant 0 : index
    %70 = vector.load %arg7[%c0_24, %c0_25] : memref<1x128xf32, #tpu.memory_space<vmem>>, vector<1x128xf32>
    %71 = vector.broadcast %70 : vector<1x128xf32> to vector<8x128xf32>
    %72 = arith.addf %69, %71 : vector<8x128xf32>
    %c0_26 = arith.constant 0 : index
    %c0_27 = arith.constant 0 : index
    %73 = vector.load %arg8[%c0_26, %c0_27] : memref<1x128xf32, #tpu.memory_space<vmem>>, vector<1x128xf32>
    %c0_28 = arith.constant 0 : index
    %c0_29 = arith.constant 0 : index
    %74 = vector.load %arg9[%c0_28, %c0_29] : memref<1x128xf32, #tpu.memory_space<vmem>>, vector<1x128xf32>
    %cst_30 = arith.constant dense<0.000000e+00> : vector<8xf32>
    %75 = vector.multi_reduction <add>, %72, %cst_30 [1] : vector<8x128xf32> to vector<8xf32>
    %76 = vector.shape_cast %75 : vector<8xf32> to vector<8x1xf32>
    %cst_31 = arith.constant 1.280000e+02 : f32
    %77 = vector.broadcast %cst_31 : f32 to vector<8x1xf32>
    %78 = arith.divf %76, %77 : vector<8x1xf32>
    %79 = vector.broadcast %78 : vector<8x1xf32> to vector<8x128xf32>
    %80 = arith.subf %72, %79 : vector<8x128xf32>
    %81 = arith.mulf %80, %80 : vector<8x128xf32>
    %cst_32 = arith.constant dense<0.000000e+00> : vector<8xf32>
    %82 = vector.multi_reduction <add>, %81, %cst_32 [1] : vector<8x128xf32> to vector<8xf32>
    %83 = vector.shape_cast %82 : vector<8xf32> to vector<8x1xf32>
    %cst_33 = arith.constant 1.280000e+02 : f32
    %84 = vector.broadcast %cst_33 : f32 to vector<8x1xf32>
    %85 = arith.divf %83, %84 : vector<8x1xf32>
    %86 = vector.broadcast %78 : vector<8x1xf32> to vector<8x128xf32>
    %87 = arith.subf %72, %86 : vector<8x128xf32>
    %cst_34 = arith.constant 9.99999974E-6 : f32
    %88 = vector.broadcast %cst_34 : f32 to vector<8x1xf32>
    %89 = arith.addf %85, %88 : vector<8x1xf32>
    %90 = math.rsqrt %89 : vector<8x1xf32>
    %91 = vector.broadcast %90 : vector<8x1xf32> to vector<8x128xf32>
    %92 = arith.mulf %87, %91 : vector<8x128xf32>
    %93 = vector.broadcast %73 : vector<1x128xf32> to vector<8x128xf32>
    %94 = arith.mulf %92, %93 : vector<8x128xf32>
    %95 = vector.broadcast %74 : vector<1x128xf32> to vector<8x128xf32>
    %96 = arith.addf %94, %95 : vector<8x128xf32>
    %97 = arith.truncf %96 : vector<8x128xf32> to vector<8x128xbf16>
    %c0_35 = arith.constant 0 : index
    %c0_36 = arith.constant 0 : index
    %98 = vector.load %arg10[%c0_35, %c0_36] : memref<128x512xbf16, #tpu.memory_space<vmem>>, vector<128x512xbf16>
    %cst_37 = arith.constant dense<0.000000e+00> : vector<8x512xf32>
    %99 = tpu.matmul %97, %98, %cst_37 {dimension_numbers = #tpu.dot_dimension_numbers<[1], [0], [0], [1], [0, 0, 1, 1], [], []>} : vector<8x128xbf16>, vector<128x512xbf16>, vector<8x512xf32> -> vector<8x512xf32>
    %c0_38 = arith.constant 0 : index
    %c0_39 = arith.constant 0 : index
    %100 = vector.load %arg11[%c0_38, %c0_39] : memref<1x512xf32, #tpu.memory_space<vmem>>, vector<1x512xf32>
    %101 = vector.broadcast %100 : vector<1x512xf32> to vector<8x512xf32>
    %102 = arith.addf %99, %101 : vector<8x512xf32>
    %cst_40 = arith.constant 5.000000e-01 : f32
    %103 = vector.broadcast %cst_40 : f32 to vector<8x512xf32>
    %104 = arith.mulf %103, %102 : vector<8x512xf32>
    %cst_41 = arith.constant 4.471500e-02 : f32
    %105 = vector.broadcast %cst_41 : f32 to vector<8x512xf32>
    %106 = arith.mulf %105, %102 : vector<8x512xf32>
    %107 = arith.mulf %106, %102 : vector<8x512xf32>
    %108 = arith.mulf %107, %102 : vector<8x512xf32>
    %109 = arith.addf %102, %108 : vector<8x512xf32>
    %cst_42 = arith.constant 0.797884583 : f32
    %110 = vector.broadcast %cst_42 : f32 to vector<8x512xf32>
    %111 = arith.mulf %110, %109 : vector<8x512xf32>
    %112 = math.tanh %111 : vector<8x512xf32>
    %cst_43 = arith.constant 1.000000e+00 : f32
    %113 = vector.broadcast %cst_43 : f32 to vector<8x512xf32>
    %114 = arith.addf %113, %112 : vector<8x512xf32>
    %115 = arith.mulf %104, %114 : vector<8x512xf32>
    %116 = arith.truncf %115 : vector<8x512xf32> to vector<8x512xbf16>
    %c0_44 = arith.constant 0 : index
    %c0_45 = arith.constant 0 : index
    %117 = vector.load %arg12[%c0_44, %c0_45] : memref<512x128xbf16, #tpu.memory_space<vmem>>, vector<512x128xbf16>
    %cst_46 = arith.constant dense<0.000000e+00> : vector<8x128xf32>
    %118 = tpu.matmul %116, %117, %cst_46 {dimension_numbers = #tpu.dot_dimension_numbers<[1], [0], [0], [1], [0, 0, 1, 1], [], []>} : vector<8x512xbf16>, vector<512x128xbf16>, vector<8x128xf32> -> vector<8x128xf32>
    %119 = arith.addf %72, %118 : vector<8x128xf32>
    %c0_47 = arith.constant 0 : index
    %c0_48 = arith.constant 0 : index
    %120 = vector.load %arg13[%c0_47, %c0_48] : memref<1x128xf32, #tpu.memory_space<vmem>>, vector<1x128xf32>
    %121 = vector.broadcast %120 : vector<1x128xf32> to vector<8x128xf32>
    %122 = arith.addf %119, %121 : vector<8x128xf32>
    %c0_49 = arith.constant 0 : index
    %c0_50 = arith.constant 0 : index
    %c0_51 = arith.constant 0 : index
    %123 = vector.load %arg14[%c0_49, %c0_50, %c0_51] : memref<1x8x128xf32, #tpu.memory_space<vmem>>, vector<1x8x128xf32>
    %124 = vector.shape_cast %123 : vector<1x8x128xf32> to vector<8x128xf32>
    %125 = vector.shape_cast %122 : vector<8x128xf32> to vector<1x8x128xf32>
    tpu.vector_store %arg14[%c0_49, %c0_50, %c0_51], %125 {strides = array<i32>} : memref<1x8x128xf32, #tpu.memory_space<vmem>>, vector<1x8x128xf32>,
    return
  }
  func.func @transform_0(%arg0: i32) -> (i32, i32, i32) {
    %c0_i32 = arith.constant 0 : i32
    %c0_i32_0 = arith.constant 0 : i32
    %c0_i32_1 = arith.constant 0 : i32
    return %arg0, %c0_i32, %c0_i32_0 : i32, i32, i32
  }
  func.func @transform_1(%arg0: i32) -> (i32, i32) {
    %c0_i32 = arith.constant 0 : i32
    %c0_i32_0 = arith.constant 0 : i32
    %c0_i32_1 = arith.constant 0 : i32
    return %c0_i32, %c0_i32_0 : i32, i32
  }
  func.func @transform_2(%arg0: i32) -> (i32, i32) {
    %c0_i32 = arith.constant 0 : i32
    %c0_i32_0 = arith.constant 0 : i32
    %c0_i32_1 = arith.constant 0 : i32
    return %c0_i32, %c0_i32_0 : i32, i32
  }
  func.func @transform_3(%arg0: i32) -> (i32, i32) {
    %c0_i32 = arith.constant 0 : i32
    %c0_i32_0 = arith.constant 0 : i32
    %c0_i32_1 = arith.constant 0 : i32
    return %c0_i32, %c0_i32_0 : i32, i32
  }
  func.func @transform_4(%arg0: i32) -> (i32, i32) {
    %c0_i32 = arith.constant 0 : i32
    %c0_i32_0 = arith.constant 0 : i32
    %c0_i32_1 = arith.constant 0 : i32
    return %c0_i32, %c0_i32_0 : i32, i32
  }
  func.func @transform_5(%arg0: i32) -> (i32, i32) {
    %c0_i32 = arith.constant 0 : i32
    %c0_i32_0 = arith.constant 0 : i32
    %c0_i32_1 = arith.constant 0 : i32
    return %c0_i32, %c0_i32_0 : i32, i32
  }
  func.func @transform_6(%arg0: i32) -> (i32, i32) {
    %c0_i32 = arith.constant 0 : i32
    %c0_i32_0 = arith.constant 0 : i32
    %c0_i32_1 = arith.constant 0 : i32
    return %c0_i32, %c0_i32_0 : i32, i32
  }
  func.func @transform_7(%arg0: i32) -> (i32, i32) {
    %c0_i32 = arith.constant 0 : i32
    %c0_i32_0 = arith.constant 0 : i32
    %c0_i32_1 = arith.constant 0 : i32
    return %c0_i32, %c0_i32_0 : i32, i32
  }
  func.func @transform_8(%arg0: i32) -> (i32, i32) {
    %c0_i32 = arith.constant 0 : i32
    %c0_i32_0 = arith.constant 0 : i32
    %c0_i32_1 = arith.constant 0 : i32
    return %c0_i32, %c0_i32_0 : i32, i32
  }
  func.func @transform_9(%arg0: i32) -> (i32, i32) {
    %c0_i32 = arith.constant 0 : i32
    %c0_i32_0 = arith.constant 0 : i32
    %c0_i32_1 = arith.constant 0 : i32
    return %c0_i32, %c0_i32_0 : i32, i32
  }
  func.func @transform_10(%arg0: i32) -> (i32, i32) {
    %c0_i32 = arith.constant 0 : i32
    %c0_i32_0 = arith.constant 0 : i32
    %c0_i32_1 = arith.constant 0 : i32
    return %c0_i32, %c0_i32_0 : i32, i32
  }
  func.func @transform_11(%arg0: i32) -> (i32, i32) {
    %c0_i32 = arith.constant 0 : i32
    %c0_i32_0 = arith.constant 0 : i32
    %c0_i32_1 = arith.constant 0 : i32
    return %c0_i32, %c0_i32_0 : i32, i32
  }
  func.func @transform_12(%arg0: i32) -> (i32, i32) {
    %c0_i32 = arith.constant 0 : i32
    %c0_i32_0 = arith.constant 0 : i32
    %c0_i32_1 = arith.constant 0 : i32
    return %c0_i32, %c0_i32_0 : i32, i32
  }
  func.func @transform_13(%arg0: i32) -> (i32, i32, i32) {
    %c0_i32 = arith.constant 0 : i32
    %c0_i32_0 = arith.constant 0 : i32
    %c0_i32_1 = arith.constant 0 : i32
    return %arg0, %c0_i32, %c0_i32_0 : i32, i32, i32
  }
}

</mosaic_0001>

<bundles_post_ra>
// kernel: tpu_custom_call.1
= control target key start
LH: loop header
LB: loop body
LE: loop exit
PB: predicated region body
PF: predicated region fallthrough
CT: control target
= control target key end

     0   :  { %7 = vsyncpa [#allocation3], 0  ;;  %s185_s0 = inlined_call_operand.hbm [shape: f32[8,128], index: 0, kind: input, shape index: {}]   ;;  %s186_s1 = inlined_call_operand.hbm [shape: f32[8,128], index: 1, kind: input, shape index: {}]   ;;  %s187_s2 = inlined_call_operand.hbm [shape: f32[8,128], index: 2, kind: output, shape index: {}]  }
   0x1   :  { %8 = vsyncpa [#allocation6], 0 }
   0x2   :  { %9 = vsyncpa [#allocation4], 0  ;;  %s131_s9 = smov [#allocation2]   ;;  %s132_s11 = smov [#allocation5]  }
   0x3   :  { %s16_s10 = sshll.u32 %s131_s9, 4  ;;  %s26_s12 = sshll.u32 %s132_s11, 4  ;;  %s17_s10 = int_to_ptr.vmem [resolvable:$true] %s16_s10  ;;  %s27_s12 = int_to_ptr.vmem [resolvable:$true] %s26_s12 }
   0x4   :  { %s59_s15 = scalar_lea.hbm %s185_s0, 128 }
   0x5   :  { %p60_p0 = scmp.ne.s32.totalorder %s185_s0, %s59_s15  ;;  %p63_p1 = scmp.lt.u32.totalorder %s59_s15, %s185_s0 }
   0x7   :  { %p65_p2 = pnand %p63_p1, %p60_p0 }
   0x9   :  { %68 = shalt.err (!%p65_p2)
}
   0xa   :  { %s69_s20 = scalar_lea.vmem %s17_s10, 128  ;;  %p74_p4 = scmp.lt.s32.totalorder %s17_s10, %s17_s10 }
   0xb   :  { %p70_p3 = scmp.ne.s32.totalorder %s17_s10, %s69_s20  ;;  %p75_p5 = scmp.lt.s32.totalorder %s69_s20, %s69_s20 }
   0xd   :  { %p76_p6 = por %p75_p5, %p74_p4 }
   0xf   :  { %p77_p7 = pnand %p76_p6, %p70_p3 }
  0x11   :  { %80 = shalt.err (!%p77_p7)
}
  0x12   :  { %19 = dma.hbm_to_vmem [thread:$0]  %s185_s0, 128, %s17_s10, [#allocation3]  }
  0x13   :  { %s81_s25 = scalar_lea.hbm %s186_s1, 128 }
  0x14   :  { %p82_p8 = scmp.ne.s32.totalorder %s186_s1, %s81_s25  ;;  %p85_p9 = scmp.lt.u32.totalorder %s81_s25, %s186_s1 }
  0x16   :  { %p87_p10 = pnand %p85_p9, %p82_p8 }
  0x18   :  { %90 = shalt.err (!%p87_p10)
}
  0x19   :  { %s91_s30 = scalar_lea.vmem %s27_s12, 128  ;;  %p96_p12 = scmp.lt.s32.totalorder %s27_s12, %s27_s12 }
  0x1a   :  { %p92_p11 = scmp.ne.s32.totalorder %s27_s12, %s91_s30  ;;  %p97_p13 = scmp.lt.s32.totalorder %s91_s30, %s91_s30 }
  0x1c   :  { %p98_p0 = por %p97_p13, %p96_p12 }
  0x1e   :  { %p99_p1 = pnand %p98_p0, %p92_p11 }
  0x20   :  { %102 = shalt.err (!%p99_p1)
}
  0x21   :  { %29 = dma.hbm_to_vmem [thread:$0]  %s186_s1, 128, %s27_s12, [#allocation6]  }
  0x22   :  { %125 = dma.done.wait [#allocation3], 128  }
  0x23   :  { %126 = vsyncadd [#allocation3], 4294967168 }
  0x24   :  { %127 = dma.done.wait [#allocation6], 128  }
  0x25   :  { %128 = vsyncadd [#allocation6], 4294967168  ;;  %s133_s4 = smov [#allocation7]   ;;  %v36_v0 = vld [vmem:[#allocation2] sm:$0xff]  ;;  %v37_v1 = vld [vmem:[#allocation5] sm:$0xff] }
  0x26   :  { %s46_s5 = sshll.u32 %s133_s4, 4  ;;  %v38_v2 = vadd.f32 %v37_v1, %v36_v0  ;;  %s47_s5 = int_to_ptr.vmem [resolvable:$true] %s46_s5 }
  0x27   :  { %s103_s6 = scalar_lea.vmem %s47_s5, 128  ;;  %p108_p3 = scmp.lt.s32.totalorder %s47_s5, %s47_s5 }
  0x28   :  { %39 = vst [vmem:[#allocation7] sm:$0xff] %v38_v2  ;;  %p104_p2 = scmp.ne.s32.totalorder %s47_s5, %s103_s6  ;;  %p109_p4 = scmp.lt.s32.totalorder %s103_s6, %s103_s6 }
  0x2a   :  { %p110_p5 = por %p109_p4, %p108_p3 }
  0x2c   :  { %p111_p6 = pnand %p110_p5, %p104_p2 }
  0x2e   :  { %114 = shalt.err (!%p111_p6)
}
  0x2f   :  { %s115_s8 = scalar_lea.hbm %s187_s2, 128 }
  0x30   :  { %p116_p7 = scmp.ne.s32.totalorder %s187_s2, %s115_s8  ;;  %p119_p8 = scmp.lt.u32.totalorder %s115_s8, %s187_s2 }
  0x32   :  { %p121_p9 = pnand %p119_p8, %p116_p7 }
  0x34   :  { %124 = shalt.err (!%p121_p9)
}
  0x35   :  { %49 = dma.vmem_to_hbm [thread:$0]  %s47_s5, 128, %s187_s2, [#allocation4]  }
  0x36   :  { %129 = dma.done.wait [#allocation4], 128  }
  0x37   :  { %130 = vsyncadd [#allocation4], 4294967168 }
  0x38   :  { %53 = vsyncpa [#allocation3], 1 }
  0x39   :  { %54 = vsyncpa [#allocation6], 1 }
  0x3a   :  { %55 = vsyncpa [#allocation4], 1 }

// kernel: tpu_custom_call.1
= control target key start
LH: loop header
LB: loop body
LE: loop exit
PB: predicated region body
PF: predicated region fallthrough
CT: control target
= control target key end

     0   :  { %s9360_s0 = inlined_call_operand.hbm [shape: f32[2,8,128], index: 0, kind: input, shape index: {}]   ;;  %s9361_s1 = inlined_call_operand.hbm [shape: f32[1,128], index: 1, kind: input, shape index: {}]   ;;  %s9362_s2 = inlined_call_operand.hbm [shape: f32[1,128], index: 2, kind: input, shape index: {}]   ;;  %s9363_s3 = inlined_call_operand.hbm [shape: bf16[128,384], index: 3, kind: input, shape index: {}]   ;;  %s9364_s4 = inlined_call_operand.vmem [shape: f32[1,384], index: 4, kind: input, shape index: {}]   ;;  %s9365_s5 = inlined_call_operand.hbm [shape: bf16[128,128], index: 5, kind: input, shape index: {}]   ;;  %s9366_s6 = inlined_call_operand.vmem [shape: f32[1,128], index: 6, kind: input, shape index: {}]   ;;  %s9367_s7 = inlined_call_operand.vmem [shape: f32[1,128], index: 7, kind: input, shape index: {}]   ;;  %s9368_s8 = inlined_call_operand.vmem [shape: f32[1,128], index: 8, kind: input, shape index: {}]   ;;  %s9369_s9 = inlined_call_operand.hbm [shape: bf16[128,512], index: 9, kind: input, shape index: {}]   ;;  %s9370_s10 = inlined_call_operand.vmem [shape: f32[1,512], index: 10, kind: input, shape index: {}]   ;;  %s9371_s11 = inlined_call_operand.hbm [shape: bf16[512,128], index: 11, kind: input, shape index: {}]   ;;  %s9372_s12 = inlined_call_operand.vmem [shape: f32[1,128], index: 12, kind: input, shape index: {}]   ;;  %s9373_s13 = inlined_call_operand.hbm [shape: f32[2,8,128], index: 13, kind: output, shape index: {}]  }
   0x1   :  { %9384 = sst [smem:[#allocation20_spill]] %s9361_s1 }
   0x2   :  { %9385 = sst [smem:[#allocation21_spill]] %s9363_s3 }
   0x3   :  { %9386 = sst [smem:[#allocation22_spill]] %s9367_s7 }
   0x4   :  { %9387 = sst [smem:[#allocation23_spill]] %s9368_s8 }
   0x5   :  { %9388 = sst [smem:[#allocation24_spill]] %s9370_s10 }
   0x6   :  { %9389 = sst [smem:[#allocation25_spill]] %s9372_s12 }
   0x7   :  { %9390 = sst [smem:[#allocation26_spill]] %s9373_s13 }
   0x8   :  { %18 = vsyncpa [#allocation3], 0 }
   0x9   :  { %20 = vsyncpa [#allocation3 + $0x1], 0 }
   0xa   :  { %21 = vsyncpa [#allocation6], 0 }
   0xb   :  { %22 = vsyncpa [#allocation9], 0 }
   0xc   :  { %23 = vsyncpa [#allocation12], 0 }
   0xd   :  { %24 = vsyncpa [#allocation4], 0 }
   0xe   :  { %26 = vsyncpa [#allocation4 + $0x1], 0  ;;  %s7975_s25 = smov 0   ;;  %s7977_s26 = smov 0  }
   0xf   :  { %s7979_s27 = smov 0   ;;  %s7981_s28 = smov 0  }
  0x10 LB: > { %s7885_s29 = smov [#allocation5]   ;;  %s7996_s14 = sadd.s32 4294967295, %s7883_s28   ;;  %s7883_s28 = sphi %s7981_s28, %s9426_s28   ;;  %s7879_s27 = sphi %s7979_s27, %s9425_s27   ;;  %s7875_s26 = sphi %s7977_s26, %s9424_s26   ;;  %s7871_s25 = sphi %s7975_s25, %s9423_s25  }
  0x11   : > { %s354_s30 = sshll.u32 %s7885_s29, 4  ;;  %p7038_p0 = scmp.ge.s32.totalorder %s7883_s28, 1  ;;  %s8001_s30 = int_to_ptr.vmem [resolvable:$true] %s354_s30 }
  0x12   : > { %p9375_p1 = scmp.eq.s32.totalorder %s7996_s14, 0  ;;  %p341_p2 = scmp.lt.s32.totalorder %s7883_s28, 3 }
  0x13   : > { %s7886_s16 = smov [#allocation8]   ;;  %s7887_s19 = smov [#allocation11]  }
  0x14   : > { %p8003_p3 = pnand %p7038_p0, %p341_p2  ;;  %s375_s17 = sshll.u32 %s7886_s16, 4  ;;  %s8010_s17 = int_to_ptr.vmem [resolvable:$true] %s375_s17 }
  0x15   : > { %s413_s20 = sshll.u32 %s7887_s19, 4  ;;  %s9393_s1 = sld [smem:[#allocation20_spill]]  ;;  %s8018_s20 = int_to_ptr.vmem [resolvable:$true] %s413_s20 }
  0x16   : > { %s9391_s15 = scalar_select %p8003_p3, 1, 0 }
  0x17   : > { %p7375_p5 = pneg %p8003_p3 }
  0x19   : > { %p8014_p6 = pnand %p7375_p5, %p9375_p1 }
  0x1b   : > { %s7607_s23 = scalar_lea.hbm %s9393_s1, 16  ;;  %p8028_p8 = pneg %p8014_p6 }
  0x1c   : > { %p7608_p7 = scmp.ne.s32.totalorder %s9393_s1, %s7607_s23  ;;  %p7614_p11 = scmp.lt.u32.totalorder %s7607_s23, %s9393_s1 }
  0x1e   : > { %p7610_p9 = pnand %p8028_p8, %p7608_p7 }
  0x20   : > { %p7611_p10 = pneg %p7610_p9 }
  0x22   : > { %p7616_p12 = pnand %p7614_p11, %p7611_p10 }
  0x24   : > { %7619 = shalt.err (!%p7616_p12)
}
  0x25   : > { %s7620_s21 = scalar_lea.vmem %s8001_s30, 16  ;;  %s7627_s22 = scalar_lea.vmem %s8001_s30, 32 }
  0x26   : > { %p7621_p13 = scmp.ne.s32.totalorder %s8001_s30, %s7620_s21  ;;  %p7628_p5 = scmp.lt.s32.totalorder %s8001_s30, %s8001_s30 }
  0x27   : > { %p7629_p7 = scmp.lt.s32.totalorder %s7627_s22, %s7620_s21 }
  0x28   : > { %p7623_p0 = pnand %p7621_p13, %p8028_p8 }
  0x29   : > { %p7630_p9 = por %p7629_p7, %p7628_p5 }
  0x2a   : > { %p7624_p2 = pneg %p7623_p0 }
  0x2c   : > { %p7631_p4 = pnand %p7630_p9, %p7624_p2 }
  0x2e   : > { %7634 = shalt.err (!%p7631_p4)
}
  0x2f   : > { %7378 = dma.hbm_to_vmem [thread:$0]  (!%p8014_p6), %s9393_s1, 16, %s8001_s30, [#allocation6]  }
  0x30   : > { %s9395_s3 = sld [smem:[#allocation21_spill]] }
  0x36   : > { %s7635_s19 = scalar_lea.hbm %s9395_s3, 3072 }
  0x37   : > { %p7636_p10 = scmp.ne.s32.totalorder %s9395_s3, %s7635_s19  ;;  %p7642_p4 = scmp.lt.u32.totalorder %s7635_s19, %s9395_s3 }
  0x39   : > { %p7638_p11 = pnand %p7636_p10, %p8028_p8 }
  0x3b   : > { %p7639_p12 = pneg %p7638_p11 }
  0x3d   : > { %p7644_p13 = pnand %p7642_p4, %p7639_p12 }
  0x3f   : > { %7647 = shalt.err (!%p7644_p13)
}
  0x40   : > { %s7648_s30 = scalar_lea.vmem %s8010_s17, 3072  ;;  %p7656_p7 = scmp.lt.s32.totalorder %s8010_s17, %s8010_s17 }
  0x41   : > { %p7649_p0 = scmp.ne.s32.totalorder %s8010_s17, %s7648_s30  ;;  %p7657_p9 = scmp.lt.s32.totalorder %s7648_s30, %s7648_s30 }
  0x43   : > { %p7651_p2 = pnand %p7649_p0, %p8028_p8  ;;  %p7658_p10 = por %p7657_p9, %p7656_p7 }
  0x45   : > { %p7652_p5 = pneg %p7651_p2 }
  0x47   : > { %p7659_p11 = pnand %p7658_p10, %p7652_p5 }
  0x49   : > { %7662 = shalt.err (!%p7659_p11)
}
  0x4a   : > { %s7888_s10 = smov 192   ;;  %s7889_s12 = smov 12  }
  0x4b   : > { %7384 = dma.hbm_to_vmem [thread:$0]  (!%p8014_p6), %s9395_s3, 3072, %s8010_s17, [#allocation9], %s7888_s10, %s7888_s10, %s7889_s12  }
  0x4c   : > { %s7663_s19 = scalar_lea.hbm %s9369_s9, 4096 }
  0x4d   : > { %p7664_p12 = scmp.ne.s32.totalorder %s9369_s9, %s7663_s19  ;;  %p7670_p0 = scmp.lt.u32.totalorder %s7663_s19, %s9369_s9 }
  0x4f   : > { %p7666_p4 = pnand %p7664_p12, %p8028_p8 }
  0x51   : > { %p7667_p13 = pneg %p7666_p4 }
  0x53   : > { %p7672_p2 = pnand %p7670_p0, %p7667_p13 }
  0x55   : > { %7675 = shalt.err (!%p7672_p2)
}
  0x56   : > { %s7676_s17 = scalar_lea.vmem %s8018_s20, 4096  ;;  %p7684_p10 = scmp.lt.s32.totalorder %s8018_s20, %s8018_s20 }
  0x57   : > { %p7677_p5 = scmp.ne.s32.totalorder %s8018_s20, %s7676_s17  ;;  %p7685_p11 = scmp.lt.s32.totalorder %s7676_s17, %s7676_s17 }
  0x59   : > { %p7679_p7 = pnand %p7677_p5, %p8028_p8  ;;  %p7686_p12 = por %p7685_p11, %p7684_p10 }
  0x5b   : > { %p7680_p9 = pneg %p7679_p7 }
  0x5d   : > { %p7687_p4 = pnand %p7686_p12, %p7680_p9 }
  0x5f   : > { %7690 = shalt.err (!%p7687_p4)
}
  0x60   : > { %s7890_s10 = smov 256   ;;  %s7891_s1 = smov 16  }
  0x61   : > { %7390 = dma.hbm_to_vmem [thread:$0]  (!%p8014_p6), %s9369_s9, 4096, %s8018_s20, [#allocation12], %s7890_s10, %s7890_s10, %s7891_s1  }
  0x62   : > { %s7892_s23 = smov [#allocation7]   ;;  %s7893_s29 = smov [#allocation10]  }
  0x63   : > { %s365_s24 = sshll.u32 %s7892_s23, 4  ;;  %s391_s19 = sshll.u32 %s7893_s29, 4  ;;  %s366_s24 = int_to_ptr.vmem [resolvable:$true] %s365_s24  ;;  %s392_s19 = int_to_ptr.vmem [resolvable:$true] %s391_s19 }
  0x64   : > { %s7691_s30 = scalar_lea.hbm %s9362_s2, 16 }
  0x65   : > { %p7692_p13 = scmp.ne.s32.totalorder %s9362_s2, %s7691_s30  ;;  %p7698_p5 = scmp.lt.u32.totalorder %s7691_s30, %s9362_s2 }
  0x67   : > { %p7694_p0 = pnand %p7692_p13, %p8028_p8 }
  0x69   : > { %p7695_p2 = pneg %p7694_p0 }
  0x6b   : > { %p7700_p7 = pnand %p7698_p5, %p7695_p2 }
  0x6d   : > { %7703 = shalt.err (!%p7700_p7)
}
  0x6e   : > { %s7704_s20 = scalar_lea.vmem %s366_s24, 16  ;;  %s7711_s10 = scalar_lea.vmem %s366_s24, 32 }
  0x6f   : > { %p7705_p9 = scmp.ne.s32.totalorder %s366_s24, %s7704_s20  ;;  %p7712_p12 = scmp.lt.s32.totalorder %s366_s24, %s366_s24 }
  0x70   : > { %p7713_p4 = scmp.lt.s32.totalorder %s7711_s10, %s7704_s20 }
  0x71   : > { %p7707_p10 = pnand %p7705_p9, %p8028_p8 }
  0x72   : > { %p7714_p1 = por %p7713_p4, %p7712_p12 }
  0x73   : > { %p7708_p11 = pneg %p7707_p10 }
  0x75   : > { %p7715_p3 = pnand %p7714_p1, %p7708_p11 }
  0x77   : > { %7718 = shalt.err (!%p7715_p3)
}
  0x78   : > { %7381 = dma.hbm_to_vmem [thread:$0]  (!%p8014_p6), %s9362_s2, 16, %s366_s24, [#allocation6]  }
  0x79   : > { %s7719_s12 = scalar_lea.hbm %s9365_s5, 1024 }
  0x7a   : > { %p7720_p13 = scmp.ne.s32.totalorder %s9365_s5, %s7719_s12  ;;  %p7726_p3 = scmp.lt.u32.totalorder %s7719_s12, %s9365_s5 }
  0x7c   : > { %p7722_p0 = pnand %p7720_p13, %p8028_p8 }
  0x7e   : > { %p7723_p1 = pneg %p7722_p0 }
  0x80   : > { %p7728_p2 = pnand %p7726_p3, %p7723_p1 }
  0x82   : > { %7731 = shalt.err (!%p7728_p2)
}
  0x83   : > { %s7732_s22 = scalar_lea.vmem %s392_s19, 1024  ;;  %p7740_p10 = scmp.lt.s32.totalorder %s392_s19, %s392_s19 }
  0x84   : > { %p7733_p5 = scmp.ne.s32.totalorder %s392_s19, %s7732_s22  ;;  %p7741_p11 = scmp.lt.s32.totalorder %s7732_s22, %s7732_s22 }
  0x86   : > { %p7735_p7 = pnand %p7733_p5, %p8028_p8  ;;  %p7742_p12 = por %p7741_p11, %p7740_p10 }
  0x88   : > { %p7736_p9 = pneg %p7735_p7 }
  0x8a   : > { %p7743_p4 = pnand %p7742_p12, %p7736_p9 }
  0x8c   : > { %7746 = shalt.err (!%p7743_p4)
}
  0x8d   : > { %s7894_s24 = smov 64   ;;  %s7895_s30 = smov 4  }
  0x8e   : > { %7387 = dma.hbm_to_vmem [thread:$0]  (!%p8014_p6), %s9365_s5, 1024, %s392_s19, [#allocation9], %s7894_s24, %s7894_s24, %s7895_s30  }
  0x8f   : > { %s7896_s10 = smov [#allocation13]   ;;  %s7747_s8 = scalar_lea.hbm %s9371_s11, 4096 }
  0x90   : > { %s429_s3 = sshll.u32 %s7896_s10, 4  ;;  %p7748_p13 = scmp.ne.s32.totalorder %s9371_s11, %s7747_s8  ;;  %s430_s3 = int_to_ptr.vmem [resolvable:$true] %s429_s3 }
  0x91   : > { %p7754_p3 = scmp.lt.u32.totalorder %s7747_s8, %s9371_s11 }
  0x92   : > { %p7750_p0 = pnand %p7748_p13, %p8028_p8 }
  0x94   : > { %p7751_p1 = pneg %p7750_p0 }
  0x96   : > { %p7756_p2 = pnand %p7754_p3, %p7751_p1 }
  0x98   : > { %7759 = shalt.err (!%p7756_p2)
}
  0x99   : > { %s7760_s19 = scalar_lea.vmem %s430_s3, 4096  ;;  %p7768_p10 = scmp.lt.s32.totalorder %s430_s3, %s430_s3 }
  0x9a   : > { %p7761_p5 = scmp.ne.s32.totalorder %s430_s3, %s7760_s19  ;;  %p7769_p11 = scmp.lt.s32.totalorder %s7760_s19, %s7760_s19 }
  0x9c   : > { %p7763_p7 = pnand %p7761_p5, %p8028_p8  ;;  %p7770_p12 = por %p7769_p11, %p7768_p10 }
  0x9e   : > { %p7764_p9 = pneg %p7763_p7 }
  0xa0   : > { %p7771_p4 = pnand %p7770_p12, %p7764_p9 }
  0xa2   : > { %7774 = shalt.err (!%p7771_p4)
}
  0xa3   : > { %7393 = dma.hbm_to_vmem [thread:$0]  (!%p8014_p6), %s9371_s11, 4096, %s430_s3, [#allocation12], %s7894_s24, %s7894_s24, %s7895_s30  }
  0xa4   : > { %s7037_s16 = sadd.s32 4294967294, %s7883_s28   ;;  %s8152_s18 = sadd.s32 1, %s7883_s28  }
  0xa5   : > { %s36_s17 = ssub.s32 %s7883_s28, %s8152_s18  ;;  %s39_s20 = sadd.s32 1, %s7879_s27 }
  0xa6   : > { %p37_p8 = scmp.eq.s32.totalorder %s36_s17, 0  ;;  %p46_p13 = scmp.ne.s32.totalorder %s7879_s27, %s7875_s26 }
  0xa7   : > { %p47_p0 = scmp.eq.s32.totalorder %s7883_s28, 0  ;;  %p52_p1 = scmp.ne.s32.totalorder %s7875_s26, %s7871_s25 }
  0xa8   : > { %s8163_s10 = scalar_select %p37_p8, %s7879_s27, %s39_s20  }
  0xa9   : > { %p8165_p3 = por %p47_p0, %p46_p13  ;;  %p9397_p2 = scmp.eq.s32.totalorder %s7996_s14, 0 }
  0xaa   : > { %p328_p5 = scmp.eq.s32.totalorder %s7996_s14, 1  ;;  %p334_p7 = scmp.eq.s32.totalorder %s7037_s16, 1 }
  0xab   : > { %p8171_p6 = por %p9397_p2, %p52_p1  ;;  %p7408_p9 = scmp.lt.s32.totalorder %s7883_s28, 2 }
  0xac   : > { %s446_s30 = sand.u32 1, %s7879_s27   ;;  %p8178_p10 = por %p328_p5, %p46_p13 }
  0xad   : > { %p8182_p11 = por %p334_p7, %p52_p1  ;;  %s7046_s8 = sshll.u32 %s446_s30, 3 }
  0xae   : > { %s9399_s3 = scalar_select %p8178_p10, 1, 0 }
  0xaf   : > { %s9400_s7 = scalar_select %p8182_p11, 1, 0 }
  0xb0   : > { %s7047_s12 = sshll.u32 %s7883_s28, 7  ;;  %s450_s19 = scalar_lea.vmem [#allocation2], %s7046_s8 }
  0xb1   : > { %s8190_s29 = scalar_lea.hbm %s9360_s0, %s7047_s12  ;;  %s457_s21 = sshll.u32 %s450_s19, 4  ;;  %s8192_s21 = int_to_ptr.vmem [resolvable:$true] %s457_s21 }
  0xb2   : > { %p8196_p12 = pnand %p7408_p9, %p8165_p3  ;;  %s447_s16 = scalar_lea.sflag [#allocation3], %s446_s30 }
  0xb3   : > { %s7775_s17 = scalar_lea.hbm %s8190_s29, 128  ;;  %s7780_s12 = scalar_lea.hbm %s9360_s0, 256 }
  0xb4   : > { %p7776_p4 = scmp.ne.s32.totalorder %s8190_s29, %s7775_s17  ;;  %p7777_p8 = pneg %p8196_p12 }
  0xb5   : > { %p7781_p1 = scmp.lt.u32.totalorder %s8190_s29, %s9360_s0  ;;  %p7782_p3 = scmp.lt.u32.totalorder %s7780_s12, %s7775_s17 }
  0xb6   : > { %p7778_p13 = pnand %p7777_p8, %p7776_p4  ;;  %p7784_p5 = scmp.lt.u32.totalorder %s7775_s17, %s8190_s29 }
  0xb7   : > { %p7783_p2 = por %p7782_p3, %p7781_p1 }
  0xb8   : > { %p7779_p0 = pneg %p7778_p13 }
  0xb9   : > { %p7785_p7 = por %p7784_p5, %p7783_p2 }
  0xbb   : > { %p7786_p9 = pnand %p7785_p7, %p7779_p0 }
  0xbd   : > { %7789 = shalt.err (!%p7786_p9)
}
  0xbe   : > { %s7790_s30 = scalar_lea.vmem %s8192_s21, 128  ;;  %s7897_s23 = smov [#allocation2]  }
  0xbf   : > { %p7791_p4 = scmp.ne.s32.totalorder %s8192_s21, %s7790_s30  ;;  %s7795_s19 = sshll.u32 %s7897_s23, 4  ;;  %s7796_s19 = int_to_ptr.vmem [resolvable:$false] %s7795_s19 }
  0xc0   : > { %s7797_s20 = scalar_lea.vmem %s7796_s19, 256  ;;  %p7798_p10 = scmp.lt.s32.totalorder %s8192_s21, %s7796_s19 }
  0xc1   : > { %p7793_p13 = pnand %p7791_p4, %p7777_p8  ;;  %p7799_p1 = scmp.lt.s32.totalorder %s7797_s20, %s7790_s30 }
  0xc3   : > { %p7794_p11 = pneg %p7793_p13  ;;  %p7800_p3 = por %p7799_p1, %p7798_p10 }
  0xc5   : > { %p7801_p2 = pnand %p7800_p3, %p7794_p11 }
  0xc7   : > { %7804 = shalt.err (!%p7801_p2)
}
  0xc8   : > { %7397 = dma.hbm_to_vmem [thread:$0]  (!%p8196_p12), %s8190_s29, 128, %s8192_s21, %s447_s16  }
  0xc9   : > { %p9402_p0 = scmp.ne.s32.totalorder %s9391_s15, 0 }
  0xca   : > { %s8228_s17 = sand.u32 (!%p9402_p0), 1, %s7875_s26  }
  0xcb   : > { %466 = sbr.rel (%p9402_p0) target bundleno = 3382 (0xd36), region = 72  ;;  %s7049_s8 = sshll.u32 (!%p9402_p0), %s8228_s17, 3 }
  0xcc   : > { %s469_s12 = scalar_lea.sflag (!%p9402_p0), [#allocation3], %s8228_s17  ;;  %s8234_s1 = scalar_lea.vmem (!%p9402_p0), [#allocation2], %s7049_s8 }
  0xd2   : > { %7850 = dma.done.wait (%p8171_p6), %s469_s12, 128  }
  0xd3   : > { %7852 = vsyncadd (%p8171_p6), %s469_s12, 4294967168  ;;  %p9403_p10 = scmp.eq.s32.totalorder %s7996_s14, 0 }
  0xd5   : > { %7854 = dma.done.wait (%p9403_p10), [#allocation6], 32   ;;  %p9404_p11 = pmov %p9403_p10 }
  0xd6   : > { %p9405_p12 = pmov %p9403_p10 }
  0xd7   : > { %7856 = vsyncadd (%p9404_p11), [#allocation6], 4294967264 }
  0xd8   : > { %7858 = dma.done.wait (%p9405_p12), [#allocation9], 4096   ;;  %p9406_p8 = pmov %p9403_p10 }
  0xda   : > { %7860 = vsyncadd (%p9406_p8), [#allocation9], 4294963200  ;;  %p9407_p5 = pmov %p9406_p8 }
  0xdc   : > { %7862 = dma.done.wait (%p9407_p5), [#allocation12], 8192   ;;  %p9408_p7 = pmov %p9407_p5 }
  0xdd   : > { %v540_v0 = vld [vmem:[%s8234_s1] sm:$0xff]  ;;  %v9381_v3 = vmov 0.0   ;;  %v7470_v5 = vld [vmem:[#allocation8 + $0x1c] ss:$12 sps:$4 sm:$0xff]   ;;  %v7899_v25 = vmov 0   ;;  %vm7900_vm0 = vmmov 0   ;;  %v9380_v41 = vlaneseq }
  0xde   : > { %7864 = vsyncadd (%p9408_p7), [#allocation12], 4294959104  ;;  %543 = vadd.xlane.f32.xlu0 %v540_v0  ;;  %v7466_v1 = vld [vmem:[#allocation8 + $0x4] ss:$12 sps:$4 sm:$0xff]   ;;  %v7468_v2 = vld [vmem:[#allocation8] ss:$12 sps:$4 sm:$0xff]   ;;  %7261 = vmatprep.subr.bf16.mxu1 %v9381_v3 }
  0xdf   : > { %v7469_v4 = vld [vmem:[#allocation8 + $0x8] ss:$12 sps:$4 sm:$0xff]   ;;  %v7472_v6 = vld [vmem:[#allocation8 + $0x18] ss:$12 sps:$4 sm:$0xff]   ;;  %747 = vmatprep.subr.bf16.mxu0 %v7466_v1  ;;  %v7473_v7 = vld [vmem:[#allocation8 + $0x20] ss:$12 sps:$4 sm:$0xff]   ;;  %779 = vmatprep.mubr.bf16.mxu0 %v7899_v25 }
  0xe0   : > { %v7474_v8 = vld [vmem:[#allocation8 + $0x34] ss:$12 sps:$4 sm:$0xff]   ;;  %748 = vmatpush1.bf16.msra.mxu0 %v7468_v2  ;;  %7262 = vmatpush3.bf16.msra.mxu1 %v7469_v4  ;;  %v7476_v13 = vld [vmem:[#allocation8 + $0x30] ss:$12 sps:$4 sm:$0xff]   ;;  %v7477_v14 = vld [vmem:[#allocation8 + $0x38] ss:$12 sps:$4 sm:$0xff]  }
  0xe1   : > { %749 = vmatprep.subr.bf16.mxu0 %v7470_v5  ;;  %7263 = vmatprep.subr.bf16.mxu1 %v9381_v3  ;;  %v7478_v15 = vld [vmem:[#allocation8 + $0x4c] ss:$12 sps:$4 sm:$0xff]   ;;  %v7480_v16 = vld [vmem:[#allocation8 + $0x48] ss:$12 sps:$4 sm:$0xff]   ;;  %v7481_v17 = vld [vmem:[#allocation8 + $0x50] ss:$12 sps:$4 sm:$0xff]  }
  0xe2   : > { %v7482_v18 = vld [vmem:[#allocation8 + $0x64] ss:$12 sps:$4 sm:$0xff]   ;;  %v7484_v19 = vld [vmem:[#allocation8 + $0x60] ss:$12 sps:$4 sm:$0xff]   ;;  %v7485_v20 = vld [vmem:[#allocation8 + $0x68] ss:$12 sps:$4 sm:$0xff]   ;;  %7277 = vmatprep.mubr.msk.bf16.mxu1 %vm7900_vm0, %v9381_v3 }
  0xe3   : > { %v7486_v21 = vld [vmem:[#allocation8 + $0x7c] ss:$12 sps:$4 sm:$0xff]   ;;  %v7488_v22 = vld [vmem:[#allocation8 + $0x78] ss:$12 sps:$4 sm:$0xff]   ;;  %v7489_v23 = vld [vmem:[#allocation8 + $0x80] ss:$12 sps:$4 sm:$0xff]  }
  0xe4   : > { %750 = vmatpush1.bf16.msra.mxu0 %v7472_v6  ;;  %7264 = vmatpush3.bf16.msra.mxu1 %v7473_v7  ;;  %v7490_v24 = vld [vmem:[#allocation8 + $0x94] ss:$12 sps:$4 sm:$0xff]   ;;  %v7492_v26 = vld [vmem:[#allocation8 + $0x90] ss:$12 sps:$4 sm:$0xff]   ;;  %v7493_v27 = vld [vmem:[#allocation8 + $0x98] ss:$12 sps:$4 sm:$0xff]  }
  0xe5   : > { %751 = vmatprep.subr.bf16.mxu0 %v7474_v8  ;;  %7265 = vmatprep.subr.bf16.mxu1 %v9381_v3  ;;  %v7494_v28 = vld [vmem:[#allocation8 + $0xac] ss:$12 sps:$4 sm:$0xff]   ;;  %v7496_v29 = vld [vmem:[#allocation8 + $0xa8] ss:$12 sps:$4 sm:$0xff]   ;;  %v7497_v30 = vld [vmem:[#allocation8 + $0xb0] ss:$12 sps:$4 sm:$0xff]  }
  0xe6   : > { %v7057_v35 = vld [vmem:[#allocation5] ss:$0 sm:$0xff]  ;;  %v7058_v37 = vld [vmem:[#allocation7] ss:$0 sm:$0xff]  ;;  %v8268_v42 = vshrl.u32 %v9380_v41, 7  ;;  %s7901_s29 = smov 64  }
  0xe7   : > { %v8274_v44 = vld [vmem:[%s9364_s4] sm:$0x7]  ;;  %v7902_v58 = vmov 1983009808   ;;  %v7903_v61 = vmov 1934713408  }
  0xe8   : > { %752 = vmatpush1.bf16.msra.mxu0 %v7476_v13  ;;  %7266 = vmatpush3.bf16.msra.mxu1 %v7477_v14  ;;  %v9379_v43 = vsub.s32 0, %v8268_v42  ;;  %v9378_v45 = vsub.s32 1, %v8268_v42  ;;  %v834_v59 = vunpack.c.l.s4 %v7902_v58  ;;  %v865_v62 = vunpack.c.l.s4 %v7903_v61  ;;  %s9412_s30 = sld [smem:[#allocation22_spill]]  ;;  %s9413_s20 = sld [smem:[#allocation23_spill]] }
  0xe9   : > { %7267 = vmatprep.subr.bf16.mxu1 %v9381_v3  ;;  %753 = vmatprep.subr.bf16.mxu0 %v7478_v15  ;;  %vm3356_vm1 = vcmask 523264   ;;  %vm3454_vm3 = vcmask 64512   ;;  %s9414_s15 = sld [smem:[#allocation24_spill]]  ;;  %s9418_s21 = sld [smem:[#allocation25_spill]] }
  0xea   : > { %v607_v46 = vrot.slane %v8274_v44, %v9379_v43  ;;  %v611_v47 = vrot.slane %v8274_v44, %v9378_v45  ;;  %v835_v60 = vunpack.c.0.s8 %v834_v59  ;;  %s7176_s22 = sshll.u32 %s7996_s14, 7  ;;  %s538_s16 = scalar_lea.vmem [#allocation14], %s7049_s8 }
  0xeb   : > { %s6910_s13 = sshll.u32 %s538_s16, 4  ;;  %s9419_s19 = sld [smem:[#allocation26_spill]]  ;;  %s9318_s13 = int_to_ptr.vmem [resolvable:$true] %s6910_s13 }
  0xec   : > { %754 = vmatpush1.bf16.msra.mxu0 %v7480_v16  ;;  %7268 = vmatpush3.bf16.msra.mxu1 %v7481_v17  ;;  %v8291_v63 = vsub.s32 %v835_v60, %v8268_v42  ;;  %s6897_s12 = scalar_lea.sflag [#allocation4], %s8228_s17  ;;  %p9420_p9 = scmp.ne.s32.totalorder %s9399_s3, 0 }
  0xed   : > { %7269 = vmatprep.subr.bf16.mxu1 %v9381_v3  ;;  %755 = vmatprep.subr.bf16.mxu0 %v7482_v18  ;;  %s7904_s14 = smov [#allocation14]  }
  0xee   : > { %s7809_s8 = sshll.u32 %s7904_s14, 4  ;;  %s7810_s8 = int_to_ptr.vmem [resolvable:$false] %s7809_s8 }
  0xef   : > { %p7812_p1 = scmp.lt.s32.totalorder %s9318_s13, %s7810_s8 }
  0xf0   : > { %756 = vmatpush1.bf16.msra.mxu0 %v7484_v19  ;;  %7270 = vmatpush3.bf16.msra.mxu1 %v7485_v20 }
  0xf1   : > { %757 = vmatprep.subr.bf16.mxu0 %v7486_v21  ;;  %7271 = vmatprep.subr.bf16.mxu1 %v9381_v3 }
  0xf4   : > { %758 = vmatpush1.bf16.msra.mxu0 %v7488_v22  ;;  %7272 = vmatpush3.bf16.msra.mxu1 %v7489_v23 }
  0xf5   : > { %759 = vmatprep.subr.bf16.mxu0 %v7490_v24  ;;  %7273 = vmatprep.subr.bf16.mxu1 %v9381_v3 }
  0xf8   : > { %760 = vmatpush1.bf16.msra.mxu0 %v7492_v26  ;;  %7274 = vmatpush3.bf16.msra.mxu1 %v7493_v27 }
  0xf9   : > { %761 = vmatprep.subr.bf16.mxu0 %v7494_v28  ;;  %7275 = vmatprep.subr.bf16.mxu1 %v9381_v3 }
  0xfc   : > { %762 = vmatpush1.bf16.msra.mxu0 %v7496_v29  ;;  %7276 = vmatpush3.bf16.msra.mxu1 %v7497_v30 }
  0xfd   : > { %7281 = vmatprep.subr.bf16.mxu1 %v9381_v3 }
 0x16b   : > { %v544_v9 = vpop.xlane.xlu0 %543 }
 0x16c   : > { %v546_v10 = vmul.f32 0.0078125, %v544_v9 }
 0x16e   : > { %v547_v11 = vsub.f32 %v540_v0, %v546_v10  ;;  %v866_v0 = vunpack.c.0.s8 %v865_v62 }
 0x170   : > { %v548_v12 = vmul.f32 %v547_v11, %v547_v11  ;;  %v8294_v2 = vsub.s32 %v866_v0, %v8268_v42 }
 0x172   : > { %549 = vadd.xlane.f32.xlu0 %v548_v12 }
 0x1ff   : > { %v550_v31 = vpop.xlane.xlu0 %549 }
 0x200   : > { %v551_v32 = vmul.f32 0.0078125, %v550_v31 }
 0x202   : > { %v552_v33 = vadd.f32 1e-05, %v551_v32 }
 0x204   : > { %7586 = vrsqrt.f32 %v552_v33 }
 0x20e   : > { %v7587_v34 = vpop.eup %7586 }
 0x20f   : > { %v554_v36 = vmul.f32 %v7587_v34, %v547_v11 }
 0x211   : > { %v561_v38 = vmul.f32 %v7057_v35, %v554_v36 }
 0x213   : > { %v568_v39 = vadd.f32 %v7058_v37, %v561_v38 }
 0x215   : > { %v569_v40 = vpack.c.bf16 %v568_v39, %v568_v39 }
 0x217   : > { %780 = vmatmul.mubr.bf16.vlgmr.msra.gmra.mrb[0].mxu0 %v569_v40  ;;  %7278 = vmatmul.mubr.bf16.vlgmr.msra.gmra.mrb[0].mxu1 %v569_v40 }
 0x218   : > { %7289 = vmatprep.mubr.msk.bf16.mxu1 %vm7900_vm0, %v9381_v3 }
 0x2ea   : > { %v781_v48 = vpop.f32.mrb[0].mxu0  ;;  %v8283_v49 = vpop.f32.mrb[0].mxu1 }
 0x2eb   : > { %v8285_v50 = vadd.f32 %v781_v48, %v607_v46  ;;  %v783_v51 = vpop.f32.mrb[1].mxu0  ;;  %v7279_v52 = vpop.f32.mrb[1].mxu1 }
 0x2ec   : > { %v784_v53 = vadd.f32 %v783_v51, %v611_v47  ;;  %v785_v54 = vpop.f32.mrb[2].mxu0  ;;  %v825_v55 = vpop.f32.mrb[2].mxu1 }
 0x2ed   : > { %v786_v56 = vpop.f32.mrb[3].mxu0  ;;  %v7280_v57 = vpop.f32.mrb[3].mxu1  ;;  %829 = vrot.lane.b32.xlu0 %v8285_v50, %s7901_s29 }
 0x2ee   : > { %899 = vrot.lane.b32.xlu1 %v784_v53, %s7901_s29  ;;  %v909_v4 = vrot.slane %v784_v53, %v8291_v63  ;;  %v902_v11 = vcombine.high %v784_v53, %v9381_v3 }
 0x2f0   : > { %v916_v14 = vrot.slane %v902_v11, %v8291_v63 }
 0x35f   : > { %v8314_v34 = vpop.permute.xlu0 %829 }
 0x360   : > { %v900_v1 = vpop.permute.xlu1 %899 }
 0x361   : > { %v924_v5 = vrot.slane %v900_v1, %v8291_v63  ;;  %v917_v8 = vcombine.high %v900_v1, %v9381_v3 }
 0x363   : > { %v932_v6 = vcombine.low %v909_v4, %v924_v5  ;;  %v931_v13 = vrot.slane %v917_v8, %v8291_v63  ;;  %v933_v15 = vcombine.high %v909_v4, %v924_v5 }
 0x365   : > { %v940_v7 = vrot.slane %v932_v6, %v8294_v2  ;;  %v948_v16 = vcombine.low %v916_v14, %v931_v13  ;;  %v947_v17 = vrot.slane %v933_v15, %v8294_v2  ;;  %v949_v21 = vcombine.high %v916_v14, %v931_v13 }
 0x367   : > { %v1046_v9 = vpack.c.bf16 %v940_v7, %v940_v7  ;;  %v964_v10 = vcombine.high %v940_v7, %v9381_v3  ;;  %v956_v18 = vrot.slane %v948_v16, %v8294_v2  ;;  %v1048_v19 = vpack.c.bf16 %v947_v17, %v947_v17 }
 0x368   : > { %v965_v22 = vcombine.high %v947_v17, %v9381_v3  ;;  %v963_v23 = vrot.slane %v949_v21, %v8294_v2 }
 0x369   : > { %1108 = vxpose.xlu1.c.b16.start.end [1/1] (short) (narrow) %v1046_v9, 64  ;;  %v1047_v12 = vpack.c.bf16 %v964_v10, %v964_v10  ;;  %v1050_v20 = vpack.c.bf16 %v956_v18, %v956_v18  ;;  %v966_v27 = vcombine.high %v956_v18, %v9381_v3 }
 0x36a   : > { %v1049_v24 = vpack.c.bf16 %v965_v22, %v965_v22  ;;  %v1052_v26 = vpack.c.bf16 %v963_v23, %v963_v23  ;;  %v967_v29 = vcombine.high %v963_v23, %v9381_v3 }
 0x36b   : > { %1124 = vxpose.xlu0.c.b16.start.end [1/1] (short) (narrow) %v1047_v12, 64  ;;  %v1051_v28 = vpack.c.bf16 %v966_v27, %v966_v27 }
 0x36c   : > { %v1053_v30 = vpack.c.bf16 %v967_v29, %v967_v29 }
 0x376   : > { %1140 = vxpose.xlu1.c.b16.start.end [1/1] (short) (narrow) %v1048_v19, 64 }
 0x378   : > { %1172 = vxpose.xlu0.c.b16.start.end [1/1] (short) (narrow) %v1050_v20, 64 }
 0x383   : > { %1156 = vxpose.xlu1.c.b16.start.end [1/1] (short) (narrow) %v1049_v24, 64 }
 0x385   : > { %1204 = vxpose.xlu0.c.b16.start.end [1/1] (short) (narrow) %v1052_v26, 64 }
 0x390   : > { %1188 = vxpose.xlu1.c.b16.start.end [1/1] (short) (narrow) %v1051_v28, 64 }
 0x39d   : > { %1220 = vxpose.xlu1.c.b16.start.end [1/1] (short) (narrow) %v1053_v30, 64 }
 0x3cf   : > { %v1116_v31 = vpop.trf.xlu1 }
 0x3d0   : > { %v1240_v18 = vshrl.u32 %v1116_v31, 16 }
 0x3d1   : > { %v1132_v36 = vpop.trf.xlu0 }
 0x3d2   : > { %v1241_v14 = vshrl.u32 %v1132_v36, 16  ;;  %v1238_v15 = vpack.i.b16 %v1132_v36, %v1116_v31 }
 0x3d3   : > { %v8310_v32 = vpop.trf.xlu1 }
 0x3d4   : > { %v1242_v27 = vpack.i.b16 %v1241_v14, %v1240_v18 }
 0x3d5   : > { %v8318_v38 = vpop.trf.xlu0 }
 0x3d7   : > { %v8312_v33 = vpop.trf.xlu1 }
 0x3d9   : > { %v8324_v46 = vpop.trf.xlu0 }
 0x3da   : > { %v8348_v5 = vpack.i.b16 %v8324_v46, %v8312_v33 }
 0x3db   : > { %v8316_v35 = vpop.trf.xlu1 }
 0x3dd   : > { %v8326_v48 = vpop.trf.xlu0 }
 0x3df   : > { %v1148_v37 = vpop.trf.xlu1 }
 0x3e0   : > { %v1248_v19 = vshrl.u32 %v1148_v37, 16 }
 0x3e1   : > { %v1180_v53 = vpop.trf.xlu0 }
 0x3e2   : > { %v1256_v10 = vshrl.u32 %v1180_v53, 16 }
 0x3e3   : > { %v8320_v39 = vpop.trf.xlu1 }
 0x3e5   : > { %v8332_v55 = vpop.trf.xlu0 }
 0x3e7   : > { %v8322_v40 = vpop.trf.xlu1 }
 0x3e9   : > { %v8338_v62 = vpop.trf.xlu0 }
 0x3eb   : > { %v1151_v47 = vpop.trf.xlu1 }
 0x3ec   : > { %v1344_v57 = vshrl.u32 %v1151_v47, 16 }
 0x3ed   : > { %v8342_v1 = vpop.trf.xlu0 }
 0x3ef   : > { %v1164_v51 = vpop.trf.xlu1 }
 0x3f0   : > { %v1249_v16 = vshrl.u32 %v1164_v51, 16  ;;  %v1246_v22 = vpack.i.b16 %v1164_v51, %v1148_v37 }
 0x3f1   : > { %v1212_v12 = vpop.trf.xlu0 }
 0x3f2   : > { %v1264_v17 = vshrl.u32 %v1212_v12, 16  ;;  %v1250_v28 = vpack.i.b16 %v1249_v16, %v1248_v19 }
 0x3f3   : > { %v8328_v52 = vpop.trf.xlu1 }
 0x3f7   : > { %v8330_v54 = vpop.trf.xlu1 }
 0x3fb   : > { %v1167_v56 = vpop.trf.xlu1 }
 0x3fc   : > { %v8334_v58 = vpack.i.b16 %v1167_v56, %v1151_v47  ;;  %v1345_v59 = vshrl.u32 %v1167_v56, 16  ;;  %v1213_v47 = vpop.trf.xlu0 }
 0x3fe   : > { %v8336_v60 = vpack.i.b16 %v1345_v59, %v1344_v57 }
 0x3ff   : > { %v1196_v61 = vpop.trf.xlu1 }
 0x400   : > { %v1257_v9 = vshrl.u32 %v1196_v61, 16  ;;  %v1254_v13 = vpack.i.b16 %v1196_v61, %v1180_v53 }
 0x402   : > { %v1258_v20 = vpack.i.b16 %v1257_v9, %v1256_v10  ;;  %v1364_v23 = vcombine.low %v1238_v15, %v1254_v13  ;;  %v1365_v10 = vcombine.high %v1238_v15, %v1254_v13 }
 0x403   : > { %v8340_v0 = vpop.trf.xlu1 }
 0x404   : > { %v1432_v56 = vcombine.low %v1242_v27, %v1258_v20  ;;  %v1372_v36 = vrot.slane %v1364_v23, %v8291_v63  ;;  %v1433_v61 = vcombine.high %v1242_v27, %v1258_v20  ;;  %v1286_v37 = vpack.i.b16 %v8340_v0, %v8332_v55  ;;  %v8375_v20 = vpop.trf.xlu0 }
 0x406   : > { %v8367_v14 = vrot.slane %v1432_v56, %v8291_v63  ;;  %v1296_v56 = vshrl.u32 %v1213_v47, 16 }
 0x407   : > { %v8344_v4 = vpop.trf.xlu1 }
 0x408   : > { %v8352_v6 = vpack.i.b16 %v8344_v4, %v8338_v62 }
 0x40a   : > { %v1636_v7 = vcombine.low %v8348_v5, %v8352_v6 }
 0x40b   : > { %v8358_v11 = vpop.trf.xlu1 }
 0x40f   : > { %v1228_v21 = vpop.trf.xlu1 }
 0x410   : > { %v1265_v24 = vshrl.u32 %v1228_v21, 16  ;;  %v1262_v26 = vpack.i.b16 %v1228_v21, %v1212_v12  ;;  %v1270_v12 = vpack.i.b16 %v8318_v38, %v8310_v32 }
 0x412   : > { %v1266_v29 = vpack.i.b16 %v1265_v24, %v1264_v17  ;;  %v1380_v30 = vcombine.low %v1246_v22, %v1262_v26  ;;  %v1381_v53 = vcombine.high %v1246_v22, %v1262_v26  ;;  %v1272_v22 = vshrl.u32 %v8310_v32, 16 }
 0x413   : > { %v1229_v57 = vpop.trf.xlu1  ;;  %v1447_v24 = vrot.slane %v1433_v61, %v8291_v63  ;;  %v1278_v26 = vpack.i.b16 %v8328_v52, %v8320_v39  ;;  %v1500_v27 = vcombine.low %v1270_v12, %v1286_v37 }
 0x414   : > { %v1388_v59 = vrot.slane %v1380_v30, %v8291_v63  ;;  %v1448_v31 = vcombine.low %v1250_v28, %v1266_v29  ;;  %v1449_v9 = vcombine.high %v1250_v28, %v1266_v29  ;;  %v1294_v18 = vpack.i.b16 %v1229_v57, %v1213_v47 }
 0x415   : > { %v1395_v21 = vrot.slane %v1381_v53, %v8291_v63  ;;  %v1501_v28 = vcombine.high %v1270_v12, %v1286_v37  ;;  %v1379_v29 = vrot.slane %v1365_v10, %v8291_v63  ;;  %v1297_v30 = vshrl.u32 %v1229_v57, 16 }
 0x416   : > { %v1396_v51 = vcombine.low %v1372_v36, %v1388_v59  ;;  %v8370_v16 = vrot.slane %v1448_v31, %v8291_v63  ;;  %v1463_v17 = vrot.slane %v1449_v9, %v8291_v63  ;;  %v1397_v15 = vcombine.high %v1372_v36, %v1388_v59 }
 0x417   : > { %v8373_v19 = vpop.trf.xlu1  ;;  %v1516_v36 = vcombine.low %v1278_v26, %v1294_v18  ;;  %v1517_v59 = vcombine.high %v1278_v26, %v1294_v18  ;;  %v1412_v61 = vcombine.low %v1379_v29, %v1395_v21  ;;  %v1273_v9 = vshrl.u32 %v8318_v38, 16  ;;  %v1215_v18 = vpop.trf.xlu0 }
 0x418   : > { %v8378_v13 = vrot.slane %v1396_v51, %v8294_v2  ;;  %v1464_v23 = vcombine.low %v8367_v14, %v8370_v16  ;;  %v1480_v32 = vcombine.low %v1447_v24, %v1463_v17  ;;  %v8393_v31 = vrot.slane %v1397_v15, %v8294_v2 }
 0x419   : > { %v1281_v37 = vshrl.u32 %v8328_v52, 16  ;;  %v1289_v51 = vshrl.u32 %v8340_v0, 16  ;;  %v1288_v10 = vshrl.u32 %v8332_v55, 16  ;;  %v1280_v47 = vshrl.u32 %v8320_v39, 16 }
 0x41a   : > { %1908 = vxpose.xlu1.c.b16.start.end [1/1] (short) (narrow) %v8378_v13, 16  ;;  %v8390_v53 = vrot.slane %v1464_v23, %v8294_v2  ;;  %v1352_v57 = vshrl.u32 %v8342_v1, 16  ;;  %v8404_v15 = vrot.slane %v1500_v27, %v8291_v63  ;;  %v8407_v38 = vrot.slane %v1501_v28, %v8291_v63 }
 0x41b   : > { %v1231_v12 = vpop.trf.xlu1  ;;  %v1353_v52 = vshrl.u32 %v8358_v11, 16  ;;  %v8410_v0 = vpack.i.b16 %v1297_v30, %v1296_v56  ;;  %v1488_v55 = vrot.slane %v1480_v32, %v8294_v2  ;;  %v1481_v23 = vcombine.high %v1447_v24, %v1463_v17 }
 0x41c   : > { %1924 = vxpose.xlu0.c.b16.start.end [1/1] (short) (narrow) %v8390_v53, 16  ;;  %v8414_v39 = vrot.slane %v1412_v61, %v8294_v2  ;;  %v1413_v26 = vcombine.high %v1379_v29, %v1395_v21  ;;  %v8417_v45 = vrot.slane %v1516_v36, %v8291_v63  ;;  %v8420_v27 = vrot.slane %v1517_v59, %v8291_v63 }
 0x41d   : > { %v1282_v43 = vpack.i.b16 %v1281_v37, %v1280_v47  ;;  %v1290_v28 = vpack.i.b16 %v1289_v51, %v1288_v10  ;;  %v1361_v41 = vshrl.u32 %v1231_v12, 16  ;;  %v1360_v3 = vshrl.u32 %v1215_v18, 16 }
 0x41e   : > { %1972 = vxpose.xlu1.c.b16.start.end [1/1] (short) (narrow) %v8393_v31, 16  ;;  %v1337_v30 = vshrl.u32 %v8326_v48, 16  ;;  %v1532_v17 = vcombine.low %v8404_v15, %v8417_v45  ;;  %v1533_v21 = vcombine.high %v8404_v15, %v8417_v45  ;;  %v1548_v24 = vcombine.low %v8407_v38, %v8420_v27 }
 0x41f   : > { %v1274_v29 = vpack.i.b16 %v1273_v9, %v1272_v22  ;;  %v1495_v56 = vrot.slane %v1481_v23, %v8294_v2  ;;  %v1584_v32 = vcombine.low %v1282_v43, %v8410_v0  ;;  %v1336_v36 = vshrl.u32 %v8316_v35, 16 }
 0x420   : > { %2052 = vxpose.xlu0.c.b16.start.end [1/1] (short) (narrow) %v1488_v55, 16  ;;  %v1354_v59 = vpack.i.b16 %v1353_v52, %v1352_v57  ;;  %v1427_v61 = vrot.slane %v1413_v26, %v8294_v2  ;;  %v1362_v51 = vpack.i.b16 %v1361_v41, %v1360_v3  ;;  %v1358_v47 = vpack.i.b16 %v1231_v12, %v1215_v18 }
 0x421   : > { %v1568_v37 = vcombine.low %v1274_v29, %v1290_v28  ;;  %v1338_v10 = vpack.i.b16 %v1337_v30, %v1336_v36  ;;  %v1549_v8 = vcombine.high %v8407_v38, %v8420_v27  ;;  %v1350_v22 = vpack.i.b16 %v8358_v11, %v8342_v1 }
 0x422   : > { %2036 = vxpose.xlu1.c.b16.start.end [1/1] (short) (narrow) %v8414_v39, 16  ;;  %v1498_v9 = vcombine.high %v1488_v55, %v7899_v25  ;;  %v1592_v23 = vrot.slane %v1584_v32, %v8291_v63  ;;  %v1428_v57 = vcombine.high %v8378_v13, %v7899_v25  ;;  %v1465_v3 = vcombine.high %v8367_v14, %v8370_v16 }
 0x423   : > { %v1840_v41 = vcombine.low %v1338_v10, %v1354_v59  ;;  %v1334_v12 = vpack.i.b16 %v8326_v48, %v8316_v35  ;;  %v1576_v18 = vrot.slane %v1568_v37, %v8291_v63  ;;  %v1856_v52 = vcombine.low %v8336_v60, %v1362_v51 }
 0x424   : > { %2116 = vxpose.xlu0.c.b16.start.end [1/1] (short) (narrow) %v1495_v56, 16  ;;  %v1841_v1 = vcombine.high %v1338_v10, %v1354_v59  ;;  %v1789_v11 = vcombine.high %v8334_v58, %v1358_v47  ;;  %v1857_v55 = vcombine.high %v8336_v60, %v1362_v51  ;;  %v1499_v13 = vcombine.high %v1495_v56, %v7899_v25 }
 0x425   : > { %v1773_v26 = vcombine.high %v1334_v12, %v1350_v22  ;;  %v1600_v30 = vcombine.low %v1576_v18, %v1592_v23  ;;  %v1585_v14 = vcombine.high %v1282_v43, %v8410_v0  ;;  %v1479_v16 = vrot.slane %v1465_v3, %v8294_v2 }
 0x426   : > { %2100 = vxpose.xlu1.c.b16.start.end [1/1] (short) (narrow) %v1427_v61, 16  ;;  %v8454_v35 = vrot.slane %v1840_v41, %v8291_v63  ;;  %v8457_v48 = vrot.slane %v1856_v52, %v8291_v63  ;;  %v8460_v32 = vrot.slane %v1857_v55, %v8291_v63  ;;  %v1569_v36 = vcombine.high %v1274_v29, %v1290_v28 }
 0x427   : > { %v1772_v59 = vcombine.low %v1334_v12, %v1350_v22  ;;  %v1788_v60 = vcombine.low %v8334_v58, %v1358_v47  ;;  %v8464_v56 = vrot.slane %v1841_v1, %v8291_v63  ;;  %v8467_v43 = vrot.slane %v1789_v11, %v8291_v63 }
 0x428   : > { %2084 = vxpose.xlu0.c.b16.start.end [1/1] (short) (narrow) %v1498_v9, 16  ;;  %v1601_v0 = vcombine.high %v1576_v18, %v1592_v23  ;;  %v1872_v37 = vcombine.low %v8454_v35, %v8457_v48  ;;  %v1873_v51 = vcombine.high %v8454_v35, %v8457_v48  ;;  %v1608_v28 = vrot.slane %v1600_v30, %v8294_v2 }
 0x429   : > { %v1599_v29 = vrot.slane %v1585_v14, %v8291_v63  ;;  %v1888_v58 = vcombine.low %v8464_v56, %v8460_v32  ;;  %v8478_v10 = vrot.slane %v1773_v26, %v8291_v63  ;;  %v1429_v47 = vcombine.high %v8393_v31, %v7899_v25 }
 0x42a   : > { %1940 = vxpose.xlu1.c.b16.start.end [1/1] (short) (narrow) %v1428_v57, 16  ;;  %v1889_v22 = vcombine.high %v8464_v56, %v8460_v32  ;;  %v1583_v9 = vrot.slane %v1569_v36, %v8291_v63  ;;  %v8486_v23 = vrot.slane %v1772_v59, %v8291_v63  ;;  %v8489_v57 = vrot.slane %v1788_v60, %v8291_v63 }
 0x42b   : > { %v1615_v3 = vrot.slane %v1601_v0, %v8294_v2  ;;  %v1820_v41 = vcombine.low %v8478_v10, %v8467_v43  ;;  %v1821_v52 = vcombine.high %v8478_v10, %v8467_v43  ;;  %v1430_v1 = vcombine.high %v8414_v39, %v7899_v25 }
 0x42c   : > { %2148 = vxpose.xlu0.c.b16.start.end [1/1] (short) (narrow) %v1499_v13, 16  ;;  %v1616_v12 = vcombine.low %v1583_v9, %v1599_v29  ;;  %v1804_v31 = vcombine.low %v8486_v23, %v8489_v57  ;;  %v1805_v18 = vcombine.high %v8486_v23, %v8489_v57  ;;  %v1617_v55 = vcombine.high %v1583_v9, %v1599_v29 }
 0x42d   : > { %v1431_v26 = vcombine.high %v1427_v61, %v7899_v25  ;;  %v1329_v13 = vshrl.u32 %v8373_v19, 16  ;;  %v1328_v30 = vshrl.u32 %v8375_v20, 16  ;;  %v1496_v36 = vcombine.high %v8390_v53, %v7899_v25 }
 0x42e   : > { %1988 = vxpose.xlu1.c.b16.start.end [1/1] (short) (narrow) %v1479_v16, 16  ;;  %v1624_v11 = vrot.slane %v1616_v12, %v8294_v2  ;;  %v1631_v14 = vrot.slane %v1617_v55, %v8294_v2  ;;  %v1313_v39 = vshrl.u32 %v8330_v54, 16  ;;  %v1321_v59 = vshrl.u32 %v8344_v4, 16 }
 0x42f   : > { %v1320_v60 = vshrl.u32 %v8338_v62, 16  ;;  %v1305_v61 = vshrl.u32 %v8324_v46, 16  ;;  %v1312_v0 = vshrl.u32 %v8322_v40, 16  ;;  %v1330_v29 = vpack.i.b16 %v1329_v13, %v1328_v30 }
 0x430   : > { %2180 = vxpose.xlu0.c.b16.start.end [1/1] (short) (narrow) %v1608_v28, 16  ;;  %v1497_v9 = vcombine.high %v1479_v16, %v7899_v25  ;;  %v1304_v12 = vshrl.u32 %v8312_v33, 16  ;;  %v1633_v62 = vcombine.high %v1615_v3, %v7899_v25  ;;  %v1540_v46 = vrot.slane %v1532_v17, %v8294_v2 }
 0x431   : > { %v1314_v53 = vpack.i.b16 %v1313_v39, %v1312_v0  ;;  %v1634_v16 = vcombine.high %v1624_v11, %v7899_v25  ;;  %v1635_v13 = vcombine.high %v1631_v14, %v7899_v25  ;;  %v1310_v0 = vpack.i.b16 %v8330_v54, %v8322_v40 }
 0x432   : > { %2004 = vxpose.xlu1.c.b16.start.end [1/1] (short) (narrow) %v1429_v47, 16  ;;  %v1632_v47 = vcombine.high %v1608_v28, %v7899_v25  ;;  %v1306_v4 = vpack.i.b16 %v1305_v61, %v1304_v12  ;;  %v1547_v28 = vrot.slane %v1533_v21, %v8294_v2  ;;  %v1563_v21 = vrot.slane %v1549_v8, %v8294_v2 }
 0x433   : > { %v1720_v55 = vcombine.low %v1314_v53, %v1330_v29  ;;  %v1721_v17 = vcombine.high %v1314_v53, %v1330_v29  ;;  %v1564_v61 = vcombine.high %v1540_v46, %v7899_v25  ;;  %v1644_v40 = vrot.slane %v1636_v7, %v8291_v63 }
 0x434   : > { %2244 = vxpose.xlu0.c.b16.start.end [1/1] (short) (narrow) %v1615_v3, 16  ;;  %v1565_v29 = vcombine.high %v1547_v28, %v7899_v25  ;;  %v1567_v12 = vcombine.high %v1563_v21, %v7899_v25  ;;  %v9409_v7 = vcombine.high %v8348_v5, %v8352_v6  ;;  %v1880_v5 = vrot.slane %v1872_v37, %v8294_v2 }
 0x435   : > { %v1728_v33 = vrot.slane %v1720_v55, %v8291_v63  ;;  %v1735_v15 = vrot.slane %v1721_v17, %v8291_v63  ;;  %v1812_v32 = vrot.slane %v1804_v31, %v8294_v2  ;;  %v1828_v31 = vrot.slane %v1820_v41, %v8294_v2 }
 0x436   : > { %2068 = vxpose.xlu1.c.b16.start.end [1/1] (short) (narrow) %v1430_v1, 16  ;;  %v1322_v1 = vpack.i.b16 %v1321_v59, %v1320_v60  ;;  %v1326_v60 = vpack.i.b16 %v8373_v19, %v8375_v20  ;;  %v1904_v48 = vcombine.high %v1880_v5, %v7899_v25  ;;  %v1835_v23 = vrot.slane %v1821_v52, %v8294_v2 }
 0x437   : > { %v1838_v43 = vcombine.high %v1828_v31, %v7899_v25 }
 0x438   : > { %2308 = vxpose.xlu0.c.b16.start.end [1/1] (short) (narrow) %v1624_v11, 16  ;;  %v1556_v11 = vrot.slane %v1548_v24, %v8294_v2  ;;  %v1652_v27 = vcombine.low %v1310_v0, %v1326_v60  ;;  %v1653_v20 = vcombine.high %v1310_v0, %v1326_v60 }
 0x43a   : > { %2132 = vxpose.xlu1.c.b16.start.end [1/1] (short) (narrow) %v1431_v26, 16  ;;  %v1704_v26 = vcombine.low %v1306_v4, %v1322_v1  ;;  %v1660_v19 = vrot.slane %v1652_v27, %v8291_v63  ;;  %v1667_v55 = vrot.slane %v1653_v20, %v8291_v63 }
 0x43c   : > { %2372 = vxpose.xlu0.c.b16.start.end [1/1] (short) (narrow) %v1631_v14, 16  ;;  %v1712_v3 = vrot.slane %v1704_v26, %v8291_v63  ;;  %v1668_v53 = vcombine.low %v1644_v40, %v1660_v19 }
 0x43e   : > { %1956 = vxpose.xlu1.c.b16.start.end [1/1] (short) (narrow) %v1496_v36, 16  ;;  %v1736_v30 = vcombine.low %v1712_v3, %v1728_v33  ;;  %v1705_v36 = vcombine.high %v1306_v4, %v1322_v1  ;;  %v1737_v45 = vcombine.high %v1712_v3, %v1728_v33  ;;  %v1676_v4 = vrot.slane %v1668_v53, %v8294_v2 }
 0x440   : > { %2212 = vxpose.xlu0.c.b16.start.end [1/1] (short) (narrow) %v1632_v47, 16  ;;  %v1744_v39 = vrot.slane %v1736_v30, %v8294_v2  ;;  %v1719_v14 = vrot.slane %v1705_v36, %v8291_v63  ;;  %v1751_v59 = vrot.slane %v1737_v45, %v8294_v2  ;;  %v1887_v30 = vrot.slane %v1873_v51, %v8294_v2 }
 0x441   : > { %v1700_v17 = vcombine.high %v1676_v4, %v7899_v25  ;;  %v1903_v36 = vrot.slane %v1889_v22, %v8294_v2 }
 0x442   : > { %2020 = vxpose.xlu1.c.b16.start.end [1/1] (short) (narrow) %v1497_v9, 16  ;;  %v1752_v24 = vcombine.low %v1719_v14, %v1735_v15  ;;  %v1753_v8 = vcombine.high %v1719_v14, %v1735_v15  ;;  %v1566_v9 = vcombine.high %v1556_v11, %v7899_v25  ;;  %v1768_v54 = vcombine.high %v1744_v39, %v7899_v25 }
 0x443   : > { %v1769_v1 = vcombine.high %v1751_v59, %v7899_v25  ;;  %v1819_v14 = vrot.slane %v1805_v18, %v8294_v2  ;;  %v1836_v18 = vcombine.high %v1812_v32, %v7899_v25 }
 0x444   : > { %2276 = vxpose.xlu0.c.b16.start.end [1/1] (short) (narrow) %v1633_v62, 16  ;;  %v1760_v38 = vrot.slane %v1752_v24, %v8294_v2  ;;  %v1767_v47 = vrot.slane %v1753_v8, %v8294_v2  ;;  %v1669_v62 = vcombine.high %v1644_v40, %v1660_v19 }
 0x445   : > { %v1837_v41 = vcombine.high %v1819_v14, %v7899_v25 }
 0x446   : > { %2164 = vxpose.xlu1.c.b16.start.end [1/1] (short) (narrow) %v1540_v46, 16  ;;  %v1651_v46 = vrot.slane %v9409_v7, %v8291_v63  ;;  %v1770_v26 = vcombine.high %v1760_v38, %v7899_v25 }
 0x448   : > { %2340 = vxpose.xlu0.c.b16.start.end [1/1] (short) (narrow) %v1634_v16, 16  ;;  %v1683_v16 = vrot.slane %v1669_v62, %v8294_v2  ;;  %v1684_v33 = vcombine.low %v1651_v46, %v1667_v55 }
 0x44a   : > { %2228 = vxpose.xlu1.c.b16.start.end [1/1] (short) (narrow) %v1547_v28, 16  ;;  %v1771_v28 = vcombine.high %v1767_v47, %v7899_v25  ;;  %v1692_v3 = vrot.slane %v1684_v33, %v8294_v2  ;;  %v1701_v37 = vcombine.high %v1683_v16, %v7899_v25 }
 0x44c   : > { %2404 = vxpose.xlu0.c.b16.start.end [1/1] (short) (narrow) %v1635_v13, 16  ;;  %v1685_v13 = vcombine.high %v1651_v46, %v1667_v55  ;;  %v1702_v35 = vcombine.high %v1692_v3, %v7899_v25 }
 0x44e   : > { %2292 = vxpose.xlu1.c.b16.start.end [1/1] (short) (narrow) %v1556_v11, 16  ;;  %v1699_v6 = vrot.slane %v1685_v13, %v8294_v2  ;;  %v1896_v11 = vrot.slane %v1888_v58, %v8294_v2  ;;  %v1905_v58 = vcombine.high %v1887_v30, %v7899_v25 }
 0x450   : > { %2436 = vxpose.xlu0.c.b16.start.end [1/1] (short) (narrow) %v1744_v39, 16  ;;  %v1703_v39 = vcombine.high %v1699_v6, %v7899_v25  ;;  %v1906_v56 = vcombine.high %v1896_v11, %v7899_v25 }
 0x452   : > { %2356 = vxpose.xlu1.c.b16.start.end [1/1] (short) (narrow) %v1563_v21, 16 }
 0x454   : > { %2500 = vxpose.xlu0.c.b16.start.end [1/1] (short) (narrow) %v1751_v59, 16  ;;  %v1907_v59 = vcombine.high %v1903_v36, %v7899_v25 }
 0x456   : > { %2196 = vxpose.xlu1.c.b16.start.end [1/1] (short) (narrow) %v1564_v61, 16 }
 0x458   : > { %2564 = vxpose.xlu0.c.b16.start.end [1/1] (short) (narrow) %v1760_v38, 16 }
 0x45a   : > { %2260 = vxpose.xlu1.c.b16.start.end [1/1] (short) (narrow) %v1565_v29, 16 }
 0x45c   : > { %2628 = vxpose.xlu0.c.b16.start.end [1/1] (short) (narrow) %v1767_v47, 16  ;;  %v9383_v47 = vsub.s32 2, %v8268_v42 }
 0x45e   : > { %2324 = vxpose.xlu1.c.b16.start.end [1/1] (short) (narrow) %v1566_v9, 16  ;;  %v615_v52 = vrot.slane %v8274_v44, %v9383_v47 }
 0x460   : > { %2468 = vxpose.xlu0.c.b16.start.end [1/1] (short) (narrow) %v1768_v54, 16  ;;  %v1839_v54 = vcombine.high %v1835_v23, %v7899_v25  ;;  %v8626_v7 = vadd.f32 %v8283_v49, %v615_v52 }
 0x462   : > { %2388 = vxpose.xlu1.c.b16.start.end [1/1] (short) (narrow) %v1567_v12, 16 }
 0x464   : > { %2532 = vxpose.xlu0.c.b16.start.end [1/1] (short) (narrow) %v1769_v1, 16 }
 0x466   : > { %2420 = vxpose.xlu1.c.b16.start.end [1/1] (short) (narrow) %v1676_v4, 16 }
 0x468   : > { %2596 = vxpose.xlu0.c.b16.start.end [1/1] (short) (narrow) %v1770_v26, 16 }
 0x46a   : > { %2484 = vxpose.xlu1.c.b16.start.end [1/1] (short) (narrow) %v1683_v16, 16 }
 0x46c   : > { %2660 = vxpose.xlu0.c.b16.start.end [1/1] (short) (narrow) %v1771_v28, 16 }
 0x46e   : > { %2548 = vxpose.xlu1.c.b16.start.end [1/1] (short) (narrow) %v1692_v3, 16 }
 0x470   : > { %2692 = vxpose.xlu0.c.b16.start.end [1/1] (short) (narrow) %v1880_v5, 16 }
 0x472   : > { %2612 = vxpose.xlu1.c.b16.start.end [1/1] (short) (narrow) %v1699_v6, 16 }
 0x474   : > { %2756 = vxpose.xlu0.c.b16.start.end [1/1] (short) (narrow) %v1887_v30, 16 }
 0x476   : > { %2452 = vxpose.xlu1.c.b16.start.end [1/1] (short) (narrow) %v1700_v17, 16 }
 0x478   : > { %2820 = vxpose.xlu0.c.b16.start.end [1/1] (short) (narrow) %v1896_v11, 16 }
 0x47a   : > { %2516 = vxpose.xlu1.c.b16.start.end [1/1] (short) (narrow) %v1701_v37, 16 }
 0x47c   : > { %2884 = vxpose.xlu0.c.b16.start.end [1/1] (short) (narrow) %v1903_v36, 16 }
 0x47e   : > { %2580 = vxpose.xlu1.c.b16.start.end [1/1] (short) (narrow) %v1702_v35, 16 }
 0x480   : > { %v1916_v51 = vpop.trf.xlu1  ;;  %2724 = vxpose.xlu0.c.b16.start.end [1/1] (short) (narrow) %v1904_v48, 16 }
 0x482   : > { %2644 = vxpose.xlu1.c.b16.start.end [1/1] (short) (narrow) %v1703_v39, 16  ;;  %v8592_v45 = vpop.trf.xlu0 }
 0x484   : > { %v1980_v15 = vpop.trf.xlu1  ;;  %2788 = vxpose.xlu0.c.b16.start.end [1/1] (short) (narrow) %v1905_v58, 16 }
 0x485   : > { %v2932_v4 = vcombine.low %v1916_v51, %v1980_v15 }
 0x486   : > { %2676 = vxpose.xlu1.c.b16.start.end [1/1] (short) (narrow) %v1812_v32, 16  ;;  %v2060_v22 = vpop.trf.xlu0 }
 0x487   : > { %v2939_v28 = vrot.slane %v2932_v4, %v8291_v63 }
 0x488   : > { %v2044_v21 = vpop.trf.xlu1  ;;  %2852 = vxpose.xlu0.c.b16.start.end [1/1] (short) (narrow) %v1906_v56, 16 }
 0x48a   : > { %2740 = vxpose.xlu1.c.b16.start.end [1/1] (short) (narrow) %v1819_v14, 16  ;;  %v2124_v24 = vpop.trf.xlu0 }
 0x48b   : > { %v2997_v40 = vcombine.low %v2060_v22, %v2124_v24 }
 0x48c   : > { %v2108_v60 = vpop.trf.xlu1  ;;  %2916 = vxpose.xlu0.c.b16.start.end [1/1] (short) (narrow) %v1907_v59, 16 }
 0x48d   : > { %v2948_v20 = vcombine.low %v2044_v21, %v2108_v60  ;;  %v3004_v16 = vrot.slane %v2997_v40, %v8291_v63 }
 0x48e   : > { %2804 = vxpose.xlu1.c.b16.start.end [1/1] (short) (narrow) %v1828_v31, 16  ;;  %v2092_v61 = vpop.trf.xlu0 }
 0x48f   : > { %v2955_v26 = vrot.slane %v2948_v20, %v8291_v63 }
 0x490   : > { %v1948_v0 = vpop.trf.xlu1 }
 0x492   : > { %2868 = vxpose.xlu1.c.b16.start.end [1/1] (short) (narrow) %v1835_v23, 16  ;;  %v2156_v57 = vpop.trf.xlu0 }
 0x493   : > { %v3005_v1 = vcombine.low %v2092_v61, %v2156_v57  ;;  %v9410_v61 = vmov 0.0  }
 0x494   : > { %v1996_v38 = vpop.trf.xlu1 }
 0x495   : > { %v3012_v33 = vrot.slane %v3005_v1, %v8291_v63  ;;  %v2981_v3 = vcombine.low %v8592_v45, %v1996_v38 }
 0x496   : > { %2708 = vxpose.xlu1.c.b16.start.end [1/1] (short) (narrow) %v1836_v18, 16  ;;  %v8613_v8 = vpop.trf.xlu0 }
 0x497   : > { %v3021_v17 = vcombine.low %v3004_v16, %v3012_v33  ;;  %v2988_v11 = vrot.slane %v2981_v3, %v8291_v63 }
 0x498   : > { %v2012_v27 = vpop.trf.xlu1 }
 0x499   : > { %v2940_v12 = vcombine.low %v1948_v0, %v2012_v27  ;;  %v3028_v58 = vrot.slane %v3021_v17, %v8294_v2 }
 0x49a   : > { %2772 = vxpose.xlu1.c.b16.start.end [1/1] (short) (narrow) %v1837_v41, 16  ;;  %v8616_v29 = vpop.trf.xlu0 }
 0x49b   : > { %v2947_v44 = vrot.slane %v2940_v12, %v8291_v63  ;;  %v3079_v38 = vcombine.low %v8613_v8, %v8616_v29 }
 0x49c   : > { %v2076_v9 = vpop.trf.xlu1 }
 0x49d   : > { %v2964_v6 = vcombine.low %v2939_v28, %v2947_v44 }
 0x49e   : > { %2836 = vxpose.xlu1.c.b16.start.end [1/1] (short) (narrow) %v1838_v43, 16  ;;  %v2316_v10 = vpop.trf.xlu0 }
 0x49f   : > { %v2971_v51 = vrot.slane %v2964_v6, %v8294_v2 }
 0x4a0   : > { %v2140_v19 = vpop.trf.xlu1 }
 0x4a1   : > { %v2956_v53 = vcombine.low %v2076_v9, %v2140_v19  ;;  %v3086_v19 = vrot.slane %v3079_v38, %v8291_v63 }
 0x4a2   : > { %2900 = vxpose.xlu1.c.b16.start.end [1/1] (short) (narrow) %v1839_v54, 16  ;;  %v2380_v55 = vpop.trf.xlu0 }
 0x4a3   : > { %v2963_v62 = vrot.slane %v2956_v53, %v8291_v63  ;;  %v3095_v27 = vcombine.low %v2316_v10, %v2380_v55 }
 0x4a4   : > { %v1964_v46 = vpop.trf.xlu1 }
 0x4a5   : > { %v2972_v13 = vcombine.low %v2955_v26, %v2963_v62  ;;  %v3102_v40 = vrot.slane %v3095_v27, %v8291_v63 }
 0x4a6   : > { %969 = vrot.lane.b32.xlu1 %v8626_v7, %s7901_s29  ;;  %v2220_v5 = vpop.trf.xlu0 }
 0x4a7   : > { %v2979_v37 = vrot.slane %v2972_v13, %v8294_v2 }
 0x4a8   : > { %v2028_v49 = vpop.trf.xlu1 }
 0x4a9   : > { %v2989_v30 = vcombine.low %v1964_v46, %v2028_v49  ;;  %v2980_v15 = vcombine.low %v2971_v51, %v2979_v37 }
 0x4aa   : > { %v2284_v35 = vpop.trf.xlu0 }
 0x4ab   : > { %v2996_v36 = vrot.slane %v2989_v30, %v8291_v63  ;;  %v3328_v59 = vshrl.u32 %v2980_v15, 16  ;;  %v3087_v41 = vcombine.low %v2220_v5, %v2284_v35 }
 0x4ac   : > { %v2172_v48 = vpop.trf.xlu1 }
 0x4ad   : > { %v3013_v39 = vcombine.low %v2988_v11, %v2996_v36  ;;  %v3094_v54 = vrot.slane %v3087_v41, %v8291_v63 }
 0x4ae   : > { %v2348_v32 = vpop.trf.xlu0 }
 0x4af   : > { %v3020_v45 = vrot.slane %v3013_v39, %v8294_v2  ;;  %v3111_v62 = vcombine.low %v3086_v19, %v3094_v54 }
 0x4b0   : > { %v2236_v56 = vpop.trf.xlu1 }
 0x4b1   : > { %v3029_v22 = vcombine.low %v3020_v45, %v3028_v58  ;;  %v3030_v4 = vcombine.low %v2172_v48, %v2236_v56  ;;  %v3118_v44 = vrot.slane %v3111_v62, %v8294_v2 }
 0x4b2   : > { %v2412_v14 = vpop.trf.xlu0 }
 0x4b3   : > { %v3326_v21 = vpack.i.b16 %v3029_v22, %v2980_v15  ;;  %v3329_v24 = vshrl.u32 %v3029_v22, 16  ;;  %v3103_v9 = vcombine.low %v2348_v32, %v2412_v14  ;;  %v3037_v26 = vrot.slane %v3030_v4, %v8291_v63 }
 0x4b4   : > { %v2300_v60 = vpop.trf.xlu1 }
 0x4b5   : > { %7282 = vmatpush3.bf16.msra.mxu1 %v3326_v21  ;;  %v8642_v31 = vpack.i.b16 %v3329_v24, %v3328_v59  ;;  %v3110_v20 = vrot.slane %v3103_v9, %v8291_v63 }
 0x4b6   : > { %7283 = vmatprep.subr.bf16.mxu1 %v9410_v61  ;;  %v2444_v0 = vpop.trf.xlu0 }
 0x4b7   : > { %v3119_v46 = vcombine.low %v3102_v40, %v3110_v20 }
 0x4b8   : > { %v2364_v23 = vpop.trf.xlu1 }
 0x4b9   : > { %v3046_v8 = vcombine.low %v2300_v60, %v2364_v23  ;;  %v3126_v33 = vrot.slane %v3119_v46, %v8294_v2 }
 0x4ba   : > { %v2508_v57 = vpop.trf.xlu0 }
 0x4bb   : > { %v3053_v28 = vrot.slane %v3046_v8, %v8291_v63  ;;  %v3127_v30 = vcombine.low %v3118_v44, %v3126_v33  ;;  %v3177_v14 = vcombine.low %v2444_v0, %v2508_v57 }
 0x4bc   : > { %v2204_v18 = vpop.trf.xlu1 }
 0x4bd   : > { %v3337_v48 = vshrl.u32 %v3127_v30, 16  ;;  %v3184_v38 = vrot.slane %v3177_v14, %v8291_v63 }
 0x4be   : > { %v2572_v43 = vpop.trf.xlu0 }
 0x4c0   : > { %v2268_v52 = vpop.trf.xlu1 }
 0x4c1   : > { %v3038_v12 = vcombine.low %v2204_v18, %v2268_v52 }
 0x4c2   : > { %v2636_v53 = vpop.trf.xlu0 }
 0x4c3   : > { %v3045_v29 = vrot.slane %v3038_v12, %v8291_v63  ;;  %v3193_v24 = vcombine.low %v2572_v43, %v2636_v53 }
 0x4c4   : > { %v2332_v1 = vpop.trf.xlu1 }
 0x4c5   : > { %v3062_v3 = vcombine.low %v3037_v26, %v3045_v29  ;;  %v3200_v41 = vrot.slane %v3193_v24, %v8291_v63 }
 0x4c6   : > { %v2476_v10 = vpop.trf.xlu0 }
 0x4c7   : > { %v3069_v17 = vrot.slane %v3062_v3, %v8294_v2 }
 0x4c8   : > { %v2396_v55 = vpop.trf.xlu1 }
 0x4c9   : > { %v3054_v16 = vcombine.low %v2332_v1, %v2396_v55 }
 0x4ca   : > { %v2540_v5 = vpop.trf.xlu0 }
 0x4cb   : > { %v3061_v13 = vrot.slane %v3054_v16, %v8291_v63  ;;  %v3185_v59 = vcombine.low %v2476_v10, %v2540_v5  ;;  %v847_v5 = vcombine.high %v8314_v34, %v9410_v61 }
 0x4cc   : > { %v2428_v49 = vpop.trf.xlu1 }
 0x4cd   : > { %v3070_v6 = vcombine.low %v3053_v28, %v3061_v13  ;;  %v3192_v27 = vrot.slane %v3185_v59, %v8291_v63 }
 0x4ce   : > { %v2604_v37 = vpop.trf.xlu0 }
 0x4cf   : > { %v3077_v11 = vrot.slane %v3070_v6, %v8294_v2  ;;  %v3209_v20 = vcombine.low %v3184_v38, %v3192_v27  ;;  %v832_v6 = vcombine.high %v8285_v50, %v9410_v61 }
 0x4d0   : > { %v2492_v36 = vpop.trf.xlu1 }
 0x4d1   : > { %v3078_v35 = vcombine.low %v3069_v17, %v3077_v11  ;;  %v3128_v54 = vcombine.low %v2428_v49, %v2492_v36  ;;  %v3216_v4 = vrot.slane %v3209_v20, %v8294_v2  ;;  %v861_v17 = vrot.slane %v847_v5, %v8291_v63 }
 0x4d2   : > { %v2668_v39 = vpop.trf.xlu0  ;;  %v854_v36 = vrot.slane %v8314_v34, %v8291_v63 }
 0x4d3   : > { %v3334_v51 = vpack.i.b16 %v3127_v30, %v3078_v35  ;;  %v3336_v58 = vshrl.u32 %v3078_v35, 16  ;;  %v3201_v60 = vcombine.low %v2604_v37, %v2668_v39  ;;  %v3135_v53 = vrot.slane %v3128_v54, %v8291_v63 }
 0x4d4   : > { %v2556_v45 = vpop.trf.xlu1  ;;  %v846_v37 = vrot.slane %v832_v6, %v8291_v63 }
 0x4d5   : > { %7284 = vmatpush3.bf16.msra.mxu1 %v3334_v51  ;;  %v8659_v15 = vpack.i.b16 %v3337_v48, %v3336_v58  ;;  %v3208_v52 = vrot.slane %v3201_v60, %v8291_v63  ;;  %v839_v48 = vrot.slane %v8285_v50, %v8291_v63 }
 0x4d6   : > { %7285 = vmatprep.subr.bf16.mxu1 %v9410_v61  ;;  %v8662_v32 = vpop.trf.xlu0  ;;  %v878_v51 = vcombine.low %v846_v37, %v861_v17  ;;  %v879_v39 = vcombine.high %v846_v37, %v861_v17 }
 0x4d7   : > { %v3217_v43 = vcombine.low %v3200_v41, %v3208_v52  ;;  %v862_v58 = vcombine.low %v839_v48, %v854_v36 }
 0x4d8   : > { %v2620_v56 = vpop.trf.xlu1  ;;  %v886_v14 = vrot.slane %v878_v51, %v8294_v2  ;;  %v893_v59 = vrot.slane %v879_v39, %v8294_v2 }
 0x4d9   : > { %v3144_v0 = vcombine.low %v2556_v45, %v2620_v56  ;;  %v3224_v10 = vrot.slane %v3217_v43, %v8294_v2  ;;  %v863_v45 = vcombine.high %v839_v48, %v854_v36  ;;  %v870_v38 = vrot.slane %v862_v58, %v8294_v2 }
 0x4da   : > { %v8664_v22 = vpop.trf.xlu0  ;;  %v896_v41 = vcombine.high %v886_v14, %v9410_v61 }
 0x4db   : > { %v3151_v46 = vrot.slane %v3144_v0, %v8291_v63  ;;  %v8680_v33 = vcombine.low %v3216_v4, %v3224_v10  ;;  %v3275_v24 = vcombine.low %v8662_v32, %v8664_v22  ;;  %v877_v50 = vrot.slane %v863_v45, %v8294_v2 }
 0x4dc   : > { %v2460_v21 = vpop.trf.xlu1 }
 0x4dd   : > { %v3282_v52 = vrot.slane %v3275_v24, %v8291_v63  ;;  %v3345_v24 = vshrl.u32 %v8680_v33, 16 }
 0x4de   : > { %v8666_v23 = vpop.trf.xlu0 }
 0x4e0   : > { %v2524_v18 = vpop.trf.xlu1 }
 0x4e1   : > { %v3136_v9 = vcombine.low %v2460_v21, %v2524_v18 }
 0x4e2   : > { %v2892_v40 = vpop.trf.xlu0 }
 0x4e3   : > { %v3143_v57 = vrot.slane %v3136_v9, %v8291_v63  ;;  %v3291_v34 = vcombine.low %v8666_v23, %v2892_v40  ;;  %v897_v9 = vcombine.high %v893_v59, %v9410_v61  ;;  %v894_v23 = vcombine.high %v870_v38, %v9410_v61 }
 0x4e4   : > { %v2588_v19 = vpop.trf.xlu1  ;;  %v895_v40 = vcombine.high %v877_v50, %v9410_v61 }
 0x4e5   : > { %v3160_v8 = vcombine.low %v3135_v53, %v3143_v57  ;;  %v3298_v54 = vrot.slane %v3291_v34, %v8291_v63  ;;  %v7085_v57 = vpack.c.bf16 %v896_v41, %v894_v23 }
 0x4e6   : > { %v2732_v62 = vpop.trf.xlu0  ;;  %v7086_v43 = vpack.c.bf16 %v897_v9, %v895_v40 }
 0x4e7   : > { %v3167_v44 = vrot.slane %v3160_v8, %v8294_v2 }
 0x4e8   : > { %v2652_v12 = vpop.trf.xlu1 }
 0x4e9   : > { %v3152_v1 = vcombine.low %v2588_v19, %v2652_v12 }
 0x4ea   : > { %v2796_v3 = vpop.trf.xlu0 }
 0x4eb   : > { %v3159_v29 = vrot.slane %v3152_v1, %v8291_v63  ;;  %v3283_v60 = vcombine.low %v2732_v62, %v2796_v3  ;;  %v7083_v62 = vpack.c.bf16 %v886_v14, %v870_v38 }
 0x4ec   : > { %v2684_v55 = vpop.trf.xlu1 }
 0x4ed   : > { %v3168_v26 = vcombine.low %v3151_v46, %v3159_v29  ;;  %v3290_v19 = vrot.slane %v3283_v60, %v8291_v63  ;;  %v7084_v46 = vpack.c.bf16 %v893_v59, %v877_v50 }
 0x4ee   : > { %v2860_v11 = vpop.trf.xlu0 }
 0x4ef   : > { %v3175_v16 = vrot.slane %v3168_v26, %v8294_v2  ;;  %v3307_v12 = vcombine.low %v3282_v52, %v3290_v19  ;;  %v1085_v26 = vrot.slane %v7085_v57, %v8291_v63  ;;  %v1069_v6 = vrot.slane %v7084_v46, %v8291_v63 }
 0x4f0   : > { %v2748_v28 = vpop.trf.xlu1 }
 0x4f1   : > { %v8682_v13 = vcombine.low %v3167_v44, %v3175_v16  ;;  %v3226_v0 = vcombine.low %v2684_v55, %v2748_v28  ;;  %v1093_v44 = vrot.slane %v7086_v43, %v8291_v63  ;;  %v3314_v16 = vrot.slane %v3307_v12, %v8294_v2 }
 0x4f2   : > { %v2924_v21 = vpop.trf.xlu0 }
 0x4f3   : > { %v3342_v49 = vpack.i.b16 %v8680_v33, %v8682_v13  ;;  %v3299_v18 = vcombine.low %v2860_v11, %v2924_v21  ;;  %v3233_v29 = vrot.slane %v3226_v0, %v8291_v63  ;;  %v1094_v17 = vcombine.low %v1085_v26, %v1093_v44 }
 0x4f4   : > { %v2812_v30 = vpop.trf.xlu1  ;;  %v979_v21 = vrot.slane %v8626_v7, %v8291_v63  ;;  %v3344_v59 = vshrl.u32 %v8682_v13, 16 }
 0x4f5   : > { %7286 = vmatpush3.bf16.msra.mxu1 %v3342_v49  ;;  %v3306_v22 = vrot.slane %v3299_v18, %v8291_v63  ;;  %v1061_v49 = vrot.slane %v7083_v62, %v8291_v63  ;;  %v1101_v51 = vrot.slane %v1094_v17, %v8294_v2 }
 0x4f6   : > { %7287 = vmatprep.subr.bf16.mxu1 %v9410_v61  ;;  %v3346_v18 = vpack.i.b16 %v3345_v24, %v3344_v59 }
 0x4f7   : > { %v3315_v4 = vcombine.low %v3298_v54, %v3306_v22  ;;  %v1106_v33 = vshrl.u32 %v1101_v51, 16 }
 0x4f8   : > { %v2876_v35 = vpop.trf.xlu1 }
 0x4f9   : > { %v3242_v53 = vcombine.low %v2812_v30, %v2876_v35  ;;  %v3322_v5 = vrot.slane %v3315_v4, %v8294_v2  ;;  %v1070_v35 = vcombine.low %v1061_v49, %v1069_v6 }
 0x4fb   : > { %v3249_v55 = vrot.slane %v3242_v53, %v8291_v63  ;;  %v3323_v36 = vcombine.low %v3314_v16, %v3322_v5  ;;  %v1077_v58 = vrot.slane %v1070_v35, %v8294_v2 }
 0x4fc   : > { %v2716_v56 = vpop.trf.xlu1 }
 0x4fd   : > { %v1104_v45 = vpack.i.b16 %v1101_v51, %v1077_v58 }
 0x500   : > { %v2780_v27 = vpop.trf.xlu1 }
 0x501   : > { %v3234_v32 = vcombine.low %v2716_v56, %v2780_v27  ;;  %v3353_v27 = vshrl.u32 %v3323_v36, 16 }
 0x503   : > { %v3241_v1 = vrot.slane %v3234_v32, %v8291_v63  ;;  %v972_v32 = vcombine.high %v8626_v7, %v9410_v61 }
 0x504   : > { %v2844_v20 = vpop.trf.xlu1 }
 0x505   : > { %v3258_v28 = vcombine.low %v3233_v29, %v3241_v1 }
 0x507   : > { %v3265_v11 = vrot.slane %v3258_v28, %v8294_v2 }
 0x508   : > { %v2908_v8 = vpop.trf.xlu1 }
 0x509   : > { %v3250_v10 = vcombine.low %v2844_v20, %v2908_v8  ;;  %v986_v20 = vrot.slane %v972_v32, %v8291_v63 }
 0x50b   : > { %v3257_v3 = vrot.slane %v3250_v10, %v8291_v63 }
 0x50d   : > { %v3266_v30 = vcombine.low %v3249_v55, %v3257_v3 }
 0x50f   : > { %v3273_v37 = vrot.slane %v3266_v30, %v8294_v2 }
 0x511   : > { %v3274_v48 = vcombine.low %v3265_v11, %v3273_v37 }
 0x513   : > { %v3350_v39 = vpack.i.b16 %v3323_v36, %v3274_v48  ;;  %v3352_v50 = vshrl.u32 %v3274_v48, 16 }
 0x515   : > { %7288 = vmatpush3.bf16.msra.mxu1 %v3350_v39  ;;  %v3354_v13 = vpack.i.b16 %v3353_v27, %v3352_v50 }
 0x516   : > { %7293 = vmatprep.subr.bf16.mxu1 %v9410_v61 }
 0x518   : > { %v970_v56 = vpop.permute.xlu1 %969  ;;  %7290 = vmatmul.mubr.msk.bf16.vlgmr.msra.gmra.mrb[4].mxu1 %vm3356_vm1, %v1104_v45 }
 0x519   : > { %v994_v14 = vrot.slane %v970_v56, %v8291_v63  ;;  %7294 = vmatpush3.bf16.msra.mxu1 %v8642_v31  ;;  %7301 = vmatprep.mubr.msk.bf16.mxu1 %vm7900_vm0, %v9410_v61  ;;  %v987_v54 = vcombine.high %v970_v56, %v9410_v61 }
 0x51a   : > { %7295 = vmatprep.subr.bf16.mxu1 %v9410_v61 }
 0x51b   : > { %v1002_v60 = vcombine.low %v979_v21, %v994_v14  ;;  %v1003_v9 = vcombine.high %v979_v21, %v994_v14  ;;  %v1001_v23 = vrot.slane %v987_v54, %v8291_v63 }
 0x51d   : > { %7296 = vmatpush3.bf16.msra.mxu1 %v8659_v15  ;;  %v1010_v34 = vrot.slane %v1002_v60, %v8294_v2  ;;  %v1105_v15 = vshrl.u32 %v1077_v58, 16  ;;  %v1017_v19 = vrot.slane %v1003_v9, %v8294_v2  ;;  %v1018_v57 = vcombine.low %v986_v20, %v1001_v23 }
 0x51e   : > { %7297 = vmatprep.subr.bf16.mxu1 %v9410_v61  ;;  %v1019_v4 = vcombine.high %v986_v20, %v1001_v23 }
 0x51f   : > { %v3479_v38 = vpack.c.bf16 %v1010_v34, %v1010_v34  ;;  %v1034_v31 = vcombine.high %v1010_v34, %v9410_v61  ;;  %v1107_v52 = vpack.i.b16 %v1106_v33, %v1105_v15  ;;  %v1035_v22 = vcombine.high %v1017_v19, %v9410_v61 }
 0x520   : > { %v3481_v40 = vpack.c.bf16 %v1017_v19, %v1017_v19  ;;  %v1026_v43 = vrot.slane %v1018_v57, %v8294_v2  ;;  %v1033_v7 = vrot.slane %v1019_v4, %v8294_v2 }
 0x521   : > { %3487 = vxpose.xlu0.c.b16.start.end [1/1] (short) (narrow) %v3479_v38, 64  ;;  %v3480_v41 = vpack.c.bf16 %v1034_v31, %v1034_v31  ;;  %7298 = vmatpush3.bf16.msra.mxu1 %v3346_v18  ;;  %v3482_v0 = vpack.c.bf16 %v1035_v22, %v1035_v22 }
 0x522   : > { %7299 = vmatprep.subr.bf16.mxu1 %v9410_v61  ;;  %v1036_v12 = vcombine.high %v1026_v43, %v9410_v61  ;;  %v3483_v53 = vpack.c.bf16 %v1026_v43, %v1026_v43  ;;  %v1037_v62 = vcombine.high %v1033_v7, %v9410_v61  ;;  %v3485_v46 = vpack.c.bf16 %v1033_v7, %v1033_v7 }
 0x523   : > { %3503 = vxpose.xlu1.c.b16.start.end [1/1] (short) (narrow) %v3480_v41, 64 }
 0x524   : > { %v3484_v1 = vpack.c.bf16 %v1036_v12, %v1036_v12  ;;  %v3486_v8 = vpack.c.bf16 %v1037_v62, %v1037_v62 }
 0x525   : > { %7300 = vmatpush3.bf16.msra.mxu1 %v3354_v13 }
 0x528   : > { %7302 = vmatmul.mubr.msk.bf16.vlgmr.msra.gmra.mrb[8].mxu1 %vm3356_vm1, %v1107_v52 }
 0x52e   : > { %3519 = vxpose.xlu0.c.b16.start.end [1/1] (short) (narrow) %v3481_v40, 64 }
 0x530   : > { %3535 = vxpose.xlu1.c.b16.start.end [1/1] (short) (narrow) %v3482_v0, 64 }
 0x53b   : > { %3551 = vxpose.xlu0.c.b16.start.end [1/1] (short) (narrow) %v3483_v53, 64 }
 0x53d   : > { %3567 = vxpose.xlu1.c.b16.start.end [1/1] (short) (narrow) %v3484_v1, 64 }
 0x548   : > { %3583 = vxpose.xlu0.c.b16.start.end [1/1] (short) (narrow) %v3485_v46, 64 }
 0x54a   : > { %3599 = vxpose.xlu1.c.b16.start.end [1/1] (short) (narrow) %v3486_v8, 64 }
 0x587   : > { %v3495_v29 = vpop.trf.xlu0 }
 0x588   : > { %v3619_v13 = vshrl.u32 %v3495_v29, 16 }
 0x589   : > { %v3511_v10 = vpop.trf.xlu1 }
 0x58a   : > { %v3620_v33 = vshrl.u32 %v3511_v10, 16  ;;  %v8790_v43 = vpack.i.b16 %v3511_v10, %v3495_v29 }
 0x58b   : > { %v8754_v26 = vpop.trf.xlu0 }
 0x58c   : > { %v8798_v4 = vpack.i.b16 %v3620_v33, %v3619_v13 }
 0x58d   : > { %v8756_v44 = vpop.trf.xlu1 }
 0x58f   : > { %v3497_v16 = vpop.trf.xlu0 }
 0x590   : > { %v3683_v18 = vshrl.u32 %v3497_v16, 16 }
 0x591   : > { %v3513_v55 = vpop.trf.xlu1 }
 0x592   : > { %v3684_v34 = vshrl.u32 %v3513_v55, 16  ;;  %v8778_v27 = vpack.i.b16 %v3513_v55, %v3497_v16 }
 0x593   : > { %v3498_v28 = vpop.trf.xlu0 }
 0x594   : > { %v8782_v15 = vpack.i.b16 %v3684_v34, %v3683_v18  ;;  %v3715_v20 = vshrl.u32 %v3498_v28, 16 }
 0x595   : > { %v3514_v3 = vpop.trf.xlu1 }
 0x596   : > { %v3716_v40 = vshrl.u32 %v3514_v3, 16  ;;  %v8800_v7 = vpack.i.b16 %v3514_v3, %v3498_v28 }
 0x597   : > { %v8758_v5 = vpop.trf.xlu0 }
 0x598   : > { %v3627_v29 = vshrl.u32 %v8758_v5, 16 }
 0x599   : > { %v8760_v49 = vpop.trf.xlu1 }
 0x59a   : > { %v3628_v16 = vshrl.u32 %v8760_v49, 16 }
 0x59b   : > { %v8762_v6 = vpop.trf.xlu0 }
 0x59c   : > { %v3629_v34 = vpack.i.b16 %v3628_v16, %v3627_v29 }
 0x59d   : > { %v8764_v30 = vpop.trf.xlu1 }
 0x59f   : > { %v3529_v17 = vpop.trf.xlu0 }
 0x5a0   : > { %v3691_v11 = vshrl.u32 %v3529_v17, 16 }
 0x5a1   : > { %v3545_v37 = vpop.trf.xlu1 }
 0x5a2   : > { %v3692_v36 = vshrl.u32 %v3545_v37, 16  ;;  %v8766_v35 = vpack.i.b16 %v3545_v37, %v3529_v17  ;;  %v8808_v17 = vpack.i.b16 %v3716_v40, %v3715_v20 }
 0x5a3   : > { %v3530_v48 = vpop.trf.xlu0 }
 0x5a4   : > { %v8768_v51 = vpack.i.b16 %v3692_v36, %v3691_v11  ;;  %v3723_v39 = vshrl.u32 %v3530_v48, 16  ;;  %v3625_v36 = vpack.i.b16 %v8760_v49, %v8758_v5 }
 0x5a5   : > { %v3546_v58 = vpop.trf.xlu1 }
 0x5a6   : > { %v3724_v45 = vshrl.u32 %v3546_v58, 16  ;;  %v8770_v56 = vpack.i.b16 %v3546_v58, %v3530_v48 }
 0x5a7   : > { %v3559_v21 = vpop.trf.xlu0 }
 0x5a8   : > { %v8772_v14 = vpack.i.b16 %v3724_v45, %v3723_v39  ;;  %v3635_v52 = vshrl.u32 %v3559_v21, 16 }
 0x5a9   : > { %v3575_v59 = vpop.trf.xlu1 }
 0x5aa   : > { %v3636_v54 = vshrl.u32 %v3575_v59, 16  ;;  %v8792_v12 = vpack.i.b16 %v3575_v59, %v3559_v21 }
 0x5ab   : > { %v8774_v24 = vpop.trf.xlu0 }
 0x5ac   : > { %v8806_v10 = vpack.i.b16 %v3636_v54, %v3635_v52  ;;  %v3743_v48 = vcombine.low %v8790_v43, %v8792_v12 }
 0x5ad   : > { %v8776_v60 = vpop.trf.xlu1 }
 0x5ae   : > { %v3811_v18 = vcombine.low %v8798_v4, %v8806_v10  ;;  %v3751_v49 = vrot.slane %v3743_v48, %v8291_v63 }
 0x5af   : > { %v3561_v38 = vpop.trf.xlu0 }
 0x5b0   : > { %v3699_v31 = vshrl.u32 %v3561_v38, 16  ;;  %v3819_v33 = vrot.slane %v3811_v18, %v8291_v63  ;;  %v3659_v18 = vshrl.u32 %v8762_v6, 16 }
 0x5b1   : > { %v3577_v50 = vpop.trf.xlu1 }
 0x5b2   : > { %v3700_v41 = vshrl.u32 %v3577_v50, 16  ;;  %v8780_v9 = vpack.i.b16 %v3577_v50, %v3561_v38 }
 0x5b3   : > { %v3562_v19 = vpop.trf.xlu0 }
 0x5b4   : > { %v8784_v32 = vpack.i.b16 %v3700_v41, %v3699_v31  ;;  %v4015_v22 = vcombine.low %v8778_v27, %v8780_v9  ;;  %v4016_v23 = vcombine.high %v8778_v27, %v8780_v9  ;;  %v3731_v57 = vshrl.u32 %v3562_v19, 16 }
 0x5b5   : > { %v3578_v0 = vpop.trf.xlu1 }
 0x5b6   : > { %v4083_v53 = vcombine.low %v8782_v15, %v8784_v32  ;;  %v4084_v1 = vcombine.high %v8782_v15, %v8784_v32  ;;  %v3732_v62 = vshrl.u32 %v3578_v0, 16  ;;  %v8802_v46 = vpack.i.b16 %v3578_v0, %v3562_v19 }
 0x5b7   : > { %v3591_v8 = vpop.trf.xlu0  ;;  %v3651_v0 = vshrl.u32 %v8754_v26, 16 }
 0x5b8   : > { %v3643_v55 = vshrl.u32 %v3591_v8, 16  ;;  %v8810_v11 = vpack.i.b16 %v3732_v62, %v3731_v57  ;;  %v4151_v37 = vcombine.low %v8800_v7, %v8802_v46  ;;  %v4152_v28 = vcombine.high %v8800_v7, %v8802_v46 }
 0x5b9   : > { %v3607_v3 = vpop.trf.xlu1 }
 0x5ba   : > { %v3644_v39 = vshrl.u32 %v3607_v3, 16  ;;  %v3641_v58 = vpack.i.b16 %v3607_v3, %v3591_v8  ;;  %v4219_v45 = vcombine.low %v8808_v17, %v8810_v11  ;;  %v4220_v21 = vcombine.high %v8808_v17, %v8810_v11 }
 0x5bb   : > { %v8824_v59 = vpop.trf.xlu0  ;;  %v3652_v8 = vshrl.u32 %v8756_v44, 16  ;;  %v8840_v3 = vpack.i.b16 %v8756_v44, %v8754_v26  ;;  %v3667_v26 = vshrl.u32 %v8774_v24, 16 }
 0x5bc   : > { %v3645_v38 = vpack.i.b16 %v3644_v39, %v3643_v55  ;;  %v3759_v31 = vcombine.low %v3625_v36, %v3641_v58  ;;  %v3760_v16 = vcombine.high %v3625_v36, %v3641_v58  ;;  %v3660_v39 = vshrl.u32 %v8764_v30, 16 }
 0x5bd   : > { %v8828_v5 = vpop.trf.xlu1  ;;  %v3812_v36 = vcombine.high %v8798_v4, %v8806_v10  ;;  %v3668_v58 = vshrl.u32 %v8776_v60, 16  ;;  %v8860_v4 = vpack.i.b16 %v8764_v30, %v8762_v6 }
 0x5be   : > { %v3767_v50 = vrot.slane %v3759_v31, %v8291_v63  ;;  %v3827_v41 = vcombine.low %v3629_v34, %v3645_v38  ;;  %v3744_v31 = vcombine.high %v8790_v43, %v8792_v12  ;;  %v8862_v10 = vpack.i.b16 %v3660_v39, %v3659_v18 }
 0x5bf   : > { %v3593_v54 = vpop.trf.xlu0  ;;  %v8906_v39 = vrot.slane %v4016_v23, %v8291_v63 }
 0x5c0   : > { %v3835_v13 = vrot.slane %v3827_v41, %v8291_v63  ;;  %v3775_v52 = vcombine.low %v3751_v49, %v3767_v50  ;;  %v3707_v62 = vshrl.u32 %v3593_v54, 16  ;;  %v3776_v55 = vcombine.high %v3751_v49, %v3767_v50 }
 0x5c1   : > { %v3609_v19 = vpop.trf.xlu1  ;;  %v8851_v49 = vpack.i.b16 %v3652_v8, %v3651_v0  ;;  %v8854_v50 = vrot.slane %v3760_v16, %v8291_v63  ;;  %v8865_v0 = vrot.slane %v3744_v31, %v8291_v63 }
 0x5c2   : > { %v3783_v40 = vrot.slane %v3775_v52, %v8294_v2  ;;  %v3843_v20 = vcombine.low %v3819_v33, %v3835_v13  ;;  %v3708_v57 = vshrl.u32 %v3609_v19, 16  ;;  %v3705_v41 = vpack.i.b16 %v3609_v19, %v3593_v54 }
 0x5c3   : > { %v3594_v47 = vpop.trf.xlu0  ;;  %v3790_v43 = vrot.slane %v3776_v55, %v8294_v2  ;;  %v3791_v8 = vcombine.low %v8865_v0, %v8854_v50  ;;  %v3676_v55 = vshrl.u32 %v8828_v5, 16 }
 0x5c4   : > { %4287 = vxpose.xlu0.c.b16.start.end [1/1] (short) (narrow) %v3783_v40, 16  ;;  %v3851_v29 = vrot.slane %v3843_v20, %v8294_v2  ;;  %v3807_v48 = vcombine.high %v3783_v40, %v7899_v25  ;;  %v3709_v44 = vpack.i.b16 %v3708_v57, %v3707_v62  ;;  %v3828_v40 = vcombine.high %v3629_v34, %v3645_v38 }
 0x5c5   : > { %v3610_v52 = vpop.trf.xlu1  ;;  %v3739_v19 = vshrl.u32 %v3594_v47, 16  ;;  %v3844_v20 = vcombine.high %v3819_v33, %v3835_v13  ;;  %v4031_v57 = vcombine.low %v8766_v35, %v3705_v41  ;;  %v8869_v34 = vrot.slane %v3812_v36, %v8291_v63 }
 0x5c6   : > { %4303 = vxpose.xlu1.c.b16.start.end [1/1] (short) (narrow) %v3851_v29, 16  ;;  %v3740_v12 = vshrl.u32 %v3610_v52, 16  ;;  %v3875_v54 = vcombine.high %v3851_v29, %v7899_v25  ;;  %v8873_v38 = vpack.i.b16 %v8776_v60, %v8774_v24  ;;  %v8875_v33 = vpack.i.b16 %v3668_v58, %v3667_v26 }
 0x5c7   : > { %v4099_v6 = vcombine.low %v8768_v51, %v3709_v44  ;;  %v4032_v30 = vcombine.high %v8766_v35, %v3705_v41  ;;  %v3737_v13 = vpack.i.b16 %v3610_v52, %v3594_v47  ;;  %v3808_v62 = vcombine.high %v3790_v43, %v7899_v25 }
 0x5c8   : > { %4319 = vxpose.xlu0.c.b16.start.end [1/1] (short) (narrow) %v3807_v48, 16  ;;  %v8883_v16 = vrot.slane %v3828_v40, %v8291_v63  ;;  %v4100_v29 = vcombine.high %v8768_v51, %v3709_v44  ;;  %v3741_v24 = vpack.i.b16 %v3740_v12, %v3739_v19  ;;  %v3858_v60 = vrot.slane %v3844_v20, %v8294_v2 }
 0x5c9   : > { %v8890_v48 = vpack.i.b16 %v8828_v5, %v8824_v59  ;;  %v3675_v47 = vshrl.u32 %v8824_v59, 16  ;;  %v8894_v35 = vrot.slane %v4031_v57, %v8291_v63  ;;  %v8900_v51 = vrot.slane %v4015_v22, %v8291_v63 }
 0x5ca   : > { %4351 = vxpose.xlu1.c.b16.start.end [1/1] (short) (narrow) %v3790_v43, 16  ;;  %v8912_v59 = vrot.slane %v4083_v53, %v8291_v63  ;;  %v8915_v5 = vrot.slane %v4099_v6, %v8291_v63  ;;  %v8921_v22 = vrot.slane %v4084_v1, %v8291_v63  ;;  %v8924_v27 = vrot.slane %v4032_v30, %v8291_v63 }
 0x5cb   : > { %v4167_v9 = vcombine.low %v8770_v56, %v3737_v13  ;;  %v3799_v23 = vrot.slane %v3791_v8, %v8294_v2  ;;  %v8929_v53 = vrot.slane %v4100_v29, %v8291_v63  ;;  %v4235_v18 = vcombine.low %v8772_v14, %v3741_v24 }
 0x5cc   : > { %4335 = vxpose.xlu0.c.b16.start.end [1/1] (short) (narrow) %v3875_v54, 16  ;;  %v3876_v31 = vcombine.high %v3858_v60, %v7899_v25  ;;  %v3859_v41 = vcombine.low %v8869_v34, %v8883_v16  ;;  %v8935_v15 = vpack.i.b16 %v3676_v55, %v3675_v47  ;;  %v3895_v32 = vcombine.low %v8860_v4, %v8890_v48 }
 0x5cd   : > { %v4168_v1 = vcombine.high %v8770_v56, %v3737_v13  ;;  %v4047_v52 = vcombine.low %v8900_v51, %v8894_v35  ;;  %v4236_v36 = vcombine.high %v8772_v14, %v3741_v24  ;;  %v3792_v58 = vcombine.high %v8865_v0, %v8854_v50 }
 0x5ce   : > { %4383 = vxpose.xlu1.c.b16.start.end [1/1] (short) (narrow) %v3808_v62, 16  ;;  %v4115_v26 = vcombine.low %v8912_v59, %v8915_v5  ;;  %v4048_v44 = vcombine.high %v8900_v51, %v8894_v35  ;;  %v8950_v40 = vrot.slane %v4167_v9, %v8291_v63  ;;  %v3809_v56 = vcombine.high %v3799_v23, %v7899_v25 }
 0x5cf   : > { %v4116_v43 = vcombine.high %v8912_v59, %v8915_v5  ;;  %v4063_v14 = vcombine.low %v8906_v39, %v8924_v27  ;;  %v8958_v12 = vrot.slane %v4235_v18, %v8291_v63  ;;  %v3867_v50 = vrot.slane %v3859_v41, %v8294_v2 }
 0x5d0   : > { %4367 = vxpose.xlu0.c.b16.start.end [1/1] (short) (narrow) %v3858_v60, 16  ;;  %v4131_v19 = vcombine.low %v8921_v22, %v8929_v53  ;;  %v4064_v54 = vcombine.high %v8906_v39, %v8924_v27  ;;  %v3879_v20 = vcombine.low %v8840_v3, %v8873_v38  ;;  %v8971_v0 = vrot.slane %v4151_v37, %v8291_v63 }
 0x5d1   : > { %v8977_v57 = vrot.slane %v4152_v28, %v8291_v63  ;;  %v8980_v6 = vrot.slane %v4168_v1, %v8291_v63  ;;  %v8986_v30 = vrot.slane %v4219_v45, %v8291_v63  ;;  %v8992_v37 = vrot.slane %v4220_v21, %v8291_v63 }
 0x5d2   : > { %4415 = vxpose.xlu1.c.b16.start.end [1/1] (short) (narrow) %v3799_v23, 16  ;;  %v3903_v7 = vrot.slane %v3895_v32, %v8291_v63  ;;  %v8996_v46 = vrot.slane %v4236_v36, %v8291_v63  ;;  %v3963_v28 = vcombine.low %v8862_v10, %v8935_v15  ;;  %v3806_v13 = vrot.slane %v3792_v58, %v8294_v2 }
 0x5d3   : > { %v4132_v45 = vcombine.high %v8921_v22, %v8929_v53  ;;  %v4183_v62 = vcombine.low %v8971_v0, %v8950_v40  ;;  %v3877_v17 = vcombine.high %v3867_v50, %v7899_v25  ;;  %v3860_v11 = vcombine.high %v8869_v34, %v8883_v16 }
 0x5d4   : > { %4399 = vxpose.xlu0.c.b16.start.end [1/1] (short) (narrow) %v3876_v31, 16  ;;  %v4251_v21 = vcombine.low %v8986_v30, %v8958_v12  ;;  %v4184_v8 = vcombine.high %v8971_v0, %v8950_v40  ;;  %v3887_v29 = vrot.slane %v3879_v20, %v8291_v63  ;;  %v4252_v24 = vcombine.high %v8986_v30, %v8958_v12 }
 0x5d5   : > { %v4199_v60 = vcombine.low %v8977_v57, %v8980_v6  ;;  %v3947_v55 = vcombine.low %v8851_v49, %v8875_v33  ;;  %v4267_v34 = vcombine.low %v8992_v37, %v8996_v46  ;;  %v4268_v16 = vcombine.high %v8992_v37, %v8996_v46 }
 0x5d6   : > { %4447 = vxpose.xlu1.c.b16.start.end [1/1] (short) (narrow) %v3809_v56, 16  ;;  %v3810_v47 = vcombine.high %v3806_v13, %v7899_v25  ;;  %v3911_v9 = vcombine.low %v3887_v29, %v3903_v7  ;;  %v3971_v23 = vrot.slane %v3963_v28, %v8291_v63  ;;  %v3874_v18 = vrot.slane %v3860_v11, %v8294_v2 }
 0x5d7   : > { %v4200_v31 = vcombine.high %v8977_v57, %v8980_v6  ;;  %v3955_v41 = vrot.slane %v3947_v55, %v8291_v63  ;;  %v3896_v58 = vcombine.high %v8860_v4, %v8890_v48  ;;  %v3880_v28 = vcombine.high %v8840_v3, %v8873_v38 }
 0x5d8   : > { %4431 = vxpose.xlu0.c.b16.start.end [1/1] (short) (narrow) %v3867_v50, 16  ;;  %v3919_v32 = vrot.slane %v3911_v9, %v8294_v2  ;;  %v3878_v1 = vcombine.high %v3874_v18, %v7899_v25  ;;  %v3912_v50 = vcombine.high %v3887_v29, %v3903_v7  ;;  %v3964_v11 = vcombine.high %v8862_v10, %v8935_v15 }
 0x5d9   : > { %v3979_v36 = vcombine.low %v3955_v41, %v3971_v23  ;;  %v3980_v4 = vcombine.high %v3955_v41, %v3971_v23  ;;  %v3894_v48 = vrot.slane %v3880_v28, %v8291_v63  ;;  %v3948_v29 = vcombine.high %v8851_v49, %v8875_v33 }
 0x5da   : > { %4479 = vxpose.xlu1.c.b16.start.end [1/1] (short) (narrow) %v3806_v13, 16  ;;  %v3943_v56 = vcombine.high %v3919_v32, %v7899_v25  ;;  %v3910_v13 = vrot.slane %v3896_v58, %v8291_v63  ;;  %v9411_v51 = vlaneseq  ;;  %v4146_v39 = vrot.slane %v4132_v45, %v8294_v2 }
 0x5db   : > { %v3987_v20 = vrot.slane %v3979_v36, %v8294_v2  ;;  %v3994_v10 = vrot.slane %v3980_v4, %v8294_v2  ;;  %v3962_v15 = vrot.slane %v3948_v29, %v8291_v63 }
 0x5dc   : > { %4463 = vxpose.xlu0.c.b16.start.end [1/1] (short) (narrow) %v3877_v17, 16  ;;  %v3926_v17 = vrot.slane %v3912_v50, %v8294_v2  ;;  %v3927_v9 = vcombine.low %v3894_v48, %v3910_v13  ;;  %v4150_v22 = vcombine.high %v4146_v39, %v7899_v25 }
 0x5dd   : > { %v4011_v55 = vcombine.high %v3987_v20, %v7899_v25  ;;  %v4012_v41 = vcombine.high %v3994_v10, %v7899_v25 }
 0x5de   : > { %4511 = vxpose.xlu1.c.b16.start.end [1/1] (short) (narrow) %v3810_v47, 16  ;;  %v3944_v47 = vcombine.high %v3926_v17, %v7899_v25  ;;  %v3935_v23 = vrot.slane %v3927_v9, %v8294_v2  ;;  %v4130_v9 = vrot.slane %v4116_v43, %v8294_v2 }
 0x5e0   : > { %4495 = vxpose.xlu0.c.b16.start.end [1/1] (short) (narrow) %v3874_v18, 16  ;;  %v3978_v18 = vrot.slane %v3964_v11, %v8291_v63  ;;  %v3945_v33 = vcombine.high %v3935_v23, %v7899_v25  ;;  %v4148_v35 = vcombine.high %v4130_v9, %v7899_v25 }
 0x5e2   : > { %4543 = vxpose.xlu1.c.b16.start.end [1/1] (short) (narrow) %v3919_v32, 16  ;;  %v3995_v49 = vcombine.low %v3962_v15, %v3978_v18  ;;  %v3996_v50 = vcombine.high %v3962_v15, %v3978_v18  ;;  %v4139_v18 = vrot.slane %v4131_v19, %v8294_v2 }
 0x5e4   : > { %4527 = vxpose.xlu0.c.b16.start.end [1/1] (short) (narrow) %v3878_v1, 16  ;;  %v3928_v1 = vcombine.high %v3894_v48, %v3910_v13  ;;  %v4003_v36 = vrot.slane %v3995_v49, %v8294_v2  ;;  %v4010_v4 = vrot.slane %v3996_v50, %v8294_v2  ;;  %v4055_v13 = vrot.slane %v4047_v52, %v8294_v2 }
 0x5e6   : > { %4575 = vxpose.xlu1.c.b16.start.end [1/1] (short) (narrow) %v3943_v56, 16  ;;  %v3942_v58 = vrot.slane %v3928_v1, %v8294_v2  ;;  %v4013_v56 = vcombine.high %v4003_v36, %v7899_v25  ;;  %v4014_v48 = vcombine.high %v4010_v4, %v7899_v25  ;;  %v4079_v29 = vcombine.high %v4055_v13, %v7899_v25 }
 0x5e8   : > { %4559 = vxpose.xlu0.c.b16.start.end [1/1] (short) (narrow) %v3987_v20, 16  ;;  %v3946_v11 = vcombine.high %v3942_v58, %v7899_v25 }
 0x5ea   : > { %4607 = vxpose.xlu1.c.b16.start.end [1/1] (short) (narrow) %v3926_v17, 16 }
 0x5eb   : > { %v3394_v7 = vpop.f32.mrb[4].mxu1 }
 0x5ec   : > { %4591 = vxpose.xlu0.c.b16.start.end [1/1] (short) (narrow) %v4011_v55, 16  ;;  %v7291_v3 = vpop.f32.mrb[5].mxu1  ;;  %v3443_v59 = vmul.f32 0.125, %v3394_v7 }
 0x5ed   : > { %v3397_v38 = vpop.f32.mrb[6].mxu1  ;;  %v4123_v3 = vrot.slane %v4115_v26, %v8294_v2  ;;  %v4071_v26 = vrot.slane %v4063_v14, %v8294_v2 }
 0x5ee   : > { %v7292_v32 = vpop.f32.mrb[7].mxu1  ;;  %4639 = vxpose.xlu1.c.b16.start.end [1/1] (short) (narrow) %v3944_v47, 16  ;;  %v4062_v38 = vrot.slane %v4048_v44, %v8294_v2  ;;  %v3448_v44 = vand.u32 127, %v9411_v51 }
 0x5ef   : > { %v4147_v52 = vcombine.high %v4123_v3, %v7899_v25 }
 0x5f0   : > { %4623 = vxpose.xlu0.c.b16.start.end [1/1] (short) (narrow) %v3994_v10, 16  ;;  %v4080_v47 = vcombine.high %v4062_v38, %v7899_v25  ;;  %vm3449_vm2 = vcmp.le.s32.totalorder %v3448_v44, %v8268_v42 }
 0x5f1   : > { %v9088_v5 = vsel %vm3449_vm2, %v3443_v59, -1e+30 }
 0x5f2   : > { %4671 = vxpose.xlu1.c.b16.start.end [1/1] (short) (narrow) %v3935_v23, 16  ;;  %v3455_v14 = vsel %vm3454_vm3, %v9088_v5, -inf }
 0x5f4   : > { %4655 = vxpose.xlu0.c.b16.start.end [1/1] (short) (narrow) %v4012_v41, 16 }
 0x5f6   : > { %4703 = vxpose.xlu1.c.b16.start.end [1/1] (short) (narrow) %v3945_v33, 16 }
 0x5f8   : > { %4687 = vxpose.xlu0.c.b16.start.end [1/1] (short) (narrow) %v4003_v36, 16 }
 0x5fa   : > { %4735 = vxpose.xlu1.c.b16.start.end [1/1] (short) (narrow) %v3942_v58, 16 }
 0x5fb   : > { %v3437_v20 = vpop.f32.mrb[8].mxu1 }
 0x5fc   : > { %4719 = vxpose.xlu0.c.b16.start.end [1/1] (short) (narrow) %v4013_v56, 16  ;;  %v7303_v28 = vpop.f32.mrb[9].mxu1  ;;  %v3444_v43 = vmul.f32 0.125, %v3437_v20 }
 0x5fd   : > { %v3440_v17 = vpop.f32.mrb[10].mxu1 }
 0x5fe   : > { %v7304_v55 = vpop.f32.mrb[11].mxu1  ;;  %4767 = vxpose.xlu1.c.b16.start.end [1/1] (short) (narrow) %v3946_v11, 16  ;;  %v9092_v32 = vsel %vm3449_vm2, %v3444_v43, -1e+30  ;;  %v4081_v43 = vcombine.high %v4071_v26, %v7899_v25 }
 0x5ff   : > { %v3458_v10 = vsel %vm3454_vm3, %v9092_v32, -inf }
 0x600   : > { %4751 = vxpose.xlu0.c.b16.start.end [1/1] (short) (narrow) %v4010_v4, 16 }
 0x602   : > { %4799 = vxpose.xlu1.c.b16.start.end [1/1] (short) (narrow) %v4055_v13, 16 }
 0x604   : > { %4783 = vxpose.xlu0.c.b16.start.end [1/1] (short) (narrow) %v4014_v48, 16 }
 0x606   : > { %4831 = vxpose.xlu1.c.b16.start.end [1/1] (short) (narrow) %v4079_v29, 16 }
 0x608   : > { %4815 = vxpose.xlu0.c.b16.start.end [1/1] (short) (narrow) %v4123_v3, 16 }
 0x60a   : > { %4863 = vxpose.xlu1.c.b16.start.end [1/1] (short) (narrow) %v4062_v38, 16 }
 0x60c   : > { %4847 = vxpose.xlu0.c.b16.start.end [1/1] (short) (narrow) %v4147_v52, 16 }
 0x60e   : > { %4895 = vxpose.xlu1.c.b16.start.end [1/1] (short) (narrow) %v4080_v47, 16 }
 0x610   : > { %4879 = vxpose.xlu0.c.b16.start.end [1/1] (short) (narrow) %v4130_v9, 16 }
 0x612   : > { %4927 = vxpose.xlu1.c.b16.start.end [1/1] (short) (narrow) %v4071_v26, 16  ;;  %v4078_v26 = vrot.slane %v4064_v54, %v8294_v2 }
 0x614   : > { %4911 = vxpose.xlu0.c.b16.start.end [1/1] (short) (narrow) %v4148_v35, 16 }
 0x618   : > { %4943 = vxpose.xlu0.c.b16.start.end [1/1] (short) (narrow) %v4139_v18, 16 }
 0x61f   : > { %3456 = vmax.xlane.f32.xlu1 %v3455_v14 }
 0x625   : > { %3459 = vmax.xlane.f32.xlu0 %v3458_v10 }
 0x62a   : > { %v4295_v15 = vpop.trf.xlu0 }
 0x62c   : > { %v4311_v19 = vpop.trf.xlu1 }
 0x62e   : > { %v4327_v7 = vpop.trf.xlu0 }
 0x630   : > { %v4359_v23 = vpop.trf.xlu1 }
 0x631   : > { %v5311_v50 = vcombine.low %v4295_v15, %v4359_v23 }
 0x632   : > { %v4343_v41 = vpop.trf.xlu0 }
 0x633   : > { %v5318_v55 = vrot.slane %v5311_v50, %v8291_v63  ;;  %v4149_v50 = vcombine.high %v4139_v18, %v7899_v25 }
 0x634   : > { %v4391_v49 = vpop.trf.xlu1 }
 0x635   : > { %v5319_v20 = vcombine.low %v4327_v7, %v4391_v49 }
 0x636   : > { %v4375_v33 = vpop.trf.xlu0 }
 0x637   : > { %v5360_v4 = vcombine.low %v4311_v19, %v4375_v33  ;;  %v5326_v13 = vrot.slane %v5319_v20, %v8291_v63 }
 0x638   : > { %v4423_v1 = vpop.trf.xlu1 }
 0x639   : > { %v5367_v47 = vrot.slane %v5360_v4, %v8291_v63  ;;  %v5343_v9 = vcombine.low %v5318_v55, %v5326_v13  ;;  %v4082_v55 = vcombine.high %v4078_v26, %v7899_v25 }
 0x63a   : > { %v4407_v36 = vpop.trf.xlu0 }
 0x63b   : > { %v5368_v48 = vcombine.low %v4343_v41, %v4407_v36  ;;  %v5350_v15 = vrot.slane %v5343_v9, %v8294_v2 }
 0x63c   : > { %v4455_v58 = vpop.trf.xlu1 }
 0x63d   : > { %v5375_v35 = vrot.slane %v5368_v48, %v8291_v63 }
 0x63e   : > { %v4439_v56 = vpop.trf.xlu0 }
 0x63f   : > { %v5392_v19 = vcombine.low %v5367_v47, %v5375_v35 }
 0x640   : > { %v4487_v28 = vpop.trf.xlu1 }
 0x641   : > { %v5327_v11 = vcombine.low %v4423_v1, %v4487_v28  ;;  %v5399_v36 = vrot.slane %v5392_v19, %v8294_v2 }
 0x642   : > { %v4471_v17 = vpop.trf.xlu0 }
 0x643   : > { %v5334_v3 = vrot.slane %v5327_v11, %v8291_v63 }
 0x644   : > { %v4519_v29 = vpop.trf.xlu1 }
 0x645   : > { %v5335_v52 = vcombine.low %v4455_v58, %v4519_v29 }
 0x646   : > { %v4503_v38 = vpop.trf.xlu0 }
 0x647   : > { %v5376_v51 = vcombine.low %v4439_v56, %v4503_v38  ;;  %v5342_v44 = vrot.slane %v5335_v52, %v8291_v63  ;;  %v4191_v38 = vrot.slane %v4183_v62, %v8294_v2 }
 0x648   : > { %v4551_v59 = vpop.trf.xlu1 }
 0x649   : > { %v5351_v14 = vcombine.low %v5334_v3, %v5342_v44  ;;  %v5383_v7 = vrot.slane %v5376_v51, %v8291_v63  ;;  %v4215_v51 = vcombine.high %v4191_v38, %v7899_v25 }
 0x64a   : > { %v4535_v10 = vpop.trf.xlu0 }
 0x64b   : > { %v5384_v23 = vcombine.low %v4471_v17, %v4535_v10  ;;  %v5358_v41 = vrot.slane %v5351_v14, %v8294_v2 }
 0x64c   : > { %4959 = vxpose.xlu1.c.b16.start.end [1/1] (short) (narrow) %v4081_v43, 16  ;;  %v4583_v33 = vpop.trf.xlu1 }
 0x64d   : > { %v5391_v49 = vrot.slane %v5384_v23, %v8291_v63  ;;  %v5359_v58 = vcombine.low %v5350_v15, %v5358_v41  ;;  %v4198_v15 = vrot.slane %v4184_v8, %v8294_v2 }
 0x64e   : > { %v4567_v1 = vpop.trf.xlu0 }
 0x64f   : > { %v5400_v56 = vcombine.low %v5383_v7, %v5391_v49  ;;  %v5706_v13 = vshrl.u32 %v5359_v58, 16 }
 0x650   : > { %4991 = vxpose.xlu1.c.b16.start.end [1/1] (short) (narrow) %v4078_v26, 16  ;;  %v4615_v28 = vpop.trf.xlu1 }
 0x651   : > { %v5407_v20 = vrot.slane %v5400_v56, %v8294_v2  ;;  %v5409_v11 = vcombine.low %v4551_v59, %v4615_v28  ;;  %v4259_v59 = vrot.slane %v4251_v21, %v8294_v2  ;;  %v4216_v21 = vcombine.high %v4198_v15, %v7899_v25 }
 0x652   : > { %4975 = vxpose.xlu0.c.b16.start.end [1/1] (short) (narrow) %v4149_v50, 16  ;;  %v4599_v17 = vpop.trf.xlu0 }
 0x653   : > { %v5408_v4 = vcombine.low %v5399_v36, %v5407_v20  ;;  %v5416_v48 = vrot.slane %v5409_v11, %v8291_v63  ;;  %v4283_v7 = vcombine.high %v4259_v59, %v7899_v25  ;;  %v9150_v36 = vrot.slane %v4199_v60, %v8294_v2 }
 0x654   : > { %5023 = vxpose.xlu1.c.b16.start.end [1/1] (short) (narrow) %v4082_v55, 16  ;;  %v4647_v18 = vpop.trf.xlu1  ;;  %v9161_v60 = vrot.slane %v4267_v34, %v8294_v2 }
 0x655   : > { %v5705_v27 = vpack.i.b16 %v5408_v4, %v5359_v58  ;;  %v5707_v54 = vshrl.u32 %v5408_v4, 16  ;;  %v5417_v3 = vcombine.low %v4583_v33, %v4647_v18  ;;  %v4266_v33 = vrot.slane %v4252_v24, %v8294_v2 }
 0x656   : > { %5007 = vxpose.xlu0.c.b16.start.end [1/1] (short) (narrow) %v4146_v39, 16  ;;  %v4631_v29 = vpop.trf.xlu0 }
 0x657   : > { %7307 = vmatprep.mubr.msk.bf16.mxu0 %vm3454_vm3, %v5705_v27  ;;  %v5708_v52 = vpack.i.b16 %v5707_v54, %v5706_v13  ;;  %v5458_v47 = vcombine.low %v4567_v1, %v4631_v29  ;;  %v5424_v53 = vrot.slane %v5417_v3, %v8291_v63  ;;  %v4284_v58 = vcombine.high %v4266_v33, %v7899_v25 }
 0x658   : > { %5055 = vxpose.xlu1.c.b16.start.end [1/1] (short) (narrow) %v4191_v38, 16  ;;  %v4679_v45 = vpop.trf.xlu1 }
 0x659   : > { %7317 = vmatprep.mubr.msk.bf16.mxu1 %vm3454_vm3, %v5708_v52  ;;  %v5441_v9 = vcombine.low %v5416_v48, %v5424_v53  ;;  %v5465_v44 = vrot.slane %v5458_v47, %v8291_v63 }
 0x65a   : > { %5039 = vxpose.xlu0.c.b16.start.end [1/1] (short) (narrow) %v4150_v22, 16  ;;  %v4663_v35 = vpop.trf.xlu0 }
 0x65b   : > { %v5466_v62 = vcombine.low %v4599_v17, %v4663_v35  ;;  %v5448_v30 = vrot.slane %v5441_v9, %v8294_v2 }
 0x65c   : > { %5087 = vxpose.xlu1.c.b16.start.end [1/1] (short) (narrow) %v4215_v51, 16  ;;  %v4711_v14 = vpop.trf.xlu1 }
 0x65d   : > { %v5473_v43 = vrot.slane %v5466_v62, %v8291_v63 }
 0x65e   : > { %5071 = vxpose.xlu0.c.b16.start.end [1/1] (short) (narrow) %v4259_v59, 16  ;;  %v4695_v10 = vpop.trf.xlu0 }
 0x65f   : > { %v5490_v19 = vcombine.low %v5465_v44, %v5473_v43 }
 0x660   : > { %5119 = vxpose.xlu1.c.b16.start.end [1/1] (short) (narrow) %v4198_v15, 16  ;;  %v4743_v23 = vpop.trf.xlu1 }
 0x661   : > { %v5425_v49 = vcombine.low %v4679_v45, %v4743_v23  ;;  %v5497_v39 = vrot.slane %v5490_v19, %v8294_v2 }
 0x662   : > { %5103 = vxpose.xlu0.c.b16.start.end [1/1] (short) (narrow) %v4283_v7, 16  ;;  %v4727_v41 = vpop.trf.xlu0 }
 0x663   : > { %v5432_v40 = vrot.slane %v5425_v49, %v8291_v63 }
 0x664   : > { %5151 = vxpose.xlu1.c.b16.start.end [1/1] (short) (narrow) %v4216_v21, 16  ;;  %v4775_v1 = vpop.trf.xlu1 }
 0x665   : > { %v5433_v8 = vcombine.low %v4711_v14, %v4775_v1 }
 0x666   : > { %5135 = vxpose.xlu0.c.b16.start.end [1/1] (short) (narrow) %v4266_v33, 16  ;;  %v4759_v0 = vpop.trf.xlu0 }
 0x667   : > { %v5474_v26 = vcombine.low %v4695_v10, %v4759_v0  ;;  %v5440_v56 = vrot.slane %v5433_v8, %v8291_v63 }
 0x668   : > { %5183 = vxpose.xlu1.c.b16.start.end [1/1] (short) (narrow) %v9150_v36, 16  ;;  %v4807_v12 = vpop.trf.xlu1 }
 0x669   : > { %v5449_v24 = vcombine.low %v5432_v40, %v5440_v56  ;;  %v5481_v20 = vrot.slane %v5474_v26, %v8291_v63 }
 0x66a   : > { %5167 = vxpose.xlu0.c.b16.start.end [1/1] (short) (narrow) %v4284_v58, 16  ;;  %v4791_v50 = vpop.trf.xlu0 }
 0x66b   : > { %v5482_v28 = vcombine.low %v4727_v41, %v4791_v50  ;;  %v5456_v17 = vrot.slane %v5449_v24, %v8294_v2 }
 0x66c   : > { %v4839_v55 = vpop.trf.xlu1 }
 0x66d   : > { %v5489_v11 = vrot.slane %v5482_v28, %v8291_v63  ;;  %v9166_v4 = vcombine.low %v5448_v30, %v5456_v17 }
 0x66e   : > { %5199 = vxpose.xlu0.c.b16.start.end [1/1] (short) (narrow) %v9161_v60, 16  ;;  %v4823_v13 = vpop.trf.xlu0 }
 0x66f   : > { %v5498_v27 = vcombine.low %v5481_v20, %v5489_v11  ;;  %v5712_v34 = vshrl.u32 %v9166_v4, 16 }
 0x670   : > { %v4871_v18 = vpop.trf.xlu1 }
 0x671   : > { %v5505_v54 = vrot.slane %v5498_v27, %v8294_v2  ;;  %v5507_v29 = vcombine.low %v4807_v12, %v4871_v18 }
 0x672   : > { %v4855_v48 = vpop.trf.xlu0 }
 0x673   : > { %v9171_v3 = vcombine.low %v5497_v39, %v5505_v54  ;;  %v5514_v22 = vrot.slane %v5507_v29, %v8291_v63 }
 0x674   : > { %v4903_v47 = vpop.trf.xlu1 }
 0x675   : > { %v5711_v38 = vpack.i.b16 %v9171_v3, %v9166_v4  ;;  %v5713_v52 = vshrl.u32 %v9171_v3, 16  ;;  %v5515_v45 = vcombine.low %v4839_v55, %v4903_v47 }
 0x676   : > { %v4887_v53 = vpop.trf.xlu0 }
 0x677   : > { %v5556_v9 = vcombine.low %v4823_v13, %v4887_v53  ;;  %v9177_v35 = vpack.i.b16 %v5713_v52, %v5712_v34  ;;  %v5522_v51 = vrot.slane %v5515_v45, %v8291_v63  ;;  %v4285_v45 = vcombine.high %v9161_v60, %v7899_v25 }
 0x678   : > { %v4935_v15 = vpop.trf.xlu1 }
 0x679   : > { %v5539_v44 = vcombine.low %v5514_v22, %v5522_v51  ;;  %v5563_v59 = vrot.slane %v5556_v9, %v8291_v63  ;;  %v4282_v9 = vrot.slane %v4268_v16, %v8294_v2  ;;  %v4217_v51 = vcombine.high %v9150_v36, %v7899_v25 }
 0x67a   : > { %v4919_v62 = vpop.trf.xlu0 }
 0x67b   : > { %v5564_v43 = vcombine.low %v4855_v48, %v4919_v62  ;;  %v5546_v11 = vrot.slane %v5539_v44, %v8294_v2  ;;  %v4286_v44 = vcombine.high %v4282_v9, %v7899_v25  ;;  %v4214_v62 = vrot.slane %v4200_v31, %v8294_v2 }
 0x67d   : > { %v5571_v14 = vrot.slane %v5564_v43, %v8291_v63  ;;  %v4218_v60 = vcombine.high %v4214_v62, %v7899_v25 }
 0x67e   : > { %v4951_v19 = vpop.trf.xlu0 }
 0x67f   : > { %v5588_v10 = vcombine.low %v5563_v59, %v5571_v14 }
 0x681   : > { %v5595_v48 = vrot.slane %v5588_v10, %v8294_v2 }
 0x6ac   : > { %v3457_v7 = vpop.xlane.xlu1 %3456 }
 0x6ad   : > { %v3461_v23 = vsub.f32 %v9088_v5, %v3457_v7 }
 0x6af   : > { %v3463_v41 = vmul.f32 1.442695, %v3461_v23 }
 0x6b1   : > { %7588 = vpow2.f32 %v3463_v41 }
 0x6b2   : > { %v3460_v49 = vpop.xlane.xlu0 %3459  ;;  %v4967_v21 = vpop.trf.xlu1 }
 0x6b3   : > { %v3462_v33 = vsub.f32 %v9092_v32, %v3460_v49 }
 0x6b5   : > { %v3465_v1 = vmul.f32 1.442695, %v3462_v33 }
 0x6b6   : > { %v4999_v40 = vpop.trf.xlu1 }
 0x6b7   : > { %7590 = vpow2.f32 %v3465_v1  ;;  %v5523_v8 = vcombine.low %v4935_v15, %v4999_v40 }
 0x6b8   : > { %v4983_v0 = vpop.trf.xlu0 }
 0x6b9   : > { %v5530_v24 = vrot.slane %v5523_v8, %v8291_v63 }
 0x6ba   : > { %v5031_v26 = vpop.trf.xlu1 }
 0x6bb   : > { %v7589_v58 = vpop.eup %7588  ;;  %v5531_v56 = vcombine.low %v4967_v21, %v5031_v26 }
 0x6bc   : > { %v5015_v12 = vpop.trf.xlu0  ;;  %v3467_v30 = vsel %vm3454_vm3, %v7589_v58, 0.0 }
 0x6bd   : > { %v5538_v5 = vrot.slane %v5531_v56, %v8291_v63  ;;  %3468 = vadd.xlane.f32.xlu0 %v3467_v30  ;;  %v5572_v50 = vcombine.low %v4951_v19, %v5015_v12 }
 0x6be   : > { %v5063_v37 = vpop.trf.xlu1 }
 0x6bf   : > { %v5547_v20 = vcombine.low %v5530_v24, %v5538_v5  ;;  %v5579_v39 = vrot.slane %v5572_v50, %v8291_v63 }
 0x6c0   : > { %v5047_v28 = vpop.trf.xlu0 }
 0x6c1   : > { %v9187_v32 = vpop.eup %7590  ;;  %v5580_v17 = vcombine.low %v4983_v0, %v5047_v28  ;;  %v5554_v55 = vrot.slane %v5547_v20, %v8294_v2 }
 0x6c2   : > { %v3470_v13 = vsel %vm3454_vm3, %v9187_v32, 0.0  ;;  %v5095_v16 = vpop.trf.xlu1 }
 0x6c3   : > { %v5587_v27 = vrot.slane %v5580_v17, %v8291_v63  ;;  %3471 = vadd.xlane.f32.xlu1 %v3470_v13  ;;  %v9195_v54 = vcombine.low %v5546_v11, %v5554_v55 }
 0x6c4   : > { %v5079_v59 = vpop.trf.xlu0 }
 0x6c5   : > { %v5596_v18 = vcombine.low %v5579_v39, %v5587_v27  ;;  %v5718_v47 = vshrl.u32 %v9195_v54, 16 }
 0x6c6   : > { %v5127_v36 = vpop.trf.xlu1 }
 0x6c7   : > { %v5603_v29 = vrot.slane %v5596_v18, %v8294_v2  ;;  %v5605_v21 = vcombine.low %v5063_v37, %v5127_v36 }
 0x6c8   : > { %v5111_v46 = vpop.trf.xlu0 }
 0x6c9   : > { %v9199_v34 = vcombine.low %v5595_v48, %v5603_v29  ;;  %v5612_v5 = vrot.slane %v5605_v21, %v8291_v63  ;;  %v7502_v21 = vld [vmem:[#allocation10 + $0x20] sm:$0xff]  }
 0x6ca   : > { %v5159_v15 = vpop.trf.xlu1 }
 0x6cb   : > { %v5717_v52 = vpack.i.b16 %v9199_v34, %v9195_v54  ;;  %v5719_v22 = vshrl.u32 %v9199_v34, 16  ;;  %v5613_v33 = vcombine.low %v5095_v16, %v5159_v15 }
 0x6cc   : > { %v5143_v43 = vpop.trf.xlu0 }
 0x6cd   : > { %v9205_v53 = vpack.i.b16 %v5719_v22, %v5718_v47  ;;  %v5654_v1 = vcombine.low %v5079_v59, %v5143_v43  ;;  %v5620_v50 = vrot.slane %v5613_v33, %v8291_v63  ;;  %v7503_v33 = vld [vmem:[#allocation10 + $0x28] sm:$0xff]  }
 0x6ce   : > { %v5191_v19 = vpop.trf.xlu1 }
 0x6cf   : > { %v5661_v28 = vrot.slane %v5654_v1, %v8291_v63  ;;  %v5637_v29 = vcombine.low %v5612_v5, %v5620_v50  ;;  %v7504_v1 = vld [vmem:[#allocation10 + $0x30] sm:$0xff]  }
 0x6d0   : > { %v5175_v14 = vpop.trf.xlu0 }
 0x6d1   : > { %v5662_v40 = vcombine.low %v5111_v46, %v5175_v14 }
 0x6d3   : > { %v5669_v17 = vrot.slane %v5662_v40, %v8291_v63 }
 0x6d4   : > { %v5207_v10 = vpop.trf.xlu0 }
 0x6d5   : > { %v5686_v47 = vcombine.low %v5661_v28, %v5669_v17 }
 0x6ea   : > { %5231 = vxpose.xlu0.c.b16.start.end [1/1] (short) (narrow) %v4285_v45, 16 }
 0x6ee   : > { %5263 = vxpose.xlu0.c.b16.start.end [1/1] (short) (narrow) %v4282_v9, 16 }
 0x6f0   : > { %5215 = vxpose.xlu1.c.b16.start.end [1/1] (short) (narrow) %v4217_v51, 16  ;;  %v5644_v51 = vrot.slane %v5637_v29, %v8294_v2 }
 0x6f2   : > { %5295 = vxpose.xlu0.c.b16.start.end [1/1] (short) (narrow) %v4286_v44, 16  ;;  %v5693_v44 = vrot.slane %v5686_v47, %v8294_v2 }
 0x6f4   : > { %5247 = vxpose.xlu1.c.b16.start.end [1/1] (short) (narrow) %v4214_v62, 16 }
 0x6f8   : > { %5279 = vxpose.xlu1.c.b16.start.end [1/1] (short) (narrow) %v4218_v60, 16 }
 0x74a   : > { %v3469_v7 = vpop.xlane.xlu0 %3468 }
 0x74b   : > { %7592 = vrcp.f32 %v3469_v7 }
 0x750   : > { %v3472_v23 = vpop.xlane.xlu1 %3471  ;;  %v5239_v57 = vpop.trf.xlu0 }
 0x751   : > { %7594 = vrcp.f32 %v3472_v23 }
 0x754   : > { %v5271_v6 = vpop.trf.xlu0 }
 0x755   : > { %v7593_v31 = vpop.eup %7592  ;;  %v5670_v0 = vcombine.low %v5207_v10, %v5271_v6  ;;  %v7498_v6 = vld [vmem:[#allocation10] sm:$0xff]  }
 0x756   : > { %v5223_v41 = vpop.trf.xlu1  ;;  %v3475_v49 = vmul.f32 %v7593_v31, %v7589_v58  ;;  %v7499_v31 = vld [vmem:[#allocation10 + $0x8] sm:$0xff]  }
 0x757   : > { %v5677_v11 = vrot.slane %v5670_v0, %v8291_v63 }
 0x758   : > { %v5303_v8 = vpop.trf.xlu0  ;;  %v3477_v26 = vpack.c.bf16 %v3475_v49, %v3475_v49  ;;  %v7501_v49 = vld [vmem:[#allocation10 + $0x18] sm:$0xff]  }
 0x759   : > { %v5678_v56 = vcombine.low %v5239_v57, %v5303_v8 }
 0x75a   : > { %v5255_v12 = vpop.trf.xlu1  ;;  %7345 = vmatprep.subr.msk.bf16.mxu0 %vm3454_vm3, %v3477_v26  ;;  %v5740_v24 = vsel %vm3454_vm3, %v3477_v26, 0 }
 0x75b   : > { %v7595_v30 = vpop.eup %7594  ;;  %v5685_v58 = vrot.slane %v5678_v56, %v8291_v63  ;;  %7306 = vmatpush3.bf16.xpose.msra.mxu0 %v5740_v24  ;;  %v5621_v55 = vcombine.low %v5191_v19, %v5255_v12 }
 0x75c   : > { %v3476_v20 = vmul.f32 %v7595_v30, %v9187_v32  ;;  %7325 = vmatprep.subr.bf16.mxu0 %v9410_v61 }
 0x75d   : > { %v5694_v27 = vcombine.low %v5677_v11, %v5685_v58  ;;  %v5628_v32 = vrot.slane %v5621_v55, %v8291_v63 }
 0x75e   : > { %v5287_v13 = vpop.trf.xlu1  ;;  %v3478_v39 = vpack.c.bf16 %v3476_v20, %v3476_v20 }
 0x75f   : > { %v5629_v18 = vcombine.low %v5223_v41, %v5287_v13  ;;  %v5701_v45 = vrot.slane %v5694_v27, %v8294_v2  ;;  %v7500_v41 = vld [vmem:[#allocation10 + $0x10] sm:$0xff]   ;;  %v7505_v27 = vld [vmem:[#allocation10 + $0x38] sm:$0xff]  }
 0x760   : > { %7346 = vmatprep.subr.msk.bf16.mxu1 %vm3454_vm3, %v3478_v39  ;;  %v5820_v48 = vsel %vm3454_vm3, %v3478_v39, 0 }
 0x761   : > { %v5636_v22 = vrot.slane %v5629_v18, %v8291_v63  ;;  %7316 = vmatpush3.bf16.xpose.msra.mxu1 %v5820_v48  ;;  %v5702_v60 = vcombine.low %v5693_v44, %v5701_v45 }
 0x762   : > { %7308 = vmatmul.mubr.msk.bf16.vlgmr.msra.gmra.mrb[4].mxu0 %vm3454_vm3, %v5711_v38 }
 0x763   : > { %v5645_v9 = vcombine.low %v5628_v32, %v5636_v22  ;;  %7311 = vmatprep.mubr.msk.bf16.mxu0 %vm3454_vm3, %v5717_v52  ;;  %v5725_v38 = vshrl.u32 %v5702_v60, 16  ;;  %7326 = vmatpush3.bf16.msra.mxu0 %v7498_v6 }
 0x764   : > { %7327 = vmatprep.subr.bf16.mxu0 %v9410_v61 }
 0x765   : > { %v5652_v62 = vrot.slane %v5645_v9, %v8294_v2 }
 0x767   : > { %v5653_v59 = vcombine.low %v5644_v51, %v5652_v62  ;;  %7328 = vmatpush3.bf16.msra.mxu0 %v7499_v31 }
 0x768   : > { %7318 = vmatmul.mubr.msk.bf16.vlgmr.msra.gmra.mrb[12].mxu1 %vm3454_vm3, %v9177_v35  ;;  %7329 = vmatprep.subr.bf16.mxu0 %v9410_v61 }
 0x769   : > { %7321 = vmatprep.mubr.msk.bf16.mxu1 %vm3454_vm3, %v9205_v53  ;;  %v5723_v4 = vpack.i.b16 %v5702_v60, %v5653_v59  ;;  %v5724_v3 = vshrl.u32 %v5653_v59, 16 }
 0x76b   : > { %7312 = vmatmul.mubr.msk.bf16.gmra.mrb[8].mxu0 %vm3454_vm3, %v5723_v4  ;;  %v5726_v54 = vpack.i.b16 %v5725_v38, %v5724_v3  ;;  %v7606_v38 = vld [vmem:[%s8234_s1] sm:$0xff]  ;;  %s7805_s1 = scalar_lea.vmem %s9318_s13, 128 }
 0x76c   : > { %7341 = vmatprep.mubr.msk.bf16.mxu0 %vm7900_vm0, %v9410_v61  ;;  %7330 = vmatpush3.bf16.msra.mxu0 %v7500_v41  ;;  %v7524_v41 = vld [vmem:[#allocation11 + $0x60] ss:$16 sps:$4 sm:$0xff]   ;;  %p7806_p6 = scmp.ne.s32.totalorder %s9318_s13, %s7805_s1 }
 0x76d   : > { %7331 = vmatprep.subr.bf16.mxu0 %v9410_v61 }
 0x76e   : > { %p7807_p4 = pnand %p7806_p6, %p9420_p9 }
 0x770   : > { %7322 = vmatmul.mubr.msk.bf16.gmra.mrb[16].mxu1 %vm3454_vm3, %v5726_v54  ;;  %7332 = vmatpush3.bf16.msra.mxu0 %v7501_v49  ;;  %v7526_v49 = vld [vmem:[#allocation11 + $0x64] ss:$16 sps:$4 sm:$0xff]   ;;  %p7808_p13 = pneg %p7807_p4 }
 0x771   : > { %6460 = vmatprep.mubr.bf16.mxu1 %v7899_v25  ;;  %7333 = vmatprep.subr.bf16.mxu0 %v9410_v61 }
 0x774   : > { %7334 = vmatpush3.bf16.msra.mxu0 %v7502_v21  ;;  %v7527_v21 = vld [vmem:[#allocation11 + $0x68] ss:$16 sps:$4 sm:$0xff]  }
 0x775   : > { %7335 = vmatprep.subr.bf16.mxu0 %v9410_v61 }
 0x778   : > { %7336 = vmatpush3.bf16.msra.mxu0 %v7503_v33  ;;  %v7529_v33 = vld [vmem:[#allocation11 + $0x6c] ss:$16 sps:$4 sm:$0xff]  }
 0x779   : > { %7337 = vmatprep.subr.bf16.mxu0 %v9410_v61 }
 0x77c   : > { %7338 = vmatpush3.bf16.msra.mxu0 %v7504_v1  ;;  %v7532_v1 = vld [vmem:[#allocation11 + $0x84] ss:$16 sps:$4 sm:$0xff]  }
 0x77d   : > { %7339 = vmatprep.subr.bf16.mxu0 %v9410_v61 }
 0x780   : > { %7340 = vmatpush3.bf16.msra.mxu0 %v7505_v27 }
 0x835   : > { %v7309_v34 = vpop.f32.mrb[4].mxu0 }
 0x836   : > { %v5776_v52 = vpop.f32.mrb[5].mxu0 }
 0x837   : > { %5887 = vxpose.xlu1.b32.start [1/8] (short) (narrow) %v5776_v52, 8  ;;  %v7310_v35 = vpop.f32.mrb[6].mxu0 }
 0x838   : > { %v5779_v37 = vpop.f32.mrb[7].mxu0 }
 0x83b   : > { %v7319_v46 = vpop.f32.mrb[12].mxu1  ;;  %5888 = vxpose.xlu1.b32.cont [2/8] (short) (narrow) %v5779_v37, 8  ;;  %v7506_v37 = vld [vmem:[#allocation11] ss:$16 sps:$4 sm:$0xff]  }
 0x83c   : > { %v5856_v53 = vpop.f32.mrb[13].mxu1 }
 0x83d   : > { %5919 = vxpose.xlu0.b32.start [1/8] (short) (narrow) %v5856_v53, 8  ;;  %v7320_v16 = vpop.f32.mrb[14].mxu1  ;;  %v7509_v53 = vld [vmem:[#allocation11 + $0x8] ss:$16 sps:$4 sm:$0xff]  }
 0x83e   : > { %v7313_v43 = vpop.f32.mrb[8].mxu0  ;;  %v5859_v36 = vpop.f32.mrb[15].mxu1 }
 0x83f   : > { %v5792_v14 = vpop.f32.mrb[9].mxu0  ;;  %5889 = vxpose.xlu1.b32.cont [3/8] (short) (narrow) %v7309_v34, 8 }
 0x840   : > { %v7314_v10 = vpop.f32.mrb[10].mxu0 }
 0x841   : > { %v5795_v15 = vpop.f32.mrb[11].mxu0  ;;  %5920 = vxpose.xlu0.b32.cont [2/8] (short) (narrow) %v5859_v36, 8  ;;  %v7512_v36 = vld [vmem:[#allocation11 + $0x20] ss:$16 sps:$4 sm:$0xff]  }
 0x843   : > { %v7323_v19 = vpop.f32.mrb[16].mxu1  ;;  %5890 = vxpose.xlu1.b32.cont [4/8] (short) (narrow) %v7310_v35, 8 }
 0x844   : > { %v5872_v7 = vpop.f32.mrb[17].mxu1 }
 0x845   : > { %5921 = vxpose.xlu0.b32.cont [3/8] (short) (narrow) %v7319_v46, 8  ;;  %v7324_v23 = vpop.f32.mrb[18].mxu1  ;;  %v7508_v46 = vld [vmem:[#allocation11 + $0x4] ss:$16 sps:$4 sm:$0xff]  }
 0x846   : > { %v5875_v57 = vpop.f32.mrb[19].mxu1  ;;  %6428 = vmatprep.subr.bf16.mxu1 %v7508_v46  ;;  %v7571_v46 = vld [vmem:[#allocation13 + $0xe0] sm:$0xff]  }
 0x847   : > { %5891 = vxpose.xlu1.b32.cont [5/8] (short) (narrow) %v5792_v14, 8  ;;  %6429 = vmatpush1.bf16.msra.mxu1 %v7506_v37  ;;  %v7515_v14 = vld [vmem:[#allocation11 + $0x28] ss:$16 sps:$4 sm:$0xff]   ;;  %v7570_v37 = vld [vmem:[#allocation13 + $0x60] sm:$0xff]  }
 0x849   : > { %5922 = vxpose.xlu0.b32.cont [4/8] (short) (narrow) %v7320_v16, 8  ;;  %v7511_v16 = vld [vmem:[#allocation11 + $0xc] ss:$16 sps:$4 sm:$0xff]  }
 0x84a   : > { %6469 = vmatprep.subr.bf16.mxu0 %v7511_v16  ;;  %v7573_v16 = vld [vmem:[#allocation13 + $0xa0] sm:$0xff]  }
 0x84b   : > { %5892 = vxpose.xlu1.b32.cont [6/8] (short) (narrow) %v5795_v15, 8  ;;  %v7523_v15 = vld [vmem:[#allocation11 + $0x4c] ss:$16 sps:$4 sm:$0xff]  }
 0x84d   : > { %5923 = vxpose.xlu0.b32.cont [5/8] (short) (narrow) %v5872_v7, 8  ;;  %v7521_v7 = vld [vmem:[#allocation11 + $0x48] ss:$16 sps:$4 sm:$0xff]  }
 0x84f   : > { %5893 = vxpose.xlu1.b32.cont [7/8] (short) (narrow) %v7313_v43, 8  ;;  %v7514_v43 = vld [vmem:[#allocation11 + $0x24] ss:$16 sps:$4 sm:$0xff]  }
 0x850   : > { %6430 = vmatprep.subr.bf16.mxu1 %v7514_v43  ;;  %v7574_v43 = vld [vmem:[#allocation13 + $0x68] sm:$0xff]  }
 0x851   : > { %5924 = vxpose.xlu0.b32.cont [6/8] (short) (narrow) %v5875_v57, 8  ;;  %6431 = vmatpush1.bf16.msra.mxu1 %v7512_v36  ;;  %v7576_v36 = vld [vmem:[#allocation13 + $0x28] sm:$0xff]  }
 0x853   : > { %5894 = vxpose.xlu1.b32.end [8/8] (short) (narrow) %v7314_v10, 8  ;;  %v7520_v10 = vld [vmem:[#allocation11 + $0x44] ss:$16 sps:$4 sm:$0xff]  }
 0x854   : > { %6432 = vmatprep.subr.bf16.mxu1 %v7520_v10  ;;  %v7578_v10 = vld [vmem:[#allocation13 + $0x70] sm:$0xff]  }
 0x855   : > { %5925 = vxpose.xlu0.b32.cont [7/8] (short) (narrow) %v7323_v19, 8  ;;  %v7518_v19 = vld [vmem:[#allocation11 + $0x40] ss:$16 sps:$4 sm:$0xff]  }
 0x856   : > { %6433 = vmatpush1.bf16.msra.mxu1 %v7518_v19  ;;  %v7580_v19 = vld [vmem:[#allocation13 + $0x30] sm:$0xff]  }
 0x857   : > { %6434 = vmatprep.subr.bf16.mxu1 %v7526_v49  ;;  %v6262_v49 = vsub.s32 3, %v8268_v42 }
 0x859   : > { %5926 = vxpose.xlu0.b32.end [8/8] (short) (narrow) %v7324_v23, 8 }
 0x85a   : > { %6435 = vmatpush1.bf16.msra.mxu1 %v7524_v41  ;;  %v6246_v41 = vld [vmem:[%s9414_s15] sm:$0xf]  ;;  %s7811_s15 = scalar_lea.vmem %s7810_s8, 256 }
 0x85b   : > { %6436 = vmatprep.subr.bf16.mxu1 %v7532_v1  ;;  %v9416_v1 = vsub.s32 2, %v8268_v42  ;;  %p7813_p3 = scmp.lt.s32.totalorder %s7811_s15, %s7805_s1 }
 0x85d   : > { %p7814_p2 = por %p7813_p3, %p7812_p1 }
 0x85f   : > { %p7815_p0 = pnand %p7814_p2, %p7808_p13 }
 0x8b7   : > { %v5903_v40 = vpop.trf.xlu1 }
 0x8b8   : > { %v5951_v0 = vcombine.high %v5903_v40, %v9410_v61  ;;  %v5958_v8 = vrot.slane %v5903_v40, %v8291_v63  ;;  %v7535_v40 = vld [vmem:[#allocation11 + $0x8c] ss:$16 sps:$4 sm:$0xff]  }
 0x8ba   : > { %v5965_v56 = vrot.slane %v5951_v0, %v8291_v63  ;;  %v7530_v0 = vld [vmem:[#allocation11 + $0x80] ss:$16 sps:$4 sm:$0xff]  }
 0x8bb   : > { %6437 = vmatpush1.bf16.msra.mxu1 %v7530_v0  ;;  %v9417_v0 = vsub.s32 1, %v8268_v42 }
 0x8bd   : > { %v5935_v26 = vpop.trf.xlu0 }
 0x8be   : > { %v5966_v12 = vcombine.high %v5935_v26, %v9410_v61  ;;  %v5973_v30 = vrot.slane %v5935_v26, %v8291_v63  ;;  %v7538_v26 = vld [vmem:[#allocation11 + $0xa4] ss:$16 sps:$4 sm:$0xff]  }
 0x8bf   : > { %6438 = vmatprep.subr.bf16.mxu1 %v7538_v26  ;;  %v6263_v26 = vrot.slane %v6246_v41, %v6262_v49 }
 0x8c0   : > { %v5980_v24 = vrot.slane %v5966_v12, %v8291_v63  ;;  %v5981_v5 = vcombine.low %v5958_v8, %v5973_v30  ;;  %v5982_v50 = vcombine.high %v5958_v8, %v5973_v30  ;;  %v7533_v8 = vld [vmem:[#allocation11 + $0x88] ss:$16 sps:$4 sm:$0xff]   ;;  %v7536_v12 = vld [vmem:[#allocation11 + $0xa0] ss:$16 sps:$4 sm:$0xff]  }
 0x8c1   : > { %v7539_v30 = vld [vmem:[#allocation11 + $0xa8] ss:$16 sps:$4 sm:$0xff]   ;;  %6439 = vmatpush1.bf16.msra.mxu1 %v7536_v12 }
 0x8c2   : > { %v5989_v58 = vrot.slane %v5981_v5, %v8294_v2  ;;  %v5996_v20 = vrot.slane %v5982_v50, %v8294_v2  ;;  %v5997_v28 = vcombine.low %v5965_v56, %v5980_v24  ;;  %v5998_v17 = vcombine.high %v5965_v56, %v5980_v24  ;;  %v7541_v56 = vld [vmem:[#allocation11 + $0xac] ss:$16 sps:$4 sm:$0xff]   ;;  %v7544_v24 = vld [vmem:[#allocation11 + $0xc4] ss:$16 sps:$4 sm:$0xff]   ;;  %v7542_v50 = vld [vmem:[#allocation11 + $0xc0] ss:$16 sps:$4 sm:$0xff]  }
 0x8c3   : > { %v7547_v5 = vld [vmem:[#allocation11 + $0xcc] ss:$16 sps:$4 sm:$0xff]   ;;  %6440 = vmatprep.subr.bf16.mxu1 %v7544_v24 }
 0x8c4   : > { %v6005_v11 = vrot.slane %v5997_v28, %v8294_v2  ;;  %v6012_v55 = vrot.slane %v5998_v17, %v8294_v2  ;;  %v6017_v13 = vcombine.low %v5989_v58, %v5996_v20  ;;  %v7097_v39 = vcombine.high %v5989_v58, %v5996_v20  ;;  %v7545_v58 = vld [vmem:[#allocation11 + $0xc8] ss:$16 sps:$4 sm:$0xff]   ;;  %v7550_v20 = vld [vmem:[#allocation11 + $0xe4] ss:$16 sps:$4 sm:$0xff]   ;;  %v7553_v28 = vld [vmem:[#allocation11 + $0xec] ss:$16 sps:$4 sm:$0xff]  }
 0x8c5   : > { %6441 = vmatpush1.bf16.msra.mxu1 %v7542_v50  ;;  %v7548_v17 = vld [vmem:[#allocation11 + $0xe0] ss:$16 sps:$4 sm:$0xff]  }
 0x8c6   : > { %v6024_v61 = vrot.slane %v6017_v13, %v8291_v63  ;;  %v6032_v18 = vrot.slane %v7097_v39, %v8291_v63  ;;  %v6033_v48 = vcombine.low %v6005_v11, %v6012_v55  ;;  %v7098_v29 = vcombine.high %v6005_v11, %v6012_v55  ;;  %6442 = vmatprep.subr.bf16.mxu1 %v7550_v20  ;;  %v7551_v11 = vld [vmem:[#allocation11 + $0xe8] ss:$16 sps:$4 sm:$0xff]  }
 0x8c8   : > { %v6040_v47 = vrot.slane %v6033_v48, %v8291_v63  ;;  %v6048_v32 = vrot.slane %v7098_v29, %v8291_v63  ;;  %v6049_v22 = vcombine.low %v6024_v61, %v6032_v18  ;;  %v7107_v63 = vld [vmem:[%s9366_s6] ss:$0 sm:$0xff] }
 0x8c9   : > { %6443 = vmatpush1.bf16.msra.mxu1 %v7548_v17  ;;  %v7108_v61 = vld [vmem:[%s9412_s30] ss:$0 sm:$0xff] }
 0x8ca   : > { %v6057_v45 = vcombine.low %v6040_v47, %v6048_v32  ;;  %v6056_v9 = vrot.slane %v6049_v22, %v8294_v2  ;;  %v7109_v48 = vld [vmem:[%s9413_s20] ss:$0 sm:$0xff]  ;;  %v7554_v22 = vld [vmem:[#allocation13 + $0x40] sm:$0xff]   ;;  %s9316_s20 = scalar_lea.hbm %s9419_s19, %s7176_s22 }
 0x8cb   : > { %7217 = vmatprep.subr.bf16.mxu1 %v7554_v22 }
 0x8cc   : > { %v6064_v51 = vrot.slane %v6057_v45, %v8294_v2  ;;  %v7555_v45 = vld [vmem:[#allocation13 + $0xc0] sm:$0xff]  }
 0x8ce   : > { %v6066_v44 = vcombine.high %v6056_v9, %v6064_v51  ;;  %v6065_v62 = vcombine.low %v6056_v9, %v6064_v51  ;;  %v7556_v9 = vld [vmem:[#allocation13] sm:$0xff]  }
 0x8cf   : > { %v7557_v51 = vld [vmem:[#allocation13 + $0x80] sm:$0xff]  }
 0x8d0   : > { %6068 = vrot.lane.b32.xlu0 %v6066_v44, %s7901_s29  ;;  %v7558_v44 = vld [vmem:[#allocation13 + $0x48] sm:$0xff]  }
 0x942   : > { %v6069_v60 = vpop.permute.xlu0 %6068 }
 0x943   : > { %v6071_v59 = vsel %vm3356_vm1, %v6065_v62, %v6069_v60  ;;  %v7559_v62 = vld [vmem:[#allocation13 + $0xc8] sm:$0xff]  }
 0x944   : > { %v6072_v4 = vpack.c.bf16 %v6071_v59, %v6071_v59  ;;  %v7560_v60 = vld [vmem:[#allocation13 + $0x8] sm:$0xff]  }
 0x945   : > { %v7561_v59 = vld [vmem:[#allocation13 + $0x88] sm:$0xff]  }
 0x946   : > { %7342 = vmatmul.mubr.bf16.vlgmr.msra.gmra.mrb[12].mxu0 %v6072_v4  ;;  %v7562_v4 = vld [vmem:[#allocation13 + $0x50] sm:$0xff]  }
 0x947   : > { %6501 = vmatprep.mubr.bf16.mxu0 %v7899_v25  ;;  %v7517_v25 = vld [vmem:[#allocation11 + $0x2c] ss:$16 sps:$4 sm:$0xff]   ;;  %6470 = vmatpush1.bf16.msra.mxu0 %v7509_v53  ;;  %v7572_v53 = vld [vmem:[#allocation13 + $0x20] sm:$0xff]  }
 0x948   : > { %6471 = vmatprep.subr.bf16.mxu0 %v7517_v25  ;;  %v7575_v25 = vld [vmem:[#allocation13 + $0xe8] sm:$0xff]  }
 0x94b   : > { %6472 = vmatpush1.bf16.msra.mxu0 %v7515_v14  ;;  %v7577_v14 = vld [vmem:[#allocation13 + $0xa8] sm:$0xff]  }
 0x94c   : > { %6473 = vmatprep.subr.bf16.mxu0 %v7523_v15  ;;  %v7579_v15 = vld [vmem:[#allocation13 + $0xf0] sm:$0xff]  }
 0x94f   : > { %6474 = vmatpush1.bf16.msra.mxu0 %v7521_v7  ;;  %v7581_v7 = vld [vmem:[#allocation13 + $0xb0] sm:$0xff]  }
 0x950   : > { %6475 = vmatprep.subr.bf16.mxu0 %v7529_v33 }
 0x953   : > { %6476 = vmatpush1.bf16.msra.mxu0 %v7527_v21  ;;  %v9415_v21 = vsub.s32 0, %v8268_v42 }
 0x954   : > { %6477 = vmatprep.subr.bf16.mxu0 %v7535_v40  ;;  %v6259_v40 = vrot.slane %v6246_v41, %v9416_v1 }
 0x955   : > { %v6251_v33 = vrot.slane %v6246_v41, %v9415_v21 }
 0x957   : > { %6478 = vmatpush1.bf16.msra.mxu0 %v7533_v8  ;;  %v6255_v8 = vrot.slane %v6246_v41, %v9417_v0 }
 0x958   : > { %6479 = vmatprep.subr.bf16.mxu0 %v7541_v56 }
 0x95b   : > { %6480 = vmatpush1.bf16.msra.mxu0 %v7539_v30 }
 0x95c   : > { %6481 = vmatprep.subr.bf16.mxu0 %v7547_v5 }
 0x95f   : > { %6482 = vmatpush1.bf16.msra.mxu0 %v7545_v58 }
 0x960   : > { %6483 = vmatprep.subr.bf16.mxu0 %v7553_v28 }
 0x963   : > { %6484 = vmatpush1.bf16.msra.mxu0 %v7551_v11 }
 0x964   : > { %7239 = vmatprep.subr.bf16.mxu0 %v7555_v45 }
 0xa19   : > { %v6171_v3 = vpop.f32.mrb[12].mxu0 }
 0xa1a   : > { %v6177_v54 = vadd.f32 %v7606_v38, %v6171_v3  ;;  %v7343_v34 = vpop.f32.mrb[13].mxu0  ;;  %v7563_v3 = vld [vmem:[#allocation13 + $0xd0] sm:$0xff]  }
 0xa1b   : > { %v6174_v2 = vpop.f32.mrb[14].mxu0  ;;  %v7565_v38 = vld [vmem:[#allocation13 + $0x90] sm:$0xff]   ;;  %v7567_v34 = vld [vmem:[#allocation13 + $0xd8] sm:$0xff]  }
 0xa1c   : > { %v9286_v52 = vadd.f32 %v7107_v63, %v6177_v54  ;;  %v7344_v35 = vpop.f32.mrb[15].mxu0  ;;  %v7564_v63 = vld [vmem:[#allocation13 + $0x10] sm:$0xff]   ;;  %v7566_v54 = vld [vmem:[#allocation13 + $0x58] sm:$0xff]  }
 0xa1d   : > { %v7568_v2 = vld [vmem:[#allocation13 + $0x18] sm:$0xff]  }
 0xa1e   : > { %6188 = vadd.xlane.f32.xlu1 %v9286_v52  ;;  %v7569_v35 = vld [vmem:[#allocation13 + $0x98] sm:$0xff]  }
 0xaab   : > { %v6189_v23 = vpop.xlane.xlu1 %6188 }
 0xaac   : > { %v6190_v57 = vmul.f32 0.0078125, %v6189_v23  ;;  %v7582_v23 = vld [vmem:[#allocation13 + $0x78] sm:$0xff]  }
 0xaae   : > { %v6191_v6 = vsub.f32 %v9286_v52, %v6190_v57  ;;  %v7583_v57 = vld [vmem:[#allocation13 + $0xf8] sm:$0xff]  }
 0xab0   : > { %v6192_v31 = vmul.f32 %v6191_v6, %v6191_v6 }
 0xab2   : > { %6193 = vadd.xlane.f32.xlu0 %v6192_v31  ;;  %v7585_v31 = vld [vmem:[#allocation13 + $0xb8] sm:$0xff]  }
 0xb3f   : > { %v6194_v55 = vpop.xlane.xlu0 %6193 }
 0xb40   : > { %v6195_v13 = vmul.f32 0.0078125, %v6194_v55 }
 0xb42   : > { %v6196_v39 = vadd.f32 1e-05, %v6195_v13 }
 0xb44   : > { %7596 = vrsqrt.f32 %v6196_v39 }
 0xb4e   : > { %v7597_v27 = vpop.eup %7596 }
 0xb4f   : > { %v6198_v18 = vmul.f32 %v7597_v27, %v6191_v6  ;;  %v7584_v6 = vld [vmem:[#allocation13 + $0x38] sm:$0xff]  }
 0xb51   : > { %v6205_v29 = vmul.f32 %v7108_v61, %v6198_v18 }
 0xb53   : > { %v6212_v47 = vadd.f32 %v7109_v48, %v6205_v29 }
 0xb55   : > { %v6213_v32 = vpack.c.bf16 %v6212_v47, %v6212_v47 }
 0xb57   : > { %6461 = vmatmul.mubr.bf16.vlgmr.msra.gmra.mrb[20].mxu1 %v6213_v32  ;;  %6502 = vmatmul.mubr.bf16.vlgmr.msra.gmra.mrb[16].mxu0 %v6213_v32 }
 0xb58   : > { %7218 = vmatpush3.bf16.msra.mxu1 %v7556_v9  ;;  %7240 = vmatpush3.bf16.msra.mxu0 %v7557_v51 }
 0xb59   : > { %7219 = vmatprep.subr.bf16.mxu1 %v7558_v44  ;;  %7241 = vmatprep.subr.bf16.mxu0 %v7559_v62 }
 0xb5c   : > { %7220 = vmatpush3.bf16.msra.mxu1 %v7560_v60  ;;  %7242 = vmatpush3.bf16.msra.mxu0 %v7561_v59 }
 0xb5d   : > { %7221 = vmatprep.subr.bf16.mxu1 %v7562_v4  ;;  %7243 = vmatprep.subr.bf16.mxu0 %v7563_v3 }
 0xb60   : > { %7222 = vmatpush3.bf16.msra.mxu1 %v7564_v63  ;;  %7244 = vmatpush3.bf16.msra.mxu0 %v7565_v38 }
 0xb61   : > { %7223 = vmatprep.subr.bf16.mxu1 %v7566_v54  ;;  %7245 = vmatprep.subr.bf16.mxu0 %v7567_v34 }
 0xb64   : > { %7224 = vmatpush3.bf16.msra.mxu1 %v7568_v2  ;;  %7246 = vmatpush3.bf16.msra.mxu0 %v7569_v35 }
 0xb65   : > { %7225 = vmatprep.subr.bf16.mxu1 %v7570_v37  ;;  %7247 = vmatprep.subr.bf16.mxu0 %v7571_v46 }
 0xb68   : > { %7226 = vmatpush3.bf16.msra.mxu1 %v7572_v53  ;;  %7248 = vmatpush3.bf16.msra.mxu0 %v7573_v16 }
 0xb69   : > { %7227 = vmatprep.subr.bf16.mxu1 %v7574_v43  ;;  %7249 = vmatprep.subr.bf16.mxu0 %v7575_v25 }
 0xb6c   : > { %7228 = vmatpush3.bf16.msra.mxu1 %v7576_v36  ;;  %7250 = vmatpush3.bf16.msra.mxu0 %v7577_v14 }
 0xb6d   : > { %7229 = vmatprep.subr.bf16.mxu1 %v7578_v10  ;;  %7251 = vmatprep.subr.bf16.mxu0 %v7579_v15 }
 0xb70   : > { %7230 = vmatpush3.bf16.msra.mxu1 %v7580_v19  ;;  %7252 = vmatpush3.bf16.msra.mxu0 %v7581_v7 }
 0xb71   : > { %7231 = vmatprep.subr.bf16.mxu1 %v7582_v23  ;;  %7253 = vmatprep.subr.bf16.mxu0 %v7583_v57 }
 0xb74   : > { %7232 = vmatpush3.bf16.msra.mxu1 %v7584_v6  ;;  %7254 = vmatpush3.bf16.msra.mxu0 %v7585_v31 }
 0xc2a   : > { %v6462_v56 = vpop.f32.mrb[20].mxu1  ;;  %v6503_v12 = vpop.f32.mrb[16].mxu0 }
 0xc2b   : > { %v6463_v30 = vadd.f32 %v6462_v56, %v6251_v33  ;;  %v6504_v24 = vadd.f32 %v6503_v12, %v6259_v40  ;;  %v6464_v5 = vpop.f32.mrb[21].mxu1  ;;  %v6505_v50 = vpop.f32.mrb[17].mxu0  ;;  %v7174_v56 = vld [vmem:[%s9418_s21] ss:$0 sm:$0xff] }
 0xc2c   : > { %v6465_v58 = vadd.f32 %v6464_v5, %v6255_v8  ;;  %v6506_v20 = vadd.f32 %v6505_v50, %v6263_v26  ;;  %v6466_v28 = vpop.f32.mrb[22].mxu1  ;;  %v6507_v17 = vpop.f32.mrb[18].mxu0 }
 0xc2d   : > { %v6514_v11 = vmul.f32 0.044715, %v6463_v30  ;;  %v6516_v55 = vmul.f32 0.044715, %v6504_v24  ;;  %v6467_v13 = vpop.f32.mrb[23].mxu1  ;;  %v6508_v39 = vpop.f32.mrb[19].mxu0 }
 0xc2e   : > { %v6515_v27 = vmul.f32 0.044715, %v6465_v58  ;;  %v6517_v61 = vmul.f32 0.044715, %v6506_v20  ;;  %v6510_v54 = vmul.f32 0.5, %v6463_v30  ;;  %v6511_v35 = vmul.f32 0.5, %v6465_v58 }
 0xc2f   : > { %v6518_v18 = vmul.f32 %v6514_v11, %v6463_v30  ;;  %v6520_v42 = vmul.f32 %v6516_v55, %v6504_v24  ;;  %v6513_v53 = vmul.f32 0.5, %v6506_v20  ;;  %v6512_v36 = vmul.f32 0.5, %v6504_v24 }
 0xc30   : > { %v6519_v48 = vmul.f32 %v6515_v27, %v6465_v58  ;;  %v6521_v29 = vmul.f32 %v6517_v61, %v6506_v20 }
 0xc31   : > { %v6522_v47 = vmul.f32 %v6518_v18, %v6463_v30  ;;  %v6524_v32 = vmul.f32 %v6520_v42, %v6504_v24 }
 0xc32   : > { %v6523_v22 = vmul.f32 %v6519_v48, %v6465_v58  ;;  %v6525_v45 = vmul.f32 %v6521_v29, %v6506_v20 }
 0xc33   : > { %v6526_v9 = vadd.f32 %v6522_v47, %v6463_v30  ;;  %v6528_v51 = vadd.f32 %v6524_v32, %v6504_v24 }
 0xc34   : > { %v6527_v44 = vadd.f32 %v6523_v22, %v6465_v58  ;;  %v6529_v62 = vadd.f32 %v6525_v45, %v6506_v20 }
 0xc35   : > { %v6530_v60 = vmul.f32 0.7978846, %v6526_v9  ;;  %v6532_v3 = vmul.f32 0.7978846, %v6528_v51 }
 0xc36   : > { %v6531_v59 = vmul.f32 0.7978846, %v6527_v44  ;;  %v6533_v4 = vmul.f32 0.7978846, %v6529_v62 }
 0xc37   : > { %7598 = vtanh.f32 %v6530_v60 }
 0xc38   : > { %7600 = vtanh.f32 %v6531_v59 }
 0xc39   : > { %7602 = vtanh.f32 %v6533_v4 }
 0xc3a   : > { %7604 = vtanh.f32 %v6532_v3 }
 0xc41   : > { %v7599_v63 = vpop.eup %7598 }
 0xc42   : > { %v7601_v38 = vpop.eup %7600  ;;  %v6538_v34 = vadd.f32 1.0, %v7599_v63 }
 0xc43   : > { %v7603_v2 = vpop.eup %7602  ;;  %v6539_v37 = vadd.f32 1.0, %v7601_v38 }
 0xc44   : > { %v7605_v46 = vpop.eup %7604  ;;  %v6541_v16 = vadd.f32 1.0, %v7603_v2  ;;  %v6542_v43 = vmul.f32 %v6538_v34, %v6510_v54 }
 0xc45   : > { %v6543_v25 = vmul.f32 %v6539_v37, %v6511_v35  ;;  %v6540_v14 = vadd.f32 1.0, %v7605_v46 }
 0xc46   : > { %v6545_v10 = vmul.f32 %v6541_v16, %v6513_v53  ;;  %v6546_v23 = vpack.c.bf16 %v6542_v43, %v6542_v43 }
 0xc47   : > { %v6547_v15 = vpack.c.bf16 %v6543_v25, %v6543_v25  ;;  %v6544_v19 = vmul.f32 %v6540_v14, %v6512_v36 }
 0xc48   : > { %v6549_v7 = vpack.c.bf16 %v6545_v10, %v6545_v10 }
 0xc49   : > { %6838 = vmatprep.mubr.bf16.mxu1 %v6547_v15  ;;  %v6548_v57 = vpack.c.bf16 %v6544_v19, %v6544_v19 }
 0xc4a   : > { %6878 = vmatprep.mubr.bf16.mxu0 %v6549_v7  ;;  %6839 = vmatmul.mubr.bf16.vlgmr.msra.gmra.mrb[24].mxu1 %v6546_v23 }
 0xc4b   : > { %6879 = vmatmul.mubr.bf16.vlgmr.msra.gmra.mrb[20].mxu0 %v6548_v57 }
 0xd1d   : > { %v7233_v6 = vpop.f32.mrb[24].mxu1 }
 0xd1e   : > { %v7255_v31 = vpop.f32.mrb[20].mxu0  ;;  %v7234_v41 = vpop.f32.mrb[25].mxu1 }
 0xd1f   : > { %v7235_v49 = vadd.f32 %v7234_v41, %v7233_v6  ;;  %v7256_v21 = vpop.f32.mrb[21].mxu0  ;;  %v7236_v33 = vpop.f32.mrb[26].mxu1 }
 0xd20   : > { %v7257_v1 = vadd.f32 %v7256_v21, %v7255_v31  ;;  %v7258_v40 = vpop.f32.mrb[22].mxu0  ;;  %v7237_v0 = vpop.f32.mrb[27].mxu1 }
 0xd21   : > { %v7259_v8 = vpop.f32.mrb[23].mxu0 }
 0xd22   : > { %v6881_v26 = vadd.f32 %v7257_v1, %v7235_v49 }
 0xd24   : > { %v6886_v12 = vadd.f32 %v6881_v26, %v9286_v52 }
 0xd26   : > { %v6894_v30 = vadd.f32 %v7174_v56, %v6886_v12 }
 0xd28   : > { %6895 = vst [vmem:[%s538_s16] sm:$0xff] %v6894_v30 }
 0xd29   : > { %7818 = shalt.err (!%p7815_p0)
}
 0xd2a   : > { %s7819_s17 = scalar_lea.hbm %s9316_s20, 128  ;;  %s7823_s21 = scalar_lea.hbm %s9419_s19, 256 }
 0xd2b   : > { %p7820_p10 = scmp.ne.s32.totalorder %s9316_s20, %s7819_s17  ;;  %p7824_p8 = scmp.lt.u32.totalorder %s9316_s20, %s9419_s19 }
 0xd2c   : > { %p7825_p5 = scmp.lt.u32.totalorder %s7823_s21, %s7819_s17  ;;  %p7827_p6 = scmp.lt.u32.totalorder %s7819_s17, %s9316_s20 }
 0xd2d   : > { %p7821_p11 = pnand %p7820_p10, %p9420_p9 }
 0xd2e   : > { %p7826_p7 = por %p7825_p5, %p7824_p8 }
 0xd2f   : > { %p7822_p12 = pneg %p7821_p11 }
 0xd30   : > { %p7828_p4 = por %p7827_p6, %p7826_p7 }
 0xd32   : > { %p7829_p13 = pnand %p7828_p4, %p7822_p12 }
 0xd34   : > { %7832 = shalt.err (!%p7829_p13)
}
 0xd35   : > { %7373 = dma.vmem_to_hbm [thread:$0]  (%p9420_p9), %s9318_s13, 128, %s9316_s20, %s6897_s12  }
 0xd36 PF: > { %s6922_s30 = sand.u32 1, %s7871_s25   ;;  %p9421_p1 = scmp.ne.s32.totalorder %s9400_s7, 0 }
 0xd37   : > { %p9422_p3 = scmp.ge.s32.totalorder %s7883_s28, 2  ;;  %s6923_s23 = scalar_lea.sflag [#allocation4], %s6922_s30 }
 0xd39   : > { %p7399_p2 = pnand %p9422_p3, %p9421_p1 }
 0xd3b   : > { %7866 = dma.done.wait (!%p7399_p2), %s6923_s23, 128  }
 0xd3c   : > { %7868 = vsyncadd (!%p7399_p2), %s6923_s23, 4294967168  ;;  %p29_p0 = scmp.ge.s32.totalorder %s8152_s18, 4   ;;  %s9423_s25 = smov %s7875_s26 }
 0xd3d   : > { %s9424_s26 = smov %s7879_s27  ;;  %s9425_s27 = smov %s8163_s10 }
 0xd3e   : > { %s9426_s28 = smov %s8152_s18  ;;  %31 = sbr.rel (!%p29_p0) target bundleno = 16 (0x10), region = 141 }
 0xd45   :  { %6928 = vsyncpa [#allocation3], 1 }
 0xd46   :  { %6930 = vsyncpa [#allocation3 + $0x1], 1 }
 0xd47   :  { %6931 = vsyncpa [#allocation6], 1 }
 0xd48   :  { %6932 = vsyncpa [#allocation9], 1 }
 0xd49   :  { %6933 = vsyncpa [#allocation12], 1 }
 0xd4a   :  { %6934 = vsyncpa [#allocation4], 1 }
 0xd4b   :  { %6936 = vsyncpa [#allocation4 + $0x1], 1 }

</bundles_post_ra>
